<compile_context>
chip_gen: v5e
topology: v5e:2x2
jax: 0.10.0
libtpu: 0.0.40
codegen_flags: <defaults>
</compile_context>

<pallas_src>
import math

import jax
import jax.numpy as jnp
from jax.experimental import pallas as pl
from jax.experimental.pallas import tpu as pltpu

# ---- model hyper-parameters (mirrors the PyTorch module defaults) -----------
ACTION_DIM = 2
EMB = 32                # hidden_size: width of each of the 4 source embeddings
D = 128                 # transformer d_model (4 * EMB after concatenation)
NH = 4                  # n_heads
HD = D // NH            # head dim = 32
FF = 256                # ffn_dim
N_LAYERS = 3
H1 = 64                 # strategy_head_1
H2 = H1 // 2            # 32
CONTEXT_LENGTH = 15
MAX_RTG = 100.0
LN_EPS = 1e-5
OUT_PAD = 128           # logits padded to lane-dense width; sliced to ACTION_DIM outside


# ----------------------------- kernel helpers --------------------------------
def _layer_norm(x, g, b):
    mu = jnp.mean(x, axis=-1, keepdims=True)
    var = jnp.mean((x - mu) ** 2, axis=-1, keepdims=True)
    return (x - mu) * jax.lax.rsqrt(var + LN_EPS) * g + b


def _gelu(x):
    # TODO(synk): PyTorch uses exact (erf) GELU; tanh approximation used here for Mosaic-safe lowering.
    return jax.nn.gelu(x, approximate=True)


def _softmax_rows(s):
    m = jnp.max(s, axis=-1, keepdims=True)
    e = jnp.exp(s - m)
    return e * pl.reciprocal(jnp.sum(e, axis=-1, keepdims=True), approx=True)


# --------------------------------- kernel ------------------------------------
def _transformer_kernel(
    x_ref,                      # (BL, D)  flattened token embeddings (pre embed_ln)
    bias_ref,                   # (BL, BL) block-diagonal bias: 0 same-sequence, -1e30 cross
    eln_g_ref, eln_b_ref,       # (1, D)   embed LayerNorm
    ln1g_ref, ln1b_ref,         # (NL, D)
    inw_ref, inb_ref,           # (NL, D, 3D), (NL, 3D)   pre-transposed, Q part pre-scaled
    outw_ref, outb_ref,         # (NL, D, D),  (NL, D)    pre-transposed
    ln2g_ref, ln2b_ref,         # (NL, D)
    f1w_ref, f1b_ref,           # (NL, D, FF), (NL, FF)   pre-transposed
    f2w_ref, f2b_ref,           # (NL, FF, D), (NL, D)    pre-transposed
    hw1_ref, hb1_ref,           # (D, H1), (1, H1)
    hw2_ref, hb2_ref,           # (H1, H2), (1, H2)
    hw3_ref, hb3_ref,           # (H2, OUT_PAD), (1, OUT_PAD)  zero-padded past ACTION_DIM
    o_ref,                      # (BL, OUT_PAD)
    attn_ref,                   # VMEM scratch (BL, D): per-head attention outputs
):
    x = x_ref[...]
    bias = bias_ref[...]

    # embed LayerNorm
    x = _layer_norm(x, eln_g_ref[...], eln_b_ref[...])

    for l in range(N_LAYERS):
        # ---- self-attention block (norm_first); 1/sqrt(HD) folded into Q weights ----
        h = _layer_norm(x, ln1g_ref[l:l + 1, :], ln1b_ref[l:l + 1, :])
        qkv = (jnp.dot(h, inw_ref[l], preferred_element_type=jnp.float32)
               + inb_ref[l:l + 1, :])                               # (BL, 3D)
        for hh in range(NH):
            q_h = qkv[:, hh * HD:(hh + 1) * HD]                     # (BL, HD)
            k_h = qkv[:, D + hh * HD:D + (hh + 1) * HD]             # (BL, HD)
            v_h = qkv[:, 2 * D + hh * HD:2 * D + (hh + 1) * HD]     # (BL, HD)
            # contract the HD axis directly (no k transpose); bias kills
            # cross-sequence attention so all sequences share one matmul.
            s = jax.lax.dot_general(
                q_h, k_h, (((1,), (1,)), ((), ())),
                preferred_element_type=jnp.float32) + bias          # (BL, BL)
            p = _softmax_rows(s)
            attn_ref[:, hh * HD:(hh + 1) * HD] = jnp.dot(
                p, v_h, preferred_element_type=jnp.float32)
        attn = (jnp.dot(attn_ref[...], outw_ref[l],
                        preferred_element_type=jnp.float32)
                + outb_ref[l:l + 1, :])
        x = x + attn

        # ---- feed-forward block (norm_first) ----
        h2 = _layer_norm(x, ln2g_ref[l:l + 1, :], ln2b_ref[l:l + 1, :])
        ff = _gelu(jnp.dot(h2, f1w_ref[l], preferred_element_type=jnp.float32)
                   + f1b_ref[l:l + 1, :])
        ff = (jnp.dot(ff, f2w_ref[l], preferred_element_type=jnp.float32)
              + f2b_ref[l:l + 1, :])
        x = x + ff

    # ---- strategy head (dropout = identity at inference) ----
    y = _gelu(jnp.dot(x, hw1_ref[...], preferred_element_type=jnp.float32)
              + hb1_ref[...])
    y = _gelu(jnp.dot(y, hw2_ref[...], preferred_element_type=jnp.float32)
              + hb2_ref[...])
    o_ref[...] = (jnp.dot(y, hw3_ref[...], preferred_element_type=jnp.float32)
                  + hb3_ref[...])


# ------------------------------ pallas wrapper --------------------------------
def transformer_pallas(token_embed, p, *, batch_block=None):
    """token_embed: (B, L, D) pre-embed_ln token embeddings."""
    B, L, d = token_embed.shape
    assert d == D
    Bb = B if batch_block is None else batch_block
    assert B % Bb == 0
    bl = Bb * L

    x = token_embed.reshape(B * L, D)

    # Block-diagonal additive bias: tokens attend only within their own sequence.
    bid = jnp.repeat(jnp.arange(Bb, dtype=jnp.int32), L)
    attn_bias = jnp.where(bid[:, None] == bid[None, :], 0.0, -1e30).astype(jnp.float32)

    weights = (
        p["eln_g"], p["eln_b"],
        p["ln1_g"], p["ln1_b"], p["in_w"], p["in_b"], p["out_w"], p["out_b"],
        p["ln2_g"], p["ln2_b"], p["f1_w"], p["f1_b"], p["f2_w"], p["f2_b"],
        p["hw1"], p["hb1"], p["hw2"], p["hb2"], p["hw3"], p["hb3"],
    )

    def full_spec(shape):
        nd = len(shape)
        return pl.BlockSpec(shape, lambda i, _nd=nd: (0,) * _nd)

    in_specs = [pl.BlockSpec((bl, D), lambda i: (i, 0)),
                full_spec(attn_bias.shape)]
    in_specs += [full_spec(w.shape) for w in weights]

    out = pl.pallas_call(
        _transformer_kernel,
        out_shape=jax.ShapeDtypeStruct((B * L, OUT_PAD), jnp.float32),
        grid_spec=pltpu.PrefetchScalarGridSpec(
            num_scalar_prefetch=0,
            grid=(B // Bb,),                      # 1 step by default (grid collapsed)
            in_specs=in_specs,
            out_specs=pl.BlockSpec((bl, OUT_PAD), lambda i: (i, 0)),
            scratch_shapes=[pltpu.VMEM((bl, D), jnp.float32)],
        ),
        compiler_params=pltpu.CompilerParams(
            dimension_semantics=("parallel",)),   # shards across TCs on v7x if chunked
    )(x, attn_bias, *weights)

    return out[:, :ACTION_DIM].reshape(B, L, ACTION_DIM)


# --------------------------- parameter construction --------------------------
def init_params(key):
    """Random params in (stacked) PyTorch layout: Linear weights are (out, in)."""
    ks = jax.random.split(key, 12)

    def normal(k, shape):
        return (0.02 * jax.random.normal(k, shape)).astype(jnp.float32)

    p = {}
    # input embeddings / projections
    p["player_emb"] = normal(ks[0], (ACTION_DIM, EMB))
    p["opp_emb"] = normal(ks[1], (ACTION_DIM, EMB))
    p["rtg_w"] = normal(ks[2], (EMB, 1))                 # nn.Linear(1, EMB).weight
    p["rtg_b"] = jnp.zeros((EMB,), jnp.float32)
    p["sf_w"] = normal(ks[3], (EMB, 3))                  # nn.Linear(3, EMB).weight
    p["sf_b"] = jnp.zeros((EMB,), jnp.float32)
    p["pos_emb"] = normal(ks[4], (CONTEXT_LENGTH, D))
    # embed LayerNorm
    p["eln_g"] = jnp.ones((1, D), jnp.float32)
    p["eln_b"] = jnp.zeros((1, D), jnp.float32)
    # stacked transformer layers (TransformerEncoderLayer, norm_first=True)
    p["ln1_g"] = jnp.ones((N_LAYERS, D), jnp.float32)
    p["ln1_b"] = jnp.zeros((N_LAYERS, D), jnp.float32)
    p["in_w"] = normal(ks[5], (N_LAYERS, 3 * D, D))      # MHA in_proj_weight
    p["in_b"] = jnp.zeros((N_LAYERS, 3 * D), jnp.float32)
    p["out_w"] = normal(ks[6], (N_LAYERS, D, D))         # MHA out_proj.weight
    p["out_b"] = jnp.zeros((N_LAYERS, D), jnp.float32)
    p["ln2_g"] = jnp.ones((N_LAYERS, D), jnp.float32)
    p["ln2_b"] = jnp.zeros((N_LAYERS, D), jnp.float32)
    p["f1_w"] = normal(ks[7], (N_LAYERS, FF, D))
    p["f1_b"] = jnp.zeros((N_LAYERS, FF), jnp.float32)
    p["f2_w"] = normal(ks[8], (N_LAYERS, D, FF))
    p["f2_b"] = jnp.zeros((N_LAYERS, D), jnp.float32)
    # strategy head: 128 -> 64 -> 32 -> ACTION_DIM
    p["hw1"] = normal(ks[9], (H1, D))
    p["hb1"] = jnp.zeros((1, H1), jnp.float32)
    p["hw2"] = normal(ks[10], (H2, H1))
    p["hb2"] = jnp.zeros((1, H2), jnp.float32)
    p["hw3"] = normal(ks[11], (ACTION_DIM, H2))
    p["hb3"] = jnp.zeros((1, ACTION_DIM), jnp.float32)
    return p


def prepare_params(p):
    """One-time host-side prep: pre-transpose matmul weights to (in, out), fold the
    1/sqrt(HD) attention scale into the Q projection, and zero-pad the final head
    layer to a lane-dense OUT_PAD-wide output."""
    scale = 1.0 / math.sqrt(HD)
    q = dict(p)
    in_w = jnp.swapaxes(p["in_w"], 1, 2)                 # (NL, D, 3D)
    q["in_w"] = in_w.at[:, :, :D].multiply(scale)        # scale Q columns
    q["in_b"] = p["in_b"].at[:, :D].multiply(scale)      # scale Q bias
    q["out_w"] = jnp.swapaxes(p["out_w"], 1, 2)          # (NL, D, D)
    q["f1_w"] = jnp.swapaxes(p["f1_w"], 1, 2)            # (NL, D, FF)
    q["f2_w"] = jnp.swapaxes(p["f2_w"], 1, 2)            # (NL, FF, D)
    q["hw1"] = p["hw1"].T                                # (D, H1)
    q["hw2"] = p["hw2"].T                                # (H1, H2)
    q["hw3"] = (jnp.zeros((H2, OUT_PAD), jnp.float32)
                .at[:, :ACTION_DIM].set(p["hw3"].T))     # (H2, OUT_PAD)
    q["hb3"] = (jnp.zeros((1, OUT_PAD), jnp.float32)
                .at[:, :ACTION_DIM].set(p["hb3"]))       # (1, OUT_PAD)
    return q


# ------------------------------- forward glue --------------------------------
@jax.jit
def forward(params, player_actions, opponent_actions, returns_to_go,
            strategic_features):
    # TODO(synk): embedding gathers / concat glue kept as tiny fused XLA ops; could be
    # moved in-kernel via scalar-prefetched indices if dispatch overhead matters.
    B, L = player_actions.shape
    rtg_norm = jnp.clip(returns_to_go[..., None] / MAX_RTG, 0.0, 1.0)     # (B, L, 1)
    player_embed = params["player_emb"][player_actions]                    # (B, L, EMB)
    opponent_embed = params["opp_emb"][opponent_actions]                   # (B, L, EMB)
    rtg_embed = rtg_norm * params["rtg_w"][:, 0] + params["rtg_b"]         # (B, L, EMB)
    strat = strategic_features @ params["sf_w"].T + params["sf_b"]         # (B, EMB)
    strat = jnp.broadcast_to(strat[:, None, :], (B, L, EMB))
    token_embed = jnp.concatenate(
        [player_embed, opponent_embed, rtg_embed, strat], axis=-1)         # (B, L, D)
    token_embed = token_embed + params["pos_emb"][:L][None, :, :]
    # hot path: embed_ln + 3 transformer layers + strategy head, in Pallas
    return transformer_pallas(token_embed.astype(jnp.float32), params)


# ------------------------------------ main ------------------------------------
if __name__ == "__main__":
    key = jax.random.PRNGKey(0)
    kp, ko, kr, ks, kw = jax.random.split(key, 5)

    B, L = 2, 8
    params = prepare_params(init_params(kw))

    player_actions = jax.random.randint(kp, (B, L), 0, ACTION_DIM, dtype=jnp.int32)
    opponent_actions = jax.random.randint(ko, (B, L), 0, ACTION_DIM, dtype=jnp.int32)
    returns_to_go = jax.random.uniform(kr, (B, L), jnp.float32, 0.0, 150.0)
    strategic_features = jax.random.uniform(ks, (B, 3), jnp.float32, -1.0, 1.0)

    logits = forward(params, player_actions, opponent_actions, returns_to_go,
                     strategic_features)
    jax.block_until_ready(logits)
    assert logits.shape == (B, L, ACTION_DIM), logits.shape
    assert bool(jnp.all(jnp.isfinite(logits)))
    print("KERNEL_OK")
</pallas_src>

<mosaic_0001>
module attributes {stable_mosaic.version = 11 : i64} {
  func.func @_transformer_kernel(%arg0: i32, %arg1: memref<16x128xf32, #tpu.memory_space<vmem>>, %arg2: memref<16x16xf32, #tpu.memory_space<vmem>>, %arg3: memref<1x128xf32, #tpu.memory_space<vmem>>, %arg4: memref<1x128xf32, #tpu.memory_space<vmem>>, %arg5: memref<3x128xf32, #tpu.memory_space<vmem>>, %arg6: memref<3x128xf32, #tpu.memory_space<vmem>>, %arg7: memref<3x128x384xf32, #tpu.memory_space<vmem>>, %arg8: memref<3x384xf32, #tpu.memory_space<vmem>>, %arg9: memref<3x128x128xf32, #tpu.memory_space<vmem>>, %arg10: memref<3x128xf32, #tpu.memory_space<vmem>>, %arg11: memref<3x128xf32, #tpu.memory_space<vmem>>, %arg12: memref<3x128xf32, #tpu.memory_space<vmem>>, %arg13: memref<3x128x256xf32, #tpu.memory_space<vmem>>, %arg14: memref<3x256xf32, #tpu.memory_space<vmem>>, %arg15: memref<3x256x128xf32, #tpu.memory_space<vmem>>, %arg16: memref<3x128xf32, #tpu.memory_space<vmem>>, %arg17: memref<128x64xf32, #tpu.memory_space<vmem>>, %arg18: memref<1x64xf32, #tpu.memory_space<vmem>>, %arg19: memref<64x32xf32, #tpu.memory_space<vmem>>, %arg20: memref<1x32xf32, #tpu.memory_space<vmem>>, %arg21: memref<32x128xf32, #tpu.memory_space<vmem>>, %arg22: memref<1x128xf32, #tpu.memory_space<vmem>>, %arg23: memref<16x128xf32, #tpu.memory_space<vmem>>, %arg24: memref<16x128xf32, #tpu.memory_space<vmem>>) attributes {dimension_semantics = [#tpu.dimension_semantics<parallel>], iteration_bounds = array<i64: 1>, scalar_prefetch = 0 : i64, scratch_operands = 1 : i64, tpu.core_type = #tpu.core_type<tc>, window_params = [{transform_indices = @transform_0, window_bounds = array<i64: 16, 128>}, {pipeline_mode = #tpu.pipeline_mode<synchronous>, transform_indices = @transform_1, window_bounds = array<i64: 16, 16>}, {pipeline_mode = #tpu.pipeline_mode<synchronous>, transform_indices = @transform_2, window_bounds = array<i64: 1, 128>}, {pipeline_mode = #tpu.pipeline_mode<synchronous>, transform_indices = @transform_3, window_bounds = array<i64: 1, 128>}, {pipeline_mode = #tpu.pipeline_mode<synchronous>, transform_indices = @transform_4, window_bounds = array<i64: 3, 128>}, {pipeline_mode = #tpu.pipeline_mode<synchronous>, transform_indices = @transform_5, window_bounds = array<i64: 3, 128>}, {pipeline_mode = #tpu.pipeline_mode<synchronous>, transform_indices = @transform_6, window_bounds = array<i64: 3, 128, 384>}, {pipeline_mode = #tpu.pipeline_mode<synchronous>, transform_indices = @transform_7, window_bounds = array<i64: 3, 384>}, {pipeline_mode = #tpu.pipeline_mode<synchronous>, transform_indices = @transform_8, window_bounds = array<i64: 3, 128, 128>}, {pipeline_mode = #tpu.pipeline_mode<synchronous>, transform_indices = @transform_9, window_bounds = array<i64: 3, 128>}, {pipeline_mode = #tpu.pipeline_mode<synchronous>, transform_indices = @transform_10, window_bounds = array<i64: 3, 128>}, {pipeline_mode = #tpu.pipeline_mode<synchronous>, transform_indices = @transform_11, window_bounds = array<i64: 3, 128>}, {pipeline_mode = #tpu.pipeline_mode<synchronous>, transform_indices = @transform_12, window_bounds = array<i64: 3, 128, 256>}, {pipeline_mode = #tpu.pipeline_mode<synchronous>, transform_indices = @transform_13, window_bounds = array<i64: 3, 256>}, {pipeline_mode = #tpu.pipeline_mode<synchronous>, transform_indices = @transform_14, window_bounds = array<i64: 3, 256, 128>}, {pipeline_mode = #tpu.pipeline_mode<synchronous>, transform_indices = @transform_15, window_bounds = array<i64: 3, 128>}, {pipeline_mode = #tpu.pipeline_mode<synchronous>, transform_indices = @transform_16, window_bounds = array<i64: 128, 64>}, {pipeline_mode = #tpu.pipeline_mode<synchronous>, transform_indices = @transform_17, window_bounds = array<i64: 1, 64>}, {pipeline_mode = #tpu.pipeline_mode<synchronous>, transform_indices = @transform_18, window_bounds = array<i64: 64, 32>}, {pipeline_mode = #tpu.pipeline_mode<synchronous>, transform_indices = @transform_19, window_bounds = array<i64: 1, 32>}, {pipeline_mode = #tpu.pipeline_mode<synchronous>, transform_indices = @transform_20, window_bounds = array<i64: 32, 128>}, {pipeline_mode = #tpu.pipeline_mode<synchronous>, transform_indices = @transform_21, window_bounds = array<i64: 1, 128>}, {transform_indices = @transform_22, window_bounds = array<i64: 16, 128>}]} {
    %c0 = arith.constant 0 : index
    %c0_0 = arith.constant 0 : index
    %0 = vector.load %arg1[%c0, %c0_0] : memref<16x128xf32, #tpu.memory_space<vmem>>, vector<16x128xf32>
    %c0_1 = arith.constant 0 : index
    %c0_2 = arith.constant 0 : index
    %1 = vector.load %arg2[%c0_1, %c0_2] : memref<16x16xf32, #tpu.memory_space<vmem>>, vector<16x16xf32>
    %c0_3 = arith.constant 0 : index
    %c0_4 = arith.constant 0 : index
    %2 = vector.load %arg3[%c0_3, %c0_4] : memref<1x128xf32, #tpu.memory_space<vmem>>, vector<1x128xf32>
    %c0_5 = arith.constant 0 : index
    %c0_6 = arith.constant 0 : index
    %3 = vector.load %arg4[%c0_5, %c0_6] : memref<1x128xf32, #tpu.memory_space<vmem>>, vector<1x128xf32>
    %cst = arith.constant dense<0.000000e+00> : vector<16xf32>
    %4 = vector.multi_reduction <add>, %0, %cst [1] : vector<16x128xf32> to vector<16xf32>
    %5 = vector.shape_cast %4 : vector<16xf32> to vector<16x1xf32>
    %cst_7 = arith.constant 1.280000e+02 : f32
    %6 = vector.broadcast %cst_7 : f32 to vector<16x1xf32>
    %7 = arith.divf %5, %6 : vector<16x1xf32>
    %8 = vector.broadcast %7 : vector<16x1xf32> to vector<16x128xf32>
    %9 = arith.subf %0, %8 : vector<16x128xf32>
    %10 = arith.mulf %9, %9 : vector<16x128xf32>
    %cst_8 = arith.constant dense<0.000000e+00> : vector<16xf32>
    %11 = vector.multi_reduction <add>, %10, %cst_8 [1] : vector<16x128xf32> to vector<16xf32>
    %12 = vector.shape_cast %11 : vector<16xf32> to vector<16x1xf32>
    %cst_9 = arith.constant 1.280000e+02 : f32
    %13 = vector.broadcast %cst_9 : f32 to vector<16x1xf32>
    %14 = arith.divf %12, %13 : vector<16x1xf32>
    %15 = vector.broadcast %7 : vector<16x1xf32> to vector<16x128xf32>
    %16 = arith.subf %0, %15 : vector<16x128xf32>
    %cst_10 = arith.constant 9.99999974E-6 : f32
    %17 = vector.broadcast %cst_10 : f32 to vector<16x1xf32>
    %18 = arith.addf %14, %17 : vector<16x1xf32>
    %19 = math.rsqrt %18 : vector<16x1xf32>
    %20 = vector.broadcast %19 : vector<16x1xf32> to vector<16x128xf32>
    %21 = arith.mulf %16, %20 : vector<16x128xf32>
    %22 = vector.broadcast %2 : vector<1x128xf32> to vector<16x128xf32>
    %23 = arith.mulf %21, %22 : vector<16x128xf32>
    %24 = vector.broadcast %3 : vector<1x128xf32> to vector<16x128xf32>
    %25 = arith.addf %23, %24 : vector<16x128xf32>
    %c0_11 = arith.constant 0 : index
    %c0_12 = arith.constant 0 : index
    %26 = vector.load %arg5[%c0_11, %c0_12] : memref<3x128xf32, #tpu.memory_space<vmem>>, vector<1x128xf32>
    %c0_13 = arith.constant 0 : index
    %c0_14 = arith.constant 0 : index
    %27 = vector.load %arg6[%c0_13, %c0_14] : memref<3x128xf32, #tpu.memory_space<vmem>>, vector<1x128xf32>
    %cst_15 = arith.constant dense<0.000000e+00> : vector<16xf32>
    %28 = vector.multi_reduction <add>, %25, %cst_15 [1] : vector<16x128xf32> to vector<16xf32>
    %29 = vector.shape_cast %28 : vector<16xf32> to vector<16x1xf32>
    %cst_16 = arith.constant 1.280000e+02 : f32
    %30 = vector.broadcast %cst_16 : f32 to vector<16x1xf32>
    %31 = arith.divf %29, %30 : vector<16x1xf32>
    %32 = vector.broadcast %31 : vector<16x1xf32> to vector<16x128xf32>
    %33 = arith.subf %25, %32 : vector<16x128xf32>
    %34 = arith.mulf %33, %33 : vector<16x128xf32>
    %cst_17 = arith.constant dense<0.000000e+00> : vector<16xf32>
    %35 = vector.multi_reduction <add>, %34, %cst_17 [1] : vector<16x128xf32> to vector<16xf32>
    %36 = vector.shape_cast %35 : vector<16xf32> to vector<16x1xf32>
    %cst_18 = arith.constant 1.280000e+02 : f32
    %37 = vector.broadcast %cst_18 : f32 to vector<16x1xf32>
    %38 = arith.divf %36, %37 : vector<16x1xf32>
    %39 = vector.broadcast %31 : vector<16x1xf32> to vector<16x128xf32>
    %40 = arith.subf %25, %39 : vector<16x128xf32>
    %cst_19 = arith.constant 9.99999974E-6 : f32
    %41 = vector.broadcast %cst_19 : f32 to vector<16x1xf32>
    %42 = arith.addf %38, %41 : vector<16x1xf32>
    %43 = math.rsqrt %42 : vector<16x1xf32>
    %44 = vector.broadcast %43 : vector<16x1xf32> to vector<16x128xf32>
    %45 = arith.mulf %40, %44 : vector<16x128xf32>
    %46 = vector.broadcast %26 : vector<1x128xf32> to vector<16x128xf32>
    %47 = arith.mulf %45, %46 : vector<16x128xf32>
    %48 = vector.broadcast %27 : vector<1x128xf32> to vector<16x128xf32>
    %49 = arith.addf %47, %48 : vector<16x128xf32>
    %c0_20 = arith.constant 0 : index
    %c0_21 = arith.constant 0 : index
    %c0_22 = arith.constant 0 : index
    %50 = vector.load %arg7[%c0_20, %c0_21, %c0_22] : memref<3x128x384xf32, #tpu.memory_space<vmem>>, vector<1x128x384xf32>
    %51 = vector.shape_cast %50 : vector<1x128x384xf32> to vector<128x384xf32>
    %cst_23 = arith.constant dense<0.000000e+00> : vector<16x384xf32>
    %52 = tpu.matmul %49, %51, %cst_23 {dimension_numbers = #tpu.dot_dimension_numbers<[1], [0], [0], [1], [0, 0, 1, 1], [], []>} : vector<16x128xf32>, vector<128x384xf32>, vector<16x384xf32> -> vector<16x384xf32>
    %c0_24 = arith.constant 0 : index
    %c0_25 = arith.constant 0 : index
    %53 = vector.load %arg8[%c0_24, %c0_25] : memref<3x384xf32, #tpu.memory_space<vmem>>, vector<1x384xf32>
    %54 = vector.broadcast %53 : vector<1x384xf32> to vector<16x384xf32>
    %55 = arith.addf %52, %54 : vector<16x384xf32>
    %56 = vector.extract_strided_slice %55 {offsets = [0, 0], sizes = [16, 32], strides = [1, 1]} : vector<16x384xf32> to vector<16x32xf32>
    %57 = vector.extract_strided_slice %55 {offsets = [0, 128], sizes = [16, 32], strides = [1, 1]} : vector<16x384xf32> to vector<16x32xf32>
    %58 = vector.extract_strided_slice %55 {offsets = [0, 256], sizes = [16, 32], strides = [1, 1]} : vector<16x384xf32> to vector<16x32xf32>
    %cst_26 = arith.constant dense<0.000000e+00> : vector<16x16xf32>
    %59 = tpu.matmul %56, %57, %cst_26 {dimension_numbers = #tpu.dot_dimension_numbers<[1], [1], [0], [0], [0, 0, 1, 0], [], []>} : vector<16x32xf32>, vector<16x32xf32>, vector<16x16xf32> -> vector<16x16xf32>
    %60 = arith.addf %59, %1 : vector<16x16xf32>
    %cst_27 = arith.constant dense<0xFF800000> : vector<16xf32>
    %61 = vector.multi_reduction <maximumf>, %60, %cst_27 [1] : vector<16x16xf32> to vector<16xf32>
    %62 = vector.shape_cast %61 : vector<16xf32> to vector<16x1xf32>
    %63 = vector.broadcast %62 : vector<16x1xf32> to vector<16x16xf32>
    %64 = arith.subf %60, %63 : vector<16x16xf32>
    %65 = math.exp %64 : vector<16x16xf32>
    %cst_28 = arith.constant dense<0.000000e+00> : vector<16xf32>
    %66 = vector.multi_reduction <add>, %65, %cst_28 [1] : vector<16x16xf32> to vector<16xf32>
    %67 = vector.shape_cast %66 : vector<16xf32> to vector<16x1xf32>
    %68 = tpu.reciprocal %67 {approx = true} : vector<16x1xf32> -> vector<16x1xf32>
    %69 = vector.broadcast %68 : vector<16x1xf32> to vector<16x16xf32>
    %70 = arith.mulf %65, %69 : vector<16x16xf32>
    %cst_29 = arith.constant dense<0.000000e+00> : vector<16x32xf32>
    %71 = tpu.matmul %70, %58, %cst_29 {dimension_numbers = #tpu.dot_dimension_numbers<[1], [0], [0], [1], [0, 0, 1, 1], [], []>} : vector<16x16xf32>, vector<16x32xf32>, vector<16x32xf32> -> vector<16x32xf32>
    %c0_30 = arith.constant 0 : index
    %c0_31 = arith.constant 0 : index
    %72 = vector.load %arg24[%c0_30, %c0_31] : memref<16x128xf32, #tpu.memory_space<vmem>>, vector<16x32xf32>
    tpu.vector_store %arg24[%c0_30, %c0_31], %71 {strides = array<i32>} : memref<16x128xf32, #tpu.memory_space<vmem>>, vector<16x32xf32>,
    %73 = vector.extract_strided_slice %55 {offsets = [0, 32], sizes = [16, 32], strides = [1, 1]} : vector<16x384xf32> to vector<16x32xf32>
    %74 = vector.extract_strided_slice %55 {offsets = [0, 160], sizes = [16, 32], strides = [1, 1]} : vector<16x384xf32> to vector<16x32xf32>
    %75 = vector.extract_strided_slice %55 {offsets = [0, 288], sizes = [16, 32], strides = [1, 1]} : vector<16x384xf32> to vector<16x32xf32>
    %cst_32 = arith.constant dense<0.000000e+00> : vector<16x16xf32>
    %76 = tpu.matmul %73, %74, %cst_32 {dimension_numbers = #tpu.dot_dimension_numbers<[1], [1], [0], [0], [0, 0, 1, 0], [], []>} : vector<16x32xf32>, vector<16x32xf32>, vector<16x16xf32> -> vector<16x16xf32>
    %77 = arith.addf %76, %1 : vector<16x16xf32>
    %cst_33 = arith.constant dense<0xFF800000> : vector<16xf32>
    %78 = vector.multi_reduction <maximumf>, %77, %cst_33 [1] : vector<16x16xf32> to vector<16xf32>
    %79 = vector.shape_cast %78 : vector<16xf32> to vector<16x1xf32>
    %80 = vector.broadcast %79 : vector<16x1xf32> to vector<16x16xf32>
    %81 = arith.subf %77, %80 : vector<16x16xf32>
    %82 = math.exp %81 : vector<16x16xf32>
    %cst_34 = arith.constant dense<0.000000e+00> : vector<16xf32>
    %83 = vector.multi_reduction <add>, %82, %cst_34 [1] : vector<16x16xf32> to vector<16xf32>
    %84 = vector.shape_cast %83 : vector<16xf32> to vector<16x1xf32>
    %85 = tpu.reciprocal %84 {approx = true} : vector<16x1xf32> -> vector<16x1xf32>
    %86 = vector.broadcast %85 : vector<16x1xf32> to vector<16x16xf32>
    %87 = arith.mulf %82, %86 : vector<16x16xf32>
    %cst_35 = arith.constant dense<0.000000e+00> : vector<16x32xf32>
    %88 = tpu.matmul %87, %75, %cst_35 {dimension_numbers = #tpu.dot_dimension_numbers<[1], [0], [0], [1], [0, 0, 1, 1], [], []>} : vector<16x16xf32>, vector<16x32xf32>, vector<16x32xf32> -> vector<16x32xf32>
    %c0_36 = arith.constant 0 : index
    %c32 = arith.constant 32 : index
    %89 = vector.load %arg24[%c0_36, %c32] : memref<16x128xf32, #tpu.memory_space<vmem>>, vector<16x32xf32>
    tpu.vector_store %arg24[%c0_36, %c32], %88 {strides = array<i32>} : memref<16x128xf32, #tpu.memory_space<vmem>>, vector<16x32xf32>,
    %90 = vector.extract_strided_slice %55 {offsets = [0, 64], sizes = [16, 32], strides = [1, 1]} : vector<16x384xf32> to vector<16x32xf32>
    %91 = vector.extract_strided_slice %55 {offsets = [0, 192], sizes = [16, 32], strides = [1, 1]} : vector<16x384xf32> to vector<16x32xf32>
    %92 = vector.extract_strided_slice %55 {offsets = [0, 320], sizes = [16, 32], strides = [1, 1]} : vector<16x384xf32> to vector<16x32xf32>
    %cst_37 = arith.constant dense<0.000000e+00> : vector<16x16xf32>
    %93 = tpu.matmul %90, %91, %cst_37 {dimension_numbers = #tpu.dot_dimension_numbers<[1], [1], [0], [0], [0, 0, 1, 0], [], []>} : vector<16x32xf32>, vector<16x32xf32>, vector<16x16xf32> -> vector<16x16xf32>
    %94 = arith.addf %93, %1 : vector<16x16xf32>
    %cst_38 = arith.constant dense<0xFF800000> : vector<16xf32>
    %95 = vector.multi_reduction <maximumf>, %94, %cst_38 [1] : vector<16x16xf32> to vector<16xf32>
    %96 = vector.shape_cast %95 : vector<16xf32> to vector<16x1xf32>
    %97 = vector.broadcast %96 : vector<16x1xf32> to vector<16x16xf32>
    %98 = arith.subf %94, %97 : vector<16x16xf32>
    %99 = math.exp %98 : vector<16x16xf32>
    %cst_39 = arith.constant dense<0.000000e+00> : vector<16xf32>
    %100 = vector.multi_reduction <add>, %99, %cst_39 [1] : vector<16x16xf32> to vector<16xf32>
    %101 = vector.shape_cast %100 : vector<16xf32> to vector<16x1xf32>
    %102 = tpu.reciprocal %101 {approx = true} : vector<16x1xf32> -> vector<16x1xf32>
    %103 = vector.broadcast %102 : vector<16x1xf32> to vector<16x16xf32>
    %104 = arith.mulf %99, %103 : vector<16x16xf32>
    %cst_40 = arith.constant dense<0.000000e+00> : vector<16x32xf32>
    %105 = tpu.matmul %104, %92, %cst_40 {dimension_numbers = #tpu.dot_dimension_numbers<[1], [0], [0], [1], [0, 0, 1, 1], [], []>} : vector<16x16xf32>, vector<16x32xf32>, vector<16x32xf32> -> vector<16x32xf32>
    %c0_41 = arith.constant 0 : index
    %c64 = arith.constant 64 : index
    %106 = vector.load %arg24[%c0_41, %c64] : memref<16x128xf32, #tpu.memory_space<vmem>>, vector<16x32xf32>
    tpu.vector_store %arg24[%c0_41, %c64], %105 {strides = array<i32>} : memref<16x128xf32, #tpu.memory_space<vmem>>, vector<16x32xf32>,
    %107 = vector.extract_strided_slice %55 {offsets = [0, 96], sizes = [16, 32], strides = [1, 1]} : vector<16x384xf32> to vector<16x32xf32>
    %108 = vector.extract_strided_slice %55 {offsets = [0, 224], sizes = [16, 32], strides = [1, 1]} : vector<16x384xf32> to vector<16x32xf32>
    %109 = vector.extract_strided_slice %55 {offsets = [0, 352], sizes = [16, 32], strides = [1, 1]} : vector<16x384xf32> to vector<16x32xf32>
    %cst_42 = arith.constant dense<0.000000e+00> : vector<16x16xf32>
    %110 = tpu.matmul %107, %108, %cst_42 {dimension_numbers = #tpu.dot_dimension_numbers<[1], [1], [0], [0], [0, 0, 1, 0], [], []>} : vector<16x32xf32>, vector<16x32xf32>, vector<16x16xf32> -> vector<16x16xf32>
    %111 = arith.addf %110, %1 : vector<16x16xf32>
    %cst_43 = arith.constant dense<0xFF800000> : vector<16xf32>
    %112 = vector.multi_reduction <maximumf>, %111, %cst_43 [1] : vector<16x16xf32> to vector<16xf32>
    %113 = vector.shape_cast %112 : vector<16xf32> to vector<16x1xf32>
    %114 = vector.broadcast %113 : vector<16x1xf32> to vector<16x16xf32>
    %115 = arith.subf %111, %114 : vector<16x16xf32>
    %116 = math.exp %115 : vector<16x16xf32>
    %cst_44 = arith.constant dense<0.000000e+00> : vector<16xf32>
    %117 = vector.multi_reduction <add>, %116, %cst_44 [1] : vector<16x16xf32> to vector<16xf32>
    %118 = vector.shape_cast %117 : vector<16xf32> to vector<16x1xf32>
    %119 = tpu.reciprocal %118 {approx = true} : vector<16x1xf32> -> vector<16x1xf32>
    %120 = vector.broadcast %119 : vector<16x1xf32> to vector<16x16xf32>
    %121 = arith.mulf %116, %120 : vector<16x16xf32>
    %cst_45 = arith.constant dense<0.000000e+00> : vector<16x32xf32>
    %122 = tpu.matmul %121, %109, %cst_45 {dimension_numbers = #tpu.dot_dimension_numbers<[1], [0], [0], [1], [0, 0, 1, 1], [], []>} : vector<16x16xf32>, vector<16x32xf32>, vector<16x32xf32> -> vector<16x32xf32>
    %c0_46 = arith.constant 0 : index
    %c96 = arith.constant 96 : index
    %123 = vector.load %arg24[%c0_46, %c96] : memref<16x128xf32, #tpu.memory_space<vmem>>, vector<16x32xf32>
    tpu.vector_store %arg24[%c0_46, %c96], %122 {strides = array<i32>} : memref<16x128xf32, #tpu.memory_space<vmem>>, vector<16x32xf32>,
    %c0_47 = arith.constant 0 : index
    %c0_48 = arith.constant 0 : index
    %124 = vector.load %arg24[%c0_47, %c0_48] : memref<16x128xf32, #tpu.memory_space<vmem>>, vector<16x128xf32>
    %c0_49 = arith.constant 0 : index
    %c0_50 = arith.constant 0 : index
    %c0_51 = arith.constant 0 : index
    %125 = vector.load %arg9[%c0_49, %c0_50, %c0_51] : memref<3x128x128xf32, #tpu.memory_space<vmem>>, vector<1x128x128xf32>
    %126 = vector.shape_cast %125 : vector<1x128x128xf32> to vector<128x128xf32>
    %cst_52 = arith.constant dense<0.000000e+00> : vector<16x128xf32>
    %127 = tpu.matmul %124, %126, %cst_52 {dimension_numbers = #tpu.dot_dimension_numbers<[1], [0], [0], [1], [0, 0, 1, 1], [], []>} : vector<16x128xf32>, vector<128x128xf32>, vector<16x128xf32> -> vector<16x128xf32>
    %c0_53 = arith.constant 0 : index
    %c0_54 = arith.constant 0 : index
    %128 = vector.load %arg10[%c0_53, %c0_54] : memref<3x128xf32, #tpu.memory_space<vmem>>, vector<1x128xf32>
    %129 = vector.broadcast %128 : vector<1x128xf32> to vector<16x128xf32>
    %130 = arith.addf %127, %129 : vector<16x128xf32>
    %131 = arith.addf %25, %130 : vector<16x128xf32>
    %c0_55 = arith.constant 0 : index
    %c0_56 = arith.constant 0 : index
    %132 = vector.load %arg11[%c0_55, %c0_56] : memref<3x128xf32, #tpu.memory_space<vmem>>, vector<1x128xf32>
    %c0_57 = arith.constant 0 : index
    %c0_58 = arith.constant 0 : index
    %133 = vector.load %arg12[%c0_57, %c0_58] : memref<3x128xf32, #tpu.memory_space<vmem>>, vector<1x128xf32>
    %cst_59 = arith.constant dense<0.000000e+00> : vector<16xf32>
    %134 = vector.multi_reduction <add>, %131, %cst_59 [1] : vector<16x128xf32> to vector<16xf32>
    %135 = vector.shape_cast %134 : vector<16xf32> to vector<16x1xf32>
    %cst_60 = arith.constant 1.280000e+02 : f32
    %136 = vector.broadcast %cst_60 : f32 to vector<16x1xf32>
    %137 = arith.divf %135, %136 : vector<16x1xf32>
    %138 = vector.broadcast %137 : vector<16x1xf32> to vector<16x128xf32>
    %139 = arith.subf %131, %138 : vector<16x128xf32>
    %140 = arith.mulf %139, %139 : vector<16x128xf32>
    %cst_61 = arith.constant dense<0.000000e+00> : vector<16xf32>
    %141 = vector.multi_reduction <add>, %140, %cst_61 [1] : vector<16x128xf32> to vector<16xf32>
    %142 = vector.shape_cast %141 : vector<16xf32> to vector<16x1xf32>
    %cst_62 = arith.constant 1.280000e+02 : f32
    %143 = vector.broadcast %cst_62 : f32 to vector<16x1xf32>
    %144 = arith.divf %142, %143 : vector<16x1xf32>
    %145 = vector.broadcast %137 : vector<16x1xf32> to vector<16x128xf32>
    %146 = arith.subf %131, %145 : vector<16x128xf32>
    %cst_63 = arith.constant 9.99999974E-6 : f32
    %147 = vector.broadcast %cst_63 : f32 to vector<16x1xf32>
    %148 = arith.addf %144, %147 : vector<16x1xf32>
    %149 = math.rsqrt %148 : vector<16x1xf32>
    %150 = vector.broadcast %149 : vector<16x1xf32> to vector<16x128xf32>
    %151 = arith.mulf %146, %150 : vector<16x128xf32>
    %152 = vector.broadcast %132 : vector<1x128xf32> to vector<16x128xf32>
    %153 = arith.mulf %151, %152 : vector<16x128xf32>
    %154 = vector.broadcast %133 : vector<1x128xf32> to vector<16x128xf32>
    %155 = arith.addf %153, %154 : vector<16x128xf32>
    %c0_64 = arith.constant 0 : index
    %c0_65 = arith.constant 0 : index
    %c0_66 = arith.constant 0 : index
    %156 = vector.load %arg13[%c0_64, %c0_65, %c0_66] : memref<3x128x256xf32, #tpu.memory_space<vmem>>, vector<1x128x256xf32>
    %157 = vector.shape_cast %156 : vector<1x128x256xf32> to vector<128x256xf32>
    %cst_67 = arith.constant dense<0.000000e+00> : vector<16x256xf32>
    %158 = tpu.matmul %155, %157, %cst_67 {dimension_numbers = #tpu.dot_dimension_numbers<[1], [0], [0], [1], [0, 0, 1, 1], [], []>} : vector<16x128xf32>, vector<128x256xf32>, vector<16x256xf32> -> vector<16x256xf32>
    %c0_68 = arith.constant 0 : index
    %c0_69 = arith.constant 0 : index
    %159 = vector.load %arg14[%c0_68, %c0_69] : memref<3x256xf32, #tpu.memory_space<vmem>>, vector<1x256xf32>
    %160 = vector.broadcast %159 : vector<1x256xf32> to vector<16x256xf32>
    %161 = arith.addf %158, %160 : vector<16x256xf32>
    %162 = arith.mulf %161, %161 : vector<16x256xf32>
    %163 = arith.mulf %161, %162 : vector<16x256xf32>
    %cst_70 = arith.constant 4.471500e-02 : f32
    %164 = vector.broadcast %cst_70 : f32 to vector<16x256xf32>
    %165 = arith.mulf %164, %163 : vector<16x256xf32>
    %166 = arith.addf %161, %165 : vector<16x256xf32>
    %cst_71 = arith.constant 0.797884583 : f32
    %167 = vector.broadcast %cst_71 : f32 to vector<16x256xf32>
    %168 = arith.mulf %167, %166 : vector<16x256xf32>
    %169 = math.tanh %168 : vector<16x256xf32>
    %cst_72 = arith.constant 1.000000e+00 : f32
    %170 = vector.broadcast %cst_72 : f32 to vector<16x256xf32>
    %171 = arith.addf %170, %169 : vector<16x256xf32>
    %cst_73 = arith.constant 5.000000e-01 : f32
    %172 = vector.broadcast %cst_73 : f32 to vector<16x256xf32>
    %173 = arith.mulf %172, %171 : vector<16x256xf32>
    %174 = arith.mulf %161, %173 : vector<16x256xf32>
    %c0_74 = arith.constant 0 : index
    %c0_75 = arith.constant 0 : index
    %c0_76 = arith.constant 0 : index
    %175 = vector.load %arg15[%c0_74, %c0_75, %c0_76] : memref<3x256x128xf32, #tpu.memory_space<vmem>>, vector<1x256x128xf32>
    %176 = vector.shape_cast %175 : vector<1x256x128xf32> to vector<256x128xf32>
    %cst_77 = arith.constant dense<0.000000e+00> : vector<16x128xf32>
    %177 = tpu.matmul %174, %176, %cst_77 {dimension_numbers = #tpu.dot_dimension_numbers<[1], [0], [0], [1], [0, 0, 1, 1], [], []>} : vector<16x256xf32>, vector<256x128xf32>, vector<16x128xf32> -> vector<16x128xf32>
    %c0_78 = arith.constant 0 : index
    %c0_79 = arith.constant 0 : index
    %178 = vector.load %arg16[%c0_78, %c0_79] : memref<3x128xf32, #tpu.memory_space<vmem>>, vector<1x128xf32>
    %179 = vector.broadcast %178 : vector<1x128xf32> to vector<16x128xf32>
    %180 = arith.addf %177, %179 : vector<16x128xf32>
    %181 = arith.addf %131, %180 : vector<16x128xf32>
    %c1 = arith.constant 1 : index
    %c0_80 = arith.constant 0 : index
    %182 = vector.load %arg5[%c1, %c0_80] : memref<3x128xf32, #tpu.memory_space<vmem>>, vector<1x128xf32>
    %c1_81 = arith.constant 1 : index
    %c0_82 = arith.constant 0 : index
    %183 = vector.load %arg6[%c1_81, %c0_82] : memref<3x128xf32, #tpu.memory_space<vmem>>, vector<1x128xf32>
    %cst_83 = arith.constant dense<0.000000e+00> : vector<16xf32>
    %184 = vector.multi_reduction <add>, %181, %cst_83 [1] : vector<16x128xf32> to vector<16xf32>
    %185 = vector.shape_cast %184 : vector<16xf32> to vector<16x1xf32>
    %cst_84 = arith.constant 1.280000e+02 : f32
    %186 = vector.broadcast %cst_84 : f32 to vector<16x1xf32>
    %187 = arith.divf %185, %186 : vector<16x1xf32>
    %188 = vector.broadcast %187 : vector<16x1xf32> to vector<16x128xf32>
    %189 = arith.subf %181, %188 : vector<16x128xf32>
    %190 = arith.mulf %189, %189 : vector<16x128xf32>
    %cst_85 = arith.constant dense<0.000000e+00> : vector<16xf32>
    %191 = vector.multi_reduction <add>, %190, %cst_85 [1] : vector<16x128xf32> to vector<16xf32>
    %192 = vector.shape_cast %191 : vector<16xf32> to vector<16x1xf32>
    %cst_86 = arith.constant 1.280000e+02 : f32
    %193 = vector.broadcast %cst_86 : f32 to vector<16x1xf32>
    %194 = arith.divf %192, %193 : vector<16x1xf32>
    %195 = vector.broadcast %187 : vector<16x1xf32> to vector<16x128xf32>
    %196 = arith.subf %181, %195 : vector<16x128xf32>
    %cst_87 = arith.constant 9.99999974E-6 : f32
    %197 = vector.broadcast %cst_87 : f32 to vector<16x1xf32>
    %198 = arith.addf %194, %197 : vector<16x1xf32>
    %199 = math.rsqrt %198 : vector<16x1xf32>
    %200 = vector.broadcast %199 : vector<16x1xf32> to vector<16x128xf32>
    %201 = arith.mulf %196, %200 : vector<16x128xf32>
    %202 = vector.broadcast %182 : vector<1x128xf32> to vector<16x128xf32>
    %203 = arith.mulf %201, %202 : vector<16x128xf32>
    %204 = vector.broadcast %183 : vector<1x128xf32> to vector<16x128xf32>
    %205 = arith.addf %203, %204 : vector<16x128xf32>
    %c1_88 = arith.constant 1 : index
    %c0_89 = arith.constant 0 : index
    %c0_90 = arith.constant 0 : index
    %206 = vector.load %arg7[%c1_88, %c0_89, %c0_90] : memref<3x128x384xf32, #tpu.memory_space<vmem>>, vector<1x128x384xf32>
    %207 = vector.shape_cast %206 : vector<1x128x384xf32> to vector<128x384xf32>
    %cst_91 = arith.constant dense<0.000000e+00> : vector<16x384xf32>
    %208 = tpu.matmul %205, %207, %cst_91 {dimension_numbers = #tpu.dot_dimension_numbers<[1], [0], [0], [1], [0, 0, 1, 1], [], []>} : vector<16x128xf32>, vector<128x384xf32>, vector<16x384xf32> -> vector<16x384xf32>
    %c1_92 = arith.constant 1 : index
    %c0_93 = arith.constant 0 : index
    %209 = vector.load %arg8[%c1_92, %c0_93] : memref<3x384xf32, #tpu.memory_space<vmem>>, vector<1x384xf32>
    %210 = vector.broadcast %209 : vector<1x384xf32> to vector<16x384xf32>
    %211 = arith.addf %208, %210 : vector<16x384xf32>
    %212 = vector.extract_strided_slice %211 {offsets = [0, 0], sizes = [16, 32], strides = [1, 1]} : vector<16x384xf32> to vector<16x32xf32>
    %213 = vector.extract_strided_slice %211 {offsets = [0, 128], sizes = [16, 32], strides = [1, 1]} : vector<16x384xf32> to vector<16x32xf32>
    %214 = vector.extract_strided_slice %211 {offsets = [0, 256], sizes = [16, 32], strides = [1, 1]} : vector<16x384xf32> to vector<16x32xf32>
    %cst_94 = arith.constant dense<0.000000e+00> : vector<16x16xf32>
    %215 = tpu.matmul %212, %213, %cst_94 {dimension_numbers = #tpu.dot_dimension_numbers<[1], [1], [0], [0], [0, 0, 1, 0], [], []>} : vector<16x32xf32>, vector<16x32xf32>, vector<16x16xf32> -> vector<16x16xf32>
    %216 = arith.addf %215, %1 : vector<16x16xf32>
    %cst_95 = arith.constant dense<0xFF800000> : vector<16xf32>
    %217 = vector.multi_reduction <maximumf>, %216, %cst_95 [1] : vector<16x16xf32> to vector<16xf32>
    %218 = vector.shape_cast %217 : vector<16xf32> to vector<16x1xf32>
    %219 = vector.broadcast %218 : vector<16x1xf32> to vector<16x16xf32>
    %220 = arith.subf %216, %219 : vector<16x16xf32>
    %221 = math.exp %220 : vector<16x16xf32>
    %cst_96 = arith.constant dense<0.000000e+00> : vector<16xf32>
    %222 = vector.multi_reduction <add>, %221, %cst_96 [1] : vector<16x16xf32> to vector<16xf32>
    %223 = vector.shape_cast %222 : vector<16xf32> to vector<16x1xf32>
    %224 = tpu.reciprocal %223 {approx = true} : vector<16x1xf32> -> vector<16x1xf32>
    %225 = vector.broadcast %224 : vector<16x1xf32> to vector<16x16xf32>
    %226 = arith.mulf %221, %225 : vector<16x16xf32>
    %cst_97 = arith.constant dense<0.000000e+00> : vector<16x32xf32>
    %227 = tpu.matmul %226, %214, %cst_97 {dimension_numbers = #tpu.dot_dimension_numbers<[1], [0], [0], [1], [0, 0, 1, 1], [], []>} : vector<16x16xf32>, vector<16x32xf32>, vector<16x32xf32> -> vector<16x32xf32>
    %c0_98 = arith.constant 0 : index
    %c0_99 = arith.constant 0 : index
    %228 = vector.load %arg24[%c0_98, %c0_99] : memref<16x128xf32, #tpu.memory_space<vmem>>, vector<16x32xf32>
    tpu.vector_store %arg24[%c0_98, %c0_99], %227 {strides = array<i32>} : memref<16x128xf32, #tpu.memory_space<vmem>>, vector<16x32xf32>,
    %229 = vector.extract_strided_slice %211 {offsets = [0, 32], sizes = [16, 32], strides = [1, 1]} : vector<16x384xf32> to vector<16x32xf32>
    %230 = vector.extract_strided_slice %211 {offsets = [0, 160], sizes = [16, 32], strides = [1, 1]} : vector<16x384xf32> to vector<16x32xf32>
    %231 = vector.extract_strided_slice %211 {offsets = [0, 288], sizes = [16, 32], strides = [1, 1]} : vector<16x384xf32> to vector<16x32xf32>
    %cst_100 = arith.constant dense<0.000000e+00> : vector<16x16xf32>
    %232 = tpu.matmul %229, %230, %cst_100 {dimension_numbers = #tpu.dot_dimension_numbers<[1], [1], [0], [0], [0, 0, 1, 0], [], []>} : vector<16x32xf32>, vector<16x32xf32>, vector<16x16xf32> -> vector<16x16xf32>
    %233 = arith.addf %232, %1 : vector<16x16xf32>
    %cst_101 = arith.constant dense<0xFF800000> : vector<16xf32>
    %234 = vector.multi_reduction <maximumf>, %233, %cst_101 [1] : vector<16x16xf32> to vector<16xf32>
    %235 = vector.shape_cast %234 : vector<16xf32> to vector<16x1xf32>
    %236 = vector.broadcast %235 : vector<16x1xf32> to vector<16x16xf32>
    %237 = arith.subf %233, %236 : vector<16x16xf32>
    %238 = math.exp %237 : vector<16x16xf32>
    %cst_102 = arith.constant dense<0.000000e+00> : vector<16xf32>
    %239 = vector.multi_reduction <add>, %238, %cst_102 [1] : vector<16x16xf32> to vector<16xf32>
    %240 = vector.shape_cast %239 : vector<16xf32> to vector<16x1xf32>
    %241 = tpu.reciprocal %240 {approx = true} : vector<16x1xf32> -> vector<16x1xf32>
    %242 = vector.broadcast %241 : vector<16x1xf32> to vector<16x16xf32>
    %243 = arith.mulf %238, %242 : vector<16x16xf32>
    %cst_103 = arith.constant dense<0.000000e+00> : vector<16x32xf32>
    %244 = tpu.matmul %243, %231, %cst_103 {dimension_numbers = #tpu.dot_dimension_numbers<[1], [0], [0], [1], [0, 0, 1, 1], [], []>} : vector<16x16xf32>, vector<16x32xf32>, vector<16x32xf32> -> vector<16x32xf32>
    %c0_104 = arith.constant 0 : index
    %c32_105 = arith.constant 32 : index
    %245 = vector.load %arg24[%c0_104, %c32_105] : memref<16x128xf32, #tpu.memory_space<vmem>>, vector<16x32xf32>
    tpu.vector_store %arg24[%c0_104, %c32_105], %244 {strides = array<i32>} : memref<16x128xf32, #tpu.memory_space<vmem>>, vector<16x32xf32>,
    %246 = vector.extract_strided_slice %211 {offsets = [0, 64], sizes = [16, 32], strides = [1, 1]} : vector<16x384xf32> to vector<16x32xf32>
    %247 = vector.extract_strided_slice %211 {offsets = [0, 192], sizes = [16, 32], strides = [1, 1]} : vector<16x384xf32> to vector<16x32xf32>
    %248 = vector.extract_strided_slice %211 {offsets = [0, 320], sizes = [16, 32], strides = [1, 1]} : vector<16x384xf32> to vector<16x32xf32>
    %cst_106 = arith.constant dense<0.000000e+00> : vector<16x16xf32>
    %249 = tpu.matmul %246, %247, %cst_106 {dimension_numbers = #tpu.dot_dimension_numbers<[1], [1], [0], [0], [0, 0, 1, 0], [], []>} : vector<16x32xf32>, vector<16x32xf32>, vector<16x16xf32> -> vector<16x16xf32>
    %250 = arith.addf %249, %1 : vector<16x16xf32>
    %cst_107 = arith.constant dense<0xFF800000> : vector<16xf32>
    %251 = vector.multi_reduction <maximumf>, %250, %cst_107 [1] : vector<16x16xf32> to vector<16xf32>
    %252 = vector.shape_cast %251 : vector<16xf32> to vector<16x1xf32>
    %253 = vector.broadcast %252 : vector<16x1xf32> to vector<16x16xf32>
    %254 = arith.subf %250, %253 : vector<16x16xf32>
    %255 = math.exp %254 : vector<16x16xf32>
    %cst_108 = arith.constant dense<0.000000e+00> : vector<16xf32>
    %256 = vector.multi_reduction <add>, %255, %cst_108 [1] : vector<16x16xf32> to vector<16xf32>
    %257 = vector.shape_cast %256 : vector<16xf32> to vector<16x1xf32>
    %258 = tpu.reciprocal %257 {approx = true} : vector<16x1xf32> -> vector<16x1xf32>
    %259 = vector.broadcast %258 : vector<16x1xf32> to vector<16x16xf32>
    %260 = arith.mulf %255, %259 : vector<16x16xf32>
    %cst_109 = arith.constant dense<0.000000e+00> : vector<16x32xf32>
    %261 = tpu.matmul %260, %248, %cst_109 {dimension_numbers = #tpu.dot_dimension_numbers<[1], [0], [0], [1], [0, 0, 1, 1], [], []>} : vector<16x16xf32>, vector<16x32xf32>, vector<16x32xf32> -> vector<16x32xf32>
    %c0_110 = arith.constant 0 : index
    %c64_111 = arith.constant 64 : index
    %262 = vector.load %arg24[%c0_110, %c64_111] : memref<16x128xf32, #tpu.memory_space<vmem>>, vector<16x32xf32>
    tpu.vector_store %arg24[%c0_110, %c64_111], %261 {strides = array<i32>} : memref<16x128xf32, #tpu.memory_space<vmem>>, vector<16x32xf32>,
    %263 = vector.extract_strided_slice %211 {offsets = [0, 96], sizes = [16, 32], strides = [1, 1]} : vector<16x384xf32> to vector<16x32xf32>
    %264 = vector.extract_strided_slice %211 {offsets = [0, 224], sizes = [16, 32], strides = [1, 1]} : vector<16x384xf32> to vector<16x32xf32>
    %265 = vector.extract_strided_slice %211 {offsets = [0, 352], sizes = [16, 32], strides = [1, 1]} : vector<16x384xf32> to vector<16x32xf32>
    %cst_112 = arith.constant dense<0.000000e+00> : vector<16x16xf32>
    %266 = tpu.matmul %263, %264, %cst_112 {dimension_numbers = #tpu.dot_dimension_numbers<[1], [1], [0], [0], [0, 0, 1, 0], [], []>} : vector<16x32xf32>, vector<16x32xf32>, vector<16x16xf32> -> vector<16x16xf32>
    %267 = arith.addf %266, %1 : vector<16x16xf32>
    %cst_113 = arith.constant dense<0xFF800000> : vector<16xf32>
    %268 = vector.multi_reduction <maximumf>, %267, %cst_113 [1] : vector<16x16xf32> to vector<16xf32>
    %269 = vector.shape_cast %268 : vector<16xf32> to vector<16x1xf32>
    %270 = vector.broadcast %269 : vector<16x1xf32> to vector<16x16xf32>
    %271 = arith.subf %267, %270 : vector<16x16xf32>
    %272 = math.exp %271 : vector<16x16xf32>
    %cst_114 = arith.constant dense<0.000000e+00> : vector<16xf32>
    %273 = vector.multi_reduction <add>, %272, %cst_114 [1] : vector<16x16xf32> to vector<16xf32>
    %274 = vector.shape_cast %273 : vector<16xf32> to vector<16x1xf32>
    %275 = tpu.reciprocal %274 {approx = true} : vector<16x1xf32> -> vector<16x1xf32>
    %276 = vector.broadcast %275 : vector<16x1xf32> to vector<16x16xf32>
    %277 = arith.mulf %272, %276 : vector<16x16xf32>
    %cst_115 = arith.constant dense<0.000000e+00> : vector<16x32xf32>
    %278 = tpu.matmul %277, %265, %cst_115 {dimension_numbers = #tpu.dot_dimension_numbers<[1], [0], [0], [1], [0, 0, 1, 1], [], []>} : vector<16x16xf32>, vector<16x32xf32>, vector<16x32xf32> -> vector<16x32xf32>
    %c0_116 = arith.constant 0 : index
    %c96_117 = arith.constant 96 : index
    %279 = vector.load %arg24[%c0_116, %c96_117] : memref<16x128xf32, #tpu.memory_space<vmem>>, vector<16x32xf32>
    tpu.vector_store %arg24[%c0_116, %c96_117], %278 {strides = array<i32>} : memref<16x128xf32, #tpu.memory_space<vmem>>, vector<16x32xf32>,
    %c0_118 = arith.constant 0 : index
    %c0_119 = arith.constant 0 : index
    %280 = vector.load %arg24[%c0_118, %c0_119] : memref<16x128xf32, #tpu.memory_space<vmem>>, vector<16x128xf32>
    %c1_120 = arith.constant 1 : index
    %c0_121 = arith.constant 0 : index
    %c0_122 = arith.constant 0 : index
    %281 = vector.load %arg9[%c1_120, %c0_121, %c0_122] : memref<3x128x128xf32, #tpu.memory_space<vmem>>, vector<1x128x128xf32>
    %282 = vector.shape_cast %281 : vector<1x128x128xf32> to vector<128x128xf32>
    %cst_123 = arith.constant dense<0.000000e+00> : vector<16x128xf32>
    %283 = tpu.matmul %280, %282, %cst_123 {dimension_numbers = #tpu.dot_dimension_numbers<[1], [0], [0], [1], [0, 0, 1, 1], [], []>} : vector<16x128xf32>, vector<128x128xf32>, vector<16x128xf32> -> vector<16x128xf32>
    %c1_124 = arith.constant 1 : index
    %c0_125 = arith.constant 0 : index
    %284 = vector.load %arg10[%c1_124, %c0_125] : memref<3x128xf32, #tpu.memory_space<vmem>>, vector<1x128xf32>
    %285 = vector.broadcast %284 : vector<1x128xf32> to vector<16x128xf32>
    %286 = arith.addf %283, %285 : vector<16x128xf32>
    %287 = arith.addf %181, %286 : vector<16x128xf32>
    %c1_126 = arith.constant 1 : index
    %c0_127 = arith.constant 0 : index
    %288 = vector.load %arg11[%c1_126, %c0_127] : memref<3x128xf32, #tpu.memory_space<vmem>>, vector<1x128xf32>
    %c1_128 = arith.constant 1 : index
    %c0_129 = arith.constant 0 : index
    %289 = vector.load %arg12[%c1_128, %c0_129] : memref<3x128xf32, #tpu.memory_space<vmem>>, vector<1x128xf32>
    %cst_130 = arith.constant dense<0.000000e+00> : vector<16xf32>
    %290 = vector.multi_reduction <add>, %287, %cst_130 [1] : vector<16x128xf32> to vector<16xf32>
    %291 = vector.shape_cast %290 : vector<16xf32> to vector<16x1xf32>
    %cst_131 = arith.constant 1.280000e+02 : f32
    %292 = vector.broadcast %cst_131 : f32 to vector<16x1xf32>
    %293 = arith.divf %291, %292 : vector<16x1xf32>
    %294 = vector.broadcast %293 : vector<16x1xf32> to vector<16x128xf32>
    %295 = arith.subf %287, %294 : vector<16x128xf32>
    %296 = arith.mulf %295, %295 : vector<16x128xf32>
    %cst_132 = arith.constant dense<0.000000e+00> : vector<16xf32>
    %297 = vector.multi_reduction <add>, %296, %cst_132 [1] : vector<16x128xf32> to vector<16xf32>
    %298 = vector.shape_cast %297 : vector<16xf32> to vector<16x1xf32>
    %cst_133 = arith.constant 1.280000e+02 : f32
    %299 = vector.broadcast %cst_133 : f32 to vector<16x1xf32>
    %300 = arith.divf %298, %299 : vector<16x1xf32>
    %301 = vector.broadcast %293 : vector<16x1xf32> to vector<16x128xf32>
    %302 = arith.subf %287, %301 : vector<16x128xf32>
    %cst_134 = arith.constant 9.99999974E-6 : f32
    %303 = vector.broadcast %cst_134 : f32 to vector<16x1xf32>
    %304 = arith.addf %300, %303 : vector<16x1xf32>
    %305 = math.rsqrt %304 : vector<16x1xf32>
    %306 = vector.broadcast %305 : vector<16x1xf32> to vector<16x128xf32>
    %307 = arith.mulf %302, %306 : vector<16x128xf32>
    %308 = vector.broadcast %288 : vector<1x128xf32> to vector<16x128xf32>
    %309 = arith.mulf %307, %308 : vector<16x128xf32>
    %310 = vector.broadcast %289 : vector<1x128xf32> to vector<16x128xf32>
    %311 = arith.addf %309, %310 : vector<16x128xf32>
    %c1_135 = arith.constant 1 : index
    %c0_136 = arith.constant 0 : index
    %c0_137 = arith.constant 0 : index
    %312 = vector.load %arg13[%c1_135, %c0_136, %c0_137] : memref<3x128x256xf32, #tpu.memory_space<vmem>>, vector<1x128x256xf32>
    %313 = vector.shape_cast %312 : vector<1x128x256xf32> to vector<128x256xf32>
    %cst_138 = arith.constant dense<0.000000e+00> : vector<16x256xf32>
    %314 = tpu.matmul %311, %313, %cst_138 {dimension_numbers = #tpu.dot_dimension_numbers<[1], [0], [0], [1], [0, 0, 1, 1], [], []>} : vector<16x128xf32>, vector<128x256xf32>, vector<16x256xf32> -> vector<16x256xf32>
    %c1_139 = arith.constant 1 : index
    %c0_140 = arith.constant 0 : index
    %315 = vector.load %arg14[%c1_139, %c0_140] : memref<3x256xf32, #tpu.memory_space<vmem>>, vector<1x256xf32>
    %316 = vector.broadcast %315 : vector<1x256xf32> to vector<16x256xf32>
    %317 = arith.addf %314, %316 : vector<16x256xf32>
    %318 = arith.mulf %317, %317 : vector<16x256xf32>
    %319 = arith.mulf %317, %318 : vector<16x256xf32>
    %cst_141 = arith.constant 4.471500e-02 : f32
    %320 = vector.broadcast %cst_141 : f32 to vector<16x256xf32>
    %321 = arith.mulf %320, %319 : vector<16x256xf32>
    %322 = arith.addf %317, %321 : vector<16x256xf32>
    %cst_142 = arith.constant 0.797884583 : f32
    %323 = vector.broadcast %cst_142 : f32 to vector<16x256xf32>
    %324 = arith.mulf %323, %322 : vector<16x256xf32>
    %325 = math.tanh %324 : vector<16x256xf32>
    %cst_143 = arith.constant 1.000000e+00 : f32
    %326 = vector.broadcast %cst_143 : f32 to vector<16x256xf32>
    %327 = arith.addf %326, %325 : vector<16x256xf32>
    %cst_144 = arith.constant 5.000000e-01 : f32
    %328 = vector.broadcast %cst_144 : f32 to vector<16x256xf32>
    %329 = arith.mulf %328, %327 : vector<16x256xf32>
    %330 = arith.mulf %317, %329 : vector<16x256xf32>
    %c1_145 = arith.constant 1 : index
    %c0_146 = arith.constant 0 : index
    %c0_147 = arith.constant 0 : index
    %331 = vector.load %arg15[%c1_145, %c0_146, %c0_147] : memref<3x256x128xf32, #tpu.memory_space<vmem>>, vector<1x256x128xf32>
    %332 = vector.shape_cast %331 : vector<1x256x128xf32> to vector<256x128xf32>
    %cst_148 = arith.constant dense<0.000000e+00> : vector<16x128xf32>
    %333 = tpu.matmul %330, %332, %cst_148 {dimension_numbers = #tpu.dot_dimension_numbers<[1], [0], [0], [1], [0, 0, 1, 1], [], []>} : vector<16x256xf32>, vector<256x128xf32>, vector<16x128xf32> -> vector<16x128xf32>
    %c1_149 = arith.constant 1 : index
    %c0_150 = arith.constant 0 : index
    %334 = vector.load %arg16[%c1_149, %c0_150] : memref<3x128xf32, #tpu.memory_space<vmem>>, vector<1x128xf32>
    %335 = vector.broadcast %334 : vector<1x128xf32> to vector<16x128xf32>
    %336 = arith.addf %333, %335 : vector<16x128xf32>
    %337 = arith.addf %287, %336 : vector<16x128xf32>
    %c2 = arith.constant 2 : index
    %c0_151 = arith.constant 0 : index
    %338 = vector.load %arg5[%c2, %c0_151] : memref<3x128xf32, #tpu.memory_space<vmem>>, vector<1x128xf32>
    %c2_152 = arith.constant 2 : index
    %c0_153 = arith.constant 0 : index
    %339 = vector.load %arg6[%c2_152, %c0_153] : memref<3x128xf32, #tpu.memory_space<vmem>>, vector<1x128xf32>
    %cst_154 = arith.constant dense<0.000000e+00> : vector<16xf32>
    %340 = vector.multi_reduction <add>, %337, %cst_154 [1] : vector<16x128xf32> to vector<16xf32>
    %341 = vector.shape_cast %340 : vector<16xf32> to vector<16x1xf32>
    %cst_155 = arith.constant 1.280000e+02 : f32
    %342 = vector.broadcast %cst_155 : f32 to vector<16x1xf32>
    %343 = arith.divf %341, %342 : vector<16x1xf32>
    %344 = vector.broadcast %343 : vector<16x1xf32> to vector<16x128xf32>
    %345 = arith.subf %337, %344 : vector<16x128xf32>
    %346 = arith.mulf %345, %345 : vector<16x128xf32>
    %cst_156 = arith.constant dense<0.000000e+00> : vector<16xf32>
    %347 = vector.multi_reduction <add>, %346, %cst_156 [1] : vector<16x128xf32> to vector<16xf32>
    %348 = vector.shape_cast %347 : vector<16xf32> to vector<16x1xf32>
    %cst_157 = arith.constant 1.280000e+02 : f32
    %349 = vector.broadcast %cst_157 : f32 to vector<16x1xf32>
    %350 = arith.divf %348, %349 : vector<16x1xf32>
    %351 = vector.broadcast %343 : vector<16x1xf32> to vector<16x128xf32>
    %352 = arith.subf %337, %351 : vector<16x128xf32>
    %cst_158 = arith.constant 9.99999974E-6 : f32
    %353 = vector.broadcast %cst_158 : f32 to vector<16x1xf32>
    %354 = arith.addf %350, %353 : vector<16x1xf32>
    %355 = math.rsqrt %354 : vector<16x1xf32>
    %356 = vector.broadcast %355 : vector<16x1xf32> to vector<16x128xf32>
    %357 = arith.mulf %352, %356 : vector<16x128xf32>
    %358 = vector.broadcast %338 : vector<1x128xf32> to vector<16x128xf32>
    %359 = arith.mulf %357, %358 : vector<16x128xf32>
    %360 = vector.broadcast %339 : vector<1x128xf32> to vector<16x128xf32>
    %361 = arith.addf %359, %360 : vector<16x128xf32>
    %c2_159 = arith.constant 2 : index
    %c0_160 = arith.constant 0 : index
    %c0_161 = arith.constant 0 : index
    %362 = vector.load %arg7[%c2_159, %c0_160, %c0_161] : memref<3x128x384xf32, #tpu.memory_space<vmem>>, vector<1x128x384xf32>
    %363 = vector.shape_cast %362 : vector<1x128x384xf32> to vector<128x384xf32>
    %cst_162 = arith.constant dense<0.000000e+00> : vector<16x384xf32>
    %364 = tpu.matmul %361, %363, %cst_162 {dimension_numbers = #tpu.dot_dimension_numbers<[1], [0], [0], [1], [0, 0, 1, 1], [], []>} : vector<16x128xf32>, vector<128x384xf32>, vector<16x384xf32> -> vector<16x384xf32>
    %c2_163 = arith.constant 2 : index
    %c0_164 = arith.constant 0 : index
    %365 = vector.load %arg8[%c2_163, %c0_164] : memref<3x384xf32, #tpu.memory_space<vmem>>, vector<1x384xf32>
    %366 = vector.broadcast %365 : vector<1x384xf32> to vector<16x384xf32>
    %367 = arith.addf %364, %366 : vector<16x384xf32>
    %368 = vector.extract_strided_slice %367 {offsets = [0, 0], sizes = [16, 32], strides = [1, 1]} : vector<16x384xf32> to vector<16x32xf32>
    %369 = vector.extract_strided_slice %367 {offsets = [0, 128], sizes = [16, 32], strides = [1, 1]} : vector<16x384xf32> to vector<16x32xf32>
    %370 = vector.extract_strided_slice %367 {offsets = [0, 256], sizes = [16, 32], strides = [1, 1]} : vector<16x384xf32> to vector<16x32xf32>
    %cst_165 = arith.constant dense<0.000000e+00> : vector<16x16xf32>
    %371 = tpu.matmul %368, %369, %cst_165 {dimension_numbers = #tpu.dot_dimension_numbers<[1], [1], [0], [0], [0, 0, 1, 0], [], []>} : vector<16x32xf32>, vector<16x32xf32>, vector<16x16xf32> -> vector<16x16xf32>
    %372 = arith.addf %371, %1 : vector<16x16xf32>
    %cst_166 = arith.constant dense<0xFF800000> : vector<16xf32>
    %373 = vector.multi_reduction <maximumf>, %372, %cst_166 [1] : vector<16x16xf32> to vector<16xf32>
    %374 = vector.shape_cast %373 : vector<16xf32> to vector<16x1xf32>
    %375 = vector.broadcast %374 : vector<16x1xf32> to vector<16x16xf32>
    %376 = arith.subf %372, %375 : vector<16x16xf32>
    %377 = math.exp %376 : vector<16x16xf32>
    %cst_167 = arith.constant dense<0.000000e+00> : vector<16xf32>
    %378 = vector.multi_reduction <add>, %377, %cst_167 [1] : vector<16x16xf32> to vector<16xf32>
    %379 = vector.shape_cast %378 : vector<16xf32> to vector<16x1xf32>
    %380 = tpu.reciprocal %379 {approx = true} : vector<16x1xf32> -> vector<16x1xf32>
    %381 = vector.broadcast %380 : vector<16x1xf32> to vector<16x16xf32>
    %382 = arith.mulf %377, %381 : vector<16x16xf32>
    %cst_168 = arith.constant dense<0.000000e+00> : vector<16x32xf32>
    %383 = tpu.matmul %382, %370, %cst_168 {dimension_numbers = #tpu.dot_dimension_numbers<[1], [0], [0], [1], [0, 0, 1, 1], [], []>} : vector<16x16xf32>, vector<16x32xf32>, vector<16x32xf32> -> vector<16x32xf32>
    %c0_169 = arith.constant 0 : index
    %c0_170 = arith.constant 0 : index
    %384 = vector.load %arg24[%c0_169, %c0_170] : memref<16x128xf32, #tpu.memory_space<vmem>>, vector<16x32xf32>
    tpu.vector_store %arg24[%c0_169, %c0_170], %383 {strides = array<i32>} : memref<16x128xf32, #tpu.memory_space<vmem>>, vector<16x32xf32>,
    %385 = vector.extract_strided_slice %367 {offsets = [0, 32], sizes = [16, 32], strides = [1, 1]} : vector<16x384xf32> to vector<16x32xf32>
    %386 = vector.extract_strided_slice %367 {offsets = [0, 160], sizes = [16, 32], strides = [1, 1]} : vector<16x384xf32> to vector<16x32xf32>
    %387 = vector.extract_strided_slice %367 {offsets = [0, 288], sizes = [16, 32], strides = [1, 1]} : vector<16x384xf32> to vector<16x32xf32>
    %cst_171 = arith.constant dense<0.000000e+00> : vector<16x16xf32>
    %388 = tpu.matmul %385, %386, %cst_171 {dimension_numbers = #tpu.dot_dimension_numbers<[1], [1], [0], [0], [0, 0, 1, 0], [], []>} : vector<16x32xf32>, vector<16x32xf32>, vector<16x16xf32> -> vector<16x16xf32>
    %389 = arith.addf %388, %1 : vector<16x16xf32>
    %cst_172 = arith.constant dense<0xFF800000> : vector<16xf32>
    %390 = vector.multi_reduction <maximumf>, %389, %cst_172 [1] : vector<16x16xf32> to vector<16xf32>
    %391 = vector.shape_cast %390 : vector<16xf32> to vector<16x1xf32>
    %392 = vector.broadcast %391 : vector<16x1xf32> to vector<16x16xf32>
    %393 = arith.subf %389, %392 : vector<16x16xf32>
    %394 = math.exp %393 : vector<16x16xf32>
    %cst_173 = arith.constant dense<0.000000e+00> : vector<16xf32>
    %395 = vector.multi_reduction <add>, %394, %cst_173 [1] : vector<16x16xf32> to vector<16xf32>
    %396 = vector.shape_cast %395 : vector<16xf32> to vector<16x1xf32>
    %397 = tpu.reciprocal %396 {approx = true} : vector<16x1xf32> -> vector<16x1xf32>
    %398 = vector.broadcast %397 : vector<16x1xf32> to vector<16x16xf32>
    %399 = arith.mulf %394, %398 : vector<16x16xf32>
    %cst_174 = arith.constant dense<0.000000e+00> : vector<16x32xf32>
    %400 = tpu.matmul %399, %387, %cst_174 {dimension_numbers = #tpu.dot_dimension_numbers<[1], [0], [0], [1], [0, 0, 1, 1], [], []>} : vector<16x16xf32>, vector<16x32xf32>, vector<16x32xf32> -> vector<16x32xf32>
    %c0_175 = arith.constant 0 : index
    %c32_176 = arith.constant 32 : index
    %401 = vector.load %arg24[%c0_175, %c32_176] : memref<16x128xf32, #tpu.memory_space<vmem>>, vector<16x32xf32>
    tpu.vector_store %arg24[%c0_175, %c32_176], %400 {strides = array<i32>} : memref<16x128xf32, #tpu.memory_space<vmem>>, vector<16x32xf32>,
    %402 = vector.extract_strided_slice %367 {offsets = [0, 64], sizes = [16, 32], strides = [1, 1]} : vector<16x384xf32> to vector<16x32xf32>
    %403 = vector.extract_strided_slice %367 {offsets = [0, 192], sizes = [16, 32], strides = [1, 1]} : vector<16x384xf32> to vector<16x32xf32>
    %404 = vector.extract_strided_slice %367 {offsets = [0, 320], sizes = [16, 32], strides = [1, 1]} : vector<16x384xf32> to vector<16x32xf32>
    %cst_177 = arith.constant dense<0.000000e+00> : vector<16x16xf32>
    %405 = tpu.matmul %402, %403, %cst_177 {dimension_numbers = #tpu.dot_dimension_numbers<[1], [1], [0], [0], [0, 0, 1, 0], [], []>} : vector<16x32xf32>, vector<16x32xf32>, vector<16x16xf32> -> vector<16x16xf32>
    %406 = arith.addf %405, %1 : vector<16x16xf32>
    %cst_178 = arith.constant dense<0xFF800000> : vector<16xf32>
    %407 = vector.multi_reduction <maximumf>, %406, %cst_178 [1] : vector<16x16xf32> to vector<16xf32>
    %408 = vector.shape_cast %407 : vector<16xf32> to vector<16x1xf32>
    %409 = vector.broadcast %408 : vector<16x1xf32> to vector<16x16xf32>
    %410 = arith.subf %406, %409 : vector<16x16xf32>
    %411 = math.exp %410 : vector<16x16xf32>
    %cst_179 = arith.constant dense<0.000000e+00> : vector<16xf32>
    %412 = vector.multi_reduction <add>, %411, %cst_179 [1] : vector<16x16xf32> to vector<16xf32>
    %413 = vector.shape_cast %412 : vector<16xf32> to vector<16x1xf32>
    %414 = tpu.reciprocal %413 {approx = true} : vector<16x1xf32> -> vector<16x1xf32>
    %415 = vector.broadcast %414 : vector<16x1xf32> to vector<16x16xf32>
    %416 = arith.mulf %411, %415 : vector<16x16xf32>
    %cst_180 = arith.constant dense<0.000000e+00> : vector<16x32xf32>
    %417 = tpu.matmul %416, %404, %cst_180 {dimension_numbers = #tpu.dot_dimension_numbers<[1], [0], [0], [1], [0, 0, 1, 1], [], []>} : vector<16x16xf32>, vector<16x32xf32>, vector<16x32xf32> -> vector<16x32xf32>
    %c0_181 = arith.constant 0 : index
    %c64_182 = arith.constant 64 : index
    %418 = vector.load %arg24[%c0_181, %c64_182] : memref<16x128xf32, #tpu.memory_space<vmem>>, vector<16x32xf32>
    tpu.vector_store %arg24[%c0_181, %c64_182], %417 {strides = array<i32>} : memref<16x128xf32, #tpu.memory_space<vmem>>, vector<16x32xf32>,
    %419 = vector.extract_strided_slice %367 {offsets = [0, 96], sizes = [16, 32], strides = [1, 1]} : vector<16x384xf32> to vector<16x32xf32>
    %420 = vector.extract_strided_slice %367 {offsets = [0, 224], sizes = [16, 32], strides = [1, 1]} : vector<16x384xf32> to vector<16x32xf32>
    %421 = vector.extract_strided_slice %367 {offsets = [0, 352], sizes = [16, 32], strides = [1, 1]} : vector<16x384xf32> to vector<16x32xf32>
    %cst_183 = arith.constant dense<0.000000e+00> : vector<16x16xf32>
    %422 = tpu.matmul %419, %420, %cst_183 {dimension_numbers = #tpu.dot_dimension_numbers<[1], [1], [0], [0], [0, 0, 1, 0], [], []>} : vector<16x32xf32>, vector<16x32xf32>, vector<16x16xf32> -> vector<16x16xf32>
    %423 = arith.addf %422, %1 : vector<16x16xf32>
    %cst_184 = arith.constant dense<0xFF800000> : vector<16xf32>
    %424 = vector.multi_reduction <maximumf>, %423, %cst_184 [1] : vector<16x16xf32> to vector<16xf32>
    %425 = vector.shape_cast %424 : vector<16xf32> to vector<16x1xf32>
    %426 = vector.broadcast %425 : vector<16x1xf32> to vector<16x16xf32>
    %427 = arith.subf %423, %426 : vector<16x16xf32>
    %428 = math.exp %427 : vector<16x16xf32>
    %cst_185 = arith.constant dense<0.000000e+00> : vector<16xf32>
    %429 = vector.multi_reduction <add>, %428, %cst_185 [1] : vector<16x16xf32> to vector<16xf32>
    %430 = vector.shape_cast %429 : vector<16xf32> to vector<16x1xf32>
    %431 = tpu.reciprocal %430 {approx = true} : vector<16x1xf32> -> vector<16x1xf32>
    %432 = vector.broadcast %431 : vector<16x1xf32> to vector<16x16xf32>
    %433 = arith.mulf %428, %432 : vector<16x16xf32>
    %cst_186 = arith.constant dense<0.000000e+00> : vector<16x32xf32>
    %434 = tpu.matmul %433, %421, %cst_186 {dimension_numbers = #tpu.dot_dimension_numbers<[1], [0], [0], [1], [0, 0, 1, 1], [], []>} : vector<16x16xf32>, vector<16x32xf32>, vector<16x32xf32> -> vector<16x32xf32>
    %c0_187 = arith.constant 0 : index
    %c96_188 = arith.constant 96 : index
    %435 = vector.load %arg24[%c0_187, %c96_188] : memref<16x128xf32, #tpu.memory_space<vmem>>, vector<16x32xf32>
    tpu.vector_store %arg24[%c0_187, %c96_188], %434 {strides = array<i32>} : memref<16x128xf32, #tpu.memory_space<vmem>>, vector<16x32xf32>,
    %c0_189 = arith.constant 0 : index
    %c0_190 = arith.constant 0 : index
    %436 = vector.load %arg24[%c0_189, %c0_190] : memref<16x128xf32, #tpu.memory_space<vmem>>, vector<16x128xf32>
    %c2_191 = arith.constant 2 : index
    %c0_192 = arith.constant 0 : index
    %c0_193 = arith.constant 0 : index
    %437 = vector.load %arg9[%c2_191, %c0_192, %c0_193] : memref<3x128x128xf32, #tpu.memory_space<vmem>>, vector<1x128x128xf32>
    %438 = vector.shape_cast %437 : vector<1x128x128xf32> to vector<128x128xf32>
    %cst_194 = arith.constant dense<0.000000e+00> : vector<16x128xf32>
    %439 = tpu.matmul %436, %438, %cst_194 {dimension_numbers = #tpu.dot_dimension_numbers<[1], [0], [0], [1], [0, 0, 1, 1], [], []>} : vector<16x128xf32>, vector<128x128xf32>, vector<16x128xf32> -> vector<16x128xf32>
    %c2_195 = arith.constant 2 : index
    %c0_196 = arith.constant 0 : index
    %440 = vector.load %arg10[%c2_195, %c0_196] : memref<3x128xf32, #tpu.memory_space<vmem>>, vector<1x128xf32>
    %441 = vector.broadcast %440 : vector<1x128xf32> to vector<16x128xf32>
    %442 = arith.addf %439, %441 : vector<16x128xf32>
    %443 = arith.addf %337, %442 : vector<16x128xf32>
    %c2_197 = arith.constant 2 : index
    %c0_198 = arith.constant 0 : index
    %444 = vector.load %arg11[%c2_197, %c0_198] : memref<3x128xf32, #tpu.memory_space<vmem>>, vector<1x128xf32>
    %c2_199 = arith.constant 2 : index
    %c0_200 = arith.constant 0 : index
    %445 = vector.load %arg12[%c2_199, %c0_200] : memref<3x128xf32, #tpu.memory_space<vmem>>, vector<1x128xf32>
    %cst_201 = arith.constant dense<0.000000e+00> : vector<16xf32>
    %446 = vector.multi_reduction <add>, %443, %cst_201 [1] : vector<16x128xf32> to vector<16xf32>
    %447 = vector.shape_cast %446 : vector<16xf32> to vector<16x1xf32>
    %cst_202 = arith.constant 1.280000e+02 : f32
    %448 = vector.broadcast %cst_202 : f32 to vector<16x1xf32>
    %449 = arith.divf %447, %448 : vector<16x1xf32>
    %450 = vector.broadcast %449 : vector<16x1xf32> to vector<16x128xf32>
    %451 = arith.subf %443, %450 : vector<16x128xf32>
    %452 = arith.mulf %451, %451 : vector<16x128xf32>
    %cst_203 = arith.constant dense<0.000000e+00> : vector<16xf32>
    %453 = vector.multi_reduction <add>, %452, %cst_203 [1] : vector<16x128xf32> to vector<16xf32>
    %454 = vector.shape_cast %453 : vector<16xf32> to vector<16x1xf32>
    %cst_204 = arith.constant 1.280000e+02 : f32
    %455 = vector.broadcast %cst_204 : f32 to vector<16x1xf32>
    %456 = arith.divf %454, %455 : vector<16x1xf32>
    %457 = vector.broadcast %449 : vector<16x1xf32> to vector<16x128xf32>
    %458 = arith.subf %443, %457 : vector<16x128xf32>
    %cst_205 = arith.constant 9.99999974E-6 : f32
    %459 = vector.broadcast %cst_205 : f32 to vector<16x1xf32>
    %460 = arith.addf %456, %459 : vector<16x1xf32>
    %461 = math.rsqrt %460 : vector<16x1xf32>
    %462 = vector.broadcast %461 : vector<16x1xf32> to vector<16x128xf32>
    %463 = arith.mulf %458, %462 : vector<16x128xf32>
    %464 = vector.broadcast %444 : vector<1x128xf32> to vector<16x128xf32>
    %465 = arith.mulf %463, %464 : vector<16x128xf32>
    %466 = vector.broadcast %445 : vector<1x128xf32> to vector<16x128xf32>
    %467 = arith.addf %465, %466 : vector<16x128xf32>
    %c2_206 = arith.constant 2 : index
    %c0_207 = arith.constant 0 : index
    %c0_208 = arith.constant 0 : index
    %468 = vector.load %arg13[%c2_206, %c0_207, %c0_208] : memref<3x128x256xf32, #tpu.memory_space<vmem>>, vector<1x128x256xf32>
    %469 = vector.shape_cast %468 : vector<1x128x256xf32> to vector<128x256xf32>
    %cst_209 = arith.constant dense<0.000000e+00> : vector<16x256xf32>
    %470 = tpu.matmul %467, %469, %cst_209 {dimension_numbers = #tpu.dot_dimension_numbers<[1], [0], [0], [1], [0, 0, 1, 1], [], []>} : vector<16x128xf32>, vector<128x256xf32>, vector<16x256xf32> -> vector<16x256xf32>
    %c2_210 = arith.constant 2 : index
    %c0_211 = arith.constant 0 : index
    %471 = vector.load %arg14[%c2_210, %c0_211] : memref<3x256xf32, #tpu.memory_space<vmem>>, vector<1x256xf32>
    %472 = vector.broadcast %471 : vector<1x256xf32> to vector<16x256xf32>
    %473 = arith.addf %470, %472 : vector<16x256xf32>
    %474 = arith.mulf %473, %473 : vector<16x256xf32>
    %475 = arith.mulf %473, %474 : vector<16x256xf32>
    %cst_212 = arith.constant 4.471500e-02 : f32
    %476 = vector.broadcast %cst_212 : f32 to vector<16x256xf32>
    %477 = arith.mulf %476, %475 : vector<16x256xf32>
    %478 = arith.addf %473, %477 : vector<16x256xf32>
    %cst_213 = arith.constant 0.797884583 : f32
    %479 = vector.broadcast %cst_213 : f32 to vector<16x256xf32>
    %480 = arith.mulf %479, %478 : vector<16x256xf32>
    %481 = math.tanh %480 : vector<16x256xf32>
    %cst_214 = arith.constant 1.000000e+00 : f32
    %482 = vector.broadcast %cst_214 : f32 to vector<16x256xf32>
    %483 = arith.addf %482, %481 : vector<16x256xf32>
    %cst_215 = arith.constant 5.000000e-01 : f32
    %484 = vector.broadcast %cst_215 : f32 to vector<16x256xf32>
    %485 = arith.mulf %484, %483 : vector<16x256xf32>
    %486 = arith.mulf %473, %485 : vector<16x256xf32>
    %c2_216 = arith.constant 2 : index
    %c0_217 = arith.constant 0 : index
    %c0_218 = arith.constant 0 : index
    %487 = vector.load %arg15[%c2_216, %c0_217, %c0_218] : memref<3x256x128xf32, #tpu.memory_space<vmem>>, vector<1x256x128xf32>
    %488 = vector.shape_cast %487 : vector<1x256x128xf32> to vector<256x128xf32>
    %cst_219 = arith.constant dense<0.000000e+00> : vector<16x128xf32>
    %489 = tpu.matmul %486, %488, %cst_219 {dimension_numbers = #tpu.dot_dimension_numbers<[1], [0], [0], [1], [0, 0, 1, 1], [], []>} : vector<16x256xf32>, vector<256x128xf32>, vector<16x128xf32> -> vector<16x128xf32>
    %c2_220 = arith.constant 2 : index
    %c0_221 = arith.constant 0 : index
    %490 = vector.load %arg16[%c2_220, %c0_221] : memref<3x128xf32, #tpu.memory_space<vmem>>, vector<1x128xf32>
    %491 = vector.broadcast %490 : vector<1x128xf32> to vector<16x128xf32>
    %492 = arith.addf %489, %491 : vector<16x128xf32>
    %493 = arith.addf %443, %492 : vector<16x128xf32>
    %c0_222 = arith.constant 0 : index
    %c0_223 = arith.constant 0 : index
    %494 = vector.load %arg17[%c0_222, %c0_223] : memref<128x64xf32, #tpu.memory_space<vmem>>, vector<128x64xf32>
    %cst_224 = arith.constant dense<0.000000e+00> : vector<16x64xf32>
    %495 = tpu.matmul %493, %494, %cst_224 {dimension_numbers = #tpu.dot_dimension_numbers<[1], [0], [0], [1], [0, 0, 1, 1], [], []>} : vector<16x128xf32>, vector<128x64xf32>, vector<16x64xf32> -> vector<16x64xf32>
    %c0_225 = arith.constant 0 : index
    %c0_226 = arith.constant 0 : index
    %496 = vector.load %arg18[%c0_225, %c0_226] : memref<1x64xf32, #tpu.memory_space<vmem>>, vector<1x64xf32>
    %497 = vector.broadcast %496 : vector<1x64xf32> to vector<16x64xf32>
    %498 = arith.addf %495, %497 : vector<16x64xf32>
    %499 = arith.mulf %498, %498 : vector<16x64xf32>
    %500 = arith.mulf %498, %499 : vector<16x64xf32>
    %cst_227 = arith.constant 4.471500e-02 : f32
    %501 = vector.broadcast %cst_227 : f32 to vector<16x64xf32>
    %502 = arith.mulf %501, %500 : vector<16x64xf32>
    %503 = arith.addf %498, %502 : vector<16x64xf32>
    %cst_228 = arith.constant 0.797884583 : f32
    %504 = vector.broadcast %cst_228 : f32 to vector<16x64xf32>
    %505 = arith.mulf %504, %503 : vector<16x64xf32>
    %506 = math.tanh %505 : vector<16x64xf32>
    %cst_229 = arith.constant 1.000000e+00 : f32
    %507 = vector.broadcast %cst_229 : f32 to vector<16x64xf32>
    %508 = arith.addf %507, %506 : vector<16x64xf32>
    %cst_230 = arith.constant 5.000000e-01 : f32
    %509 = vector.broadcast %cst_230 : f32 to vector<16x64xf32>
    %510 = arith.mulf %509, %508 : vector<16x64xf32>
    %511 = arith.mulf %498, %510 : vector<16x64xf32>
    %c0_231 = arith.constant 0 : index
    %c0_232 = arith.constant 0 : index
    %512 = vector.load %arg19[%c0_231, %c0_232] : memref<64x32xf32, #tpu.memory_space<vmem>>, vector<64x32xf32>
    %cst_233 = arith.constant dense<0.000000e+00> : vector<16x32xf32>
    %513 = tpu.matmul %511, %512, %cst_233 {dimension_numbers = #tpu.dot_dimension_numbers<[1], [0], [0], [1], [0, 0, 1, 1], [], []>} : vector<16x64xf32>, vector<64x32xf32>, vector<16x32xf32> -> vector<16x32xf32>
    %c0_234 = arith.constant 0 : index
    %c0_235 = arith.constant 0 : index
    %514 = vector.load %arg20[%c0_234, %c0_235] : memref<1x32xf32, #tpu.memory_space<vmem>>, vector<1x32xf32>
    %515 = vector.broadcast %514 : vector<1x32xf32> to vector<16x32xf32>
    %516 = arith.addf %513, %515 : vector<16x32xf32>
    %517 = arith.mulf %516, %516 : vector<16x32xf32>
    %518 = arith.mulf %516, %517 : vector<16x32xf32>
    %cst_236 = arith.constant 4.471500e-02 : f32
    %519 = vector.broadcast %cst_236 : f32 to vector<16x32xf32>
    %520 = arith.mulf %519, %518 : vector<16x32xf32>
    %521 = arith.addf %516, %520 : vector<16x32xf32>
    %cst_237 = arith.constant 0.797884583 : f32
    %522 = vector.broadcast %cst_237 : f32 to vector<16x32xf32>
    %523 = arith.mulf %522, %521 : vector<16x32xf32>
    %524 = math.tanh %523 : vector<16x32xf32>
    %cst_238 = arith.constant 1.000000e+00 : f32
    %525 = vector.broadcast %cst_238 : f32 to vector<16x32xf32>
    %526 = arith.addf %525, %524 : vector<16x32xf32>
    %cst_239 = arith.constant 5.000000e-01 : f32
    %527 = vector.broadcast %cst_239 : f32 to vector<16x32xf32>
    %528 = arith.mulf %527, %526 : vector<16x32xf32>
    %529 = arith.mulf %516, %528 : vector<16x32xf32>
    %c0_240 = arith.constant 0 : index
    %c0_241 = arith.constant 0 : index
    %530 = vector.load %arg21[%c0_240, %c0_241] : memref<32x128xf32, #tpu.memory_space<vmem>>, vector<32x128xf32>
    %cst_242 = arith.constant dense<0.000000e+00> : vector<16x128xf32>
    %531 = tpu.matmul %529, %530, %cst_242 {dimension_numbers = #tpu.dot_dimension_numbers<[1], [0], [0], [1], [0, 0, 1, 1], [], []>} : vector<16x32xf32>, vector<32x128xf32>, vector<16x128xf32> -> vector<16x128xf32>
    %c0_243 = arith.constant 0 : index
    %c0_244 = arith.constant 0 : index
    %532 = vector.load %arg22[%c0_243, %c0_244] : memref<1x128xf32, #tpu.memory_space<vmem>>, vector<1x128xf32>
    %533 = vector.broadcast %532 : vector<1x128xf32> to vector<16x128xf32>
    %534 = arith.addf %531, %533 : vector<16x128xf32>
    %c0_245 = arith.constant 0 : index
    %c0_246 = arith.constant 0 : index
    %535 = vector.load %arg23[%c0_245, %c0_246] : memref<16x128xf32, #tpu.memory_space<vmem>>, vector<16x128xf32>
    tpu.vector_store %arg23[%c0_245, %c0_246], %534 {strides = array<i32>} : memref<16x128xf32, #tpu.memory_space<vmem>>, vector<16x128xf32>,
    return
  }
  func.func @transform_0(%arg0: i32) -> (i32, i32) {
    %c0_i32 = arith.constant 0 : i32
    %c0_i32_0 = arith.constant 0 : i32
    return %arg0, %c0_i32 : i32, i32
  }
  func.func @transform_1(%arg0: i32) -> (i32, i32) {
    %c0_i32 = arith.constant 0 : i32
    %c0_i32_0 = arith.constant 0 : i32
    %c0_i32_1 = arith.constant 0 : i32
    return %c0_i32, %c0_i32_0 : i32, i32
  }
  func.func @transform_2(%arg0: i32) -> (i32, i32) {
    %c0_i32 = arith.constant 0 : i32
    %c0_i32_0 = arith.constant 0 : i32
    %c0_i32_1 = arith.constant 0 : i32
    return %c0_i32, %c0_i32_0 : i32, i32
  }
  func.func @transform_3(%arg0: i32) -> (i32, i32) {
    %c0_i32 = arith.constant 0 : i32
    %c0_i32_0 = arith.constant 0 : i32
    %c0_i32_1 = arith.constant 0 : i32
    return %c0_i32, %c0_i32_0 : i32, i32
  }
  func.func @transform_4(%arg0: i32) -> (i32, i32) {
    %c0_i32 = arith.constant 0 : i32
    %c0_i32_0 = arith.constant 0 : i32
    %c0_i32_1 = arith.constant 0 : i32
    return %c0_i32, %c0_i32_0 : i32, i32
  }
  func.func @transform_5(%arg0: i32) -> (i32, i32) {
    %c0_i32 = arith.constant 0 : i32
    %c0_i32_0 = arith.constant 0 : i32
    %c0_i32_1 = arith.constant 0 : i32
    return %c0_i32, %c0_i32_0 : i32, i32
  }
  func.func @transform_6(%arg0: i32) -> (i32, i32, i32) {
    %c0_i32 = arith.constant 0 : i32
    %c0_i32_0 = arith.constant 0 : i32
    %c0_i32_1 = arith.constant 0 : i32
    %c0_i32_2 = arith.constant 0 : i32
    return %c0_i32, %c0_i32_0, %c0_i32_1 : i32, i32, i32
  }
  func.func @transform_7(%arg0: i32) -> (i32, i32) {
    %c0_i32 = arith.constant 0 : i32
    %c0_i32_0 = arith.constant 0 : i32
    %c0_i32_1 = arith.constant 0 : i32
    return %c0_i32, %c0_i32_0 : i32, i32
  }
  func.func @transform_8(%arg0: i32) -> (i32, i32, i32) {
    %c0_i32 = arith.constant 0 : i32
    %c0_i32_0 = arith.constant 0 : i32
    %c0_i32_1 = arith.constant 0 : i32
    %c0_i32_2 = arith.constant 0 : i32
    return %c0_i32, %c0_i32_0, %c0_i32_1 : i32, i32, i32
  }
  func.func @transform_9(%arg0: i32) -> (i32, i32) {
    %c0_i32 = arith.constant 0 : i32
    %c0_i32_0 = arith.constant 0 : i32
    %c0_i32_1 = arith.constant 0 : i32
    return %c0_i32, %c0_i32_0 : i32, i32
  }
  func.func @transform_10(%arg0: i32) -> (i32, i32) {
    %c0_i32 = arith.constant 0 : i32
    %c0_i32_0 = arith.constant 0 : i32
    %c0_i32_1 = arith.constant 0 : i32
    return %c0_i32, %c0_i32_0 : i32, i32
  }
  func.func @transform_11(%arg0: i32) -> (i32, i32) {
    %c0_i32 = arith.constant 0 : i32
    %c0_i32_0 = arith.constant 0 : i32
    %c0_i32_1 = arith.constant 0 : i32
    return %c0_i32, %c0_i32_0 : i32, i32
  }
  func.func @transform_12(%arg0: i32) -> (i32, i32, i32) {
    %c0_i32 = arith.constant 0 : i32
    %c0_i32_0 = arith.constant 0 : i32
    %c0_i32_1 = arith.constant 0 : i32
    %c0_i32_2 = arith.constant 0 : i32
    return %c0_i32, %c0_i32_0, %c0_i32_1 : i32, i32, i32
  }
  func.func @transform_13(%arg0: i32) -> (i32, i32) {
    %c0_i32 = arith.constant 0 : i32
    %c0_i32_0 = arith.constant 0 : i32
    %c0_i32_1 = arith.constant 0 : i32
    return %c0_i32, %c0_i32_0 : i32, i32
  }
  func.func @transform_14(%arg0: i32) -> (i32, i32, i32) {
    %c0_i32 = arith.constant 0 : i32
    %c0_i32_0 = arith.constant 0 : i32
    %c0_i32_1 = arith.constant 0 : i32
    %c0_i32_2 = arith.constant 0 : i32
    return %c0_i32, %c0_i32_0, %c0_i32_1 : i32, i32, i32
  }
  func.func @transform_15(%arg0: i32) -> (i32, i32) {
    %c0_i32 = arith.constant 0 : i32
    %c0_i32_0 = arith.constant 0 : i32
    %c0_i32_1 = arith.constant 0 : i32
    return %c0_i32, %c0_i32_0 : i32, i32
  }
  func.func @transform_16(%arg0: i32) -> (i32, i32) {
    %c0_i32 = arith.constant 0 : i32
    %c0_i32_0 = arith.constant 0 : i32
    %c0_i32_1 = arith.constant 0 : i32
    return %c0_i32, %c0_i32_0 : i32, i32
  }
  func.func @transform_17(%arg0: i32) -> (i32, i32) {
    %c0_i32 = arith.constant 0 : i32
    %c0_i32_0 = arith.constant 0 : i32
    %c0_i32_1 = arith.constant 0 : i32
    return %c0_i32, %c0_i32_0 : i32, i32
  }
  func.func @transform_18(%arg0: i32) -> (i32, i32) {
    %c0_i32 = arith.constant 0 : i32
    %c0_i32_0 = arith.constant 0 : i32
    %c0_i32_1 = arith.constant 0 : i32
    return %c0_i32, %c0_i32_0 : i32, i32
  }
  func.func @transform_19(%arg0: i32) -> (i32, i32) {
    %c0_i32 = arith.constant 0 : i32
    %c0_i32_0 = arith.constant 0 : i32
    %c0_i32_1 = arith.constant 0 : i32
    return %c0_i32, %c0_i32_0 : i32, i32
  }
  func.func @transform_20(%arg0: i32) -> (i32, i32) {
    %c0_i32 = arith.constant 0 : i32
    %c0_i32_0 = arith.constant 0 : i32
    %c0_i32_1 = arith.constant 0 : i32
    return %c0_i32, %c0_i32_0 : i32, i32
  }
  func.func @transform_21(%arg0: i32) -> (i32, i32) {
    %c0_i32 = arith.constant 0 : i32
    %c0_i32_0 = arith.constant 0 : i32
    %c0_i32_1 = arith.constant 0 : i32
    return %c0_i32, %c0_i32_0 : i32, i32
  }
  func.func @transform_22(%arg0: i32) -> (i32, i32) {
    %c0_i32 = arith.constant 0 : i32
    %c0_i32_0 = arith.constant 0 : i32
    return %arg0, %c0_i32 : i32, i32
  }
}

</mosaic_0001>

<bundles_post_ra>
// kernel: forward.1
= control target key start
LH: loop header
LB: loop body
LE: loop exit
PB: predicated region body
PF: predicated region fallthrough
CT: control target
= control target key end

     0   :  { %s4167_s0 = inlined_call_operand.vmem [shape: f32[16,128], index: 0, kind: input, shape index: {}]   ;;  %s4168_s1 = inlined_call_operand.vmem [shape: f32[16,16], index: 1, kind: input, shape index: {}]   ;;  %s4169_s2 = inlined_call_operand.vmem [shape: f32[1,128], index: 2, kind: input, shape index: {}]   ;;  %s4170_s3 = inlined_call_operand.vmem [shape: f32[1,128], index: 3, kind: input, shape index: {}]   ;;  %s4171_s4 = inlined_call_operand.vmem [shape: f32[3,128], index: 4, kind: input, shape index: {}]   ;;  %s4172_s5 = inlined_call_operand.vmem [shape: f32[3,128], index: 5, kind: input, shape index: {}]   ;;  %s4173_s6 = inlined_call_operand.hbm [shape: f32[3,128,384], index: 6, kind: input, shape index: {}]   ;;  %s4174_s7 = inlined_call_operand.vmem [shape: f32[3,384], index: 7, kind: input, shape index: {}]   ;;  %s4175_s8 = inlined_call_operand.hbm [shape: f32[3,128,128], index: 8, kind: input, shape index: {}]   ;;  %s4176_s9 = inlined_call_operand.vmem [shape: f32[3,128], index: 9, kind: input, shape index: {}]   ;;  %s4177_s10 = inlined_call_operand.vmem [shape: f32[3,128], index: 10, kind: input, shape index: {}]   ;;  %s4178_s11 = inlined_call_operand.vmem [shape: f32[3,128], index: 11, kind: input, shape index: {}]   ;;  %s4179_s12 = inlined_call_operand.hbm [shape: f32[3,128,256], index: 12, kind: input, shape index: {}]   ;;  %s4180_s13 = inlined_call_operand.vmem [shape: f32[3,256], index: 13, kind: input, shape index: {}]   ;;  %s4181_s14 = inlined_call_operand.hbm [shape: f32[3,256,128], index: 14, kind: input, shape index: {}]   ;;  %s4182_s15 = inlined_call_operand.vmem [shape: f32[3,128], index: 15, kind: input, shape index: {}]   ;;  %s4183_s16 = inlined_call_operand.vmem [shape: f32[128,64], index: 16, kind: input, shape index: {}]   ;;  %s4184_s17 = inlined_call_operand.vmem [shape: f32[1,64], index: 17, kind: input, shape index: {}]   ;;  %s4185_s18 = inlined_call_operand.vmem [shape: f32[64,32], index: 18, kind: input, shape index: {}]   ;;  %s4186_s19 = inlined_call_operand.vmem [shape: f32[1,32], index: 19, kind: input, shape index: {}]   ;;  %s4187_s20 = inlined_call_operand.vmem [shape: f32[32,128], index: 20, kind: input, shape index: {}]   ;;  %s4188_s21 = inlined_call_operand.vmem [shape: f32[1,128], index: 21, kind: input, shape index: {}]   ;;  %s4189_s22 = inlined_call_operand.vmem [shape: f32[16,128], index: 22, kind: output, shape index: {}]  }
   0x1   :  { %4195 = sst [smem:[#allocation13_spill]] %s4167_s0 }
   0x2   :  { %4196 = sst [smem:[#allocation14_spill]] %s4168_s1 }
   0x3   :  { %4197 = sst [smem:[#allocation15_spill]] %s4169_s2 }
   0x4   :  { %4198 = sst [smem:[#allocation16_spill]] %s4170_s3 }
   0x5   :  { %4199 = sst [smem:[#allocation17_spill]] %s4171_s4 }
   0x6   :  { %4200 = sst [smem:[#allocation18_spill]] %s4172_s5 }
   0x7   :  { %4201 = sst [smem:[#allocation19_spill]] %s4173_s6 }
   0x8   :  { %4202 = sst [smem:[#allocation20_spill]] %s4188_s21 }
   0x9   :  { %4203 = sst [smem:[#allocation21_spill]] %s4189_s22 }
   0xa   :  { %27 = vsyncpa [#allocation4], 0 }
   0xb   :  { %28 = vsyncpa [#allocation6], 0  ;;  %s61_s29 = sshll.u32 %s4175_s8, 4  ;;  %s62_s29 = int_to_ptr.hbm [resolvable:$true] %s61_s29 }
   0xc   :  { %29 = vsyncpa [#allocation9], 0  ;;  %s3435_s30 = smov [#allocation5]   ;;  %s4204_s1 = sld [smem:[#allocation19_spill]] }
   0xd   :  { %s63_s4 = sshll.u32 %s3435_s30, 4  ;;  %s3436_s24 = smov 128   ;;  %s64_s4 = int_to_ptr.vmem [resolvable:$true] %s63_s4 }
   0xe   :  { %s3437_s6 = smov 8   ;;  %s3438_s25 = smov [#allocation3]  }
   0xf   :  { %69 = dma.hbm_to_vmem [thread:$0]  %s62_s29, 6144, %s64_s4, [#allocation6], %s3436_s24, %s3436_s24, %s3437_s6  }
  0x10   :  { %s48_s26 = sshll.u32 %s3438_s25, 4  ;;  %s3439_s2 = smov 384   ;;  %s49_s26 = int_to_ptr.vmem [resolvable:$true] %s48_s26 }
  0x11   :  { %s3440_s27 = smov 24   ;;  %s80_s28 = sshll.u32 %s4179_s12, 4  ;;  %s81_s28 = int_to_ptr.hbm [resolvable:$true] %s80_s28 }
  0x12   :  { %s46_s5 = sshll.u32 %s4204_s1, 4  ;;  %s3441_s30 = smov [#allocation7]   ;;  %s47_s5 = int_to_ptr.hbm [resolvable:$true] %s46_s5 }
  0x13   :  { %54 = dma.hbm_to_vmem [thread:$0]  %s47_s5, 18432, %s49_s26, [#allocation4], %s3439_s2, %s3439_s2, %s3440_s27  }
  0x14   :  { %s82_s22 = sshll.u32 %s3441_s30, 4  ;;  %s95_s1 = sshll.u32 %s4181_s14, 4  ;;  %s83_s22 = int_to_ptr.vmem [resolvable:$true] %s82_s22  ;;  %s96_s1 = int_to_ptr.hbm [resolvable:$true] %s95_s1 }
  0x15   :  { %s3442_s29 = smov 256   ;;  %s3443_s4 = smov 16  }
  0x16   :  { %88 = dma.hbm_to_vmem [thread:$0]  %s81_s28, 12288, %s83_s22, [#allocation6], %s3442_s29, %s3442_s29, %s3443_s4  }
  0x17   :  { %s3444_s25 = smov [#allocation8]  }
  0x18   :  { %s97_s21 = sshll.u32 %s3444_s25, 4  ;;  %s98_s21 = int_to_ptr.vmem [resolvable:$true] %s97_s21 }
  0x19   :  { %103 = dma.hbm_to_vmem [thread:$0]  %s96_s1, 12288, %s98_s21, [#allocation9], %s3436_s24, %s3436_s24, %s3437_s6  }
  0x1a   :  { %3429 = dma.done.wait [#allocation4], 18432  }
  0x1b   :  { %3430 = vsyncadd [#allocation4], 4294948864 }
  0x1c   :  { %3431 = dma.done.wait [#allocation6], 18432  }
  0x1d   :  { %3432 = vsyncadd [#allocation6], 4294948864 }
  0x1e   :  { %3433 = dma.done.wait [#allocation9], 12288  }
  0x1f   :  { %3434 = vsyncadd [#allocation9], 4294955008  ;;  %s4205_s26 = sld [smem:[#allocation13_spill]]  ;;  %v3445_v2 = vmov 128.0   ;;  %v290_v45 = vld [vmem:[#allocation3 + $0x168] sm:$0xff]  ;;  %v291_v46 = vld [vmem:[#allocation3 + $0x170] sm:$0xff] }
  0x20   :  { %3171 = vrcp.f32 %v3445_v2  ;;  %s4206_s24 = sld [smem:[#allocation15_spill]]  ;;  %v292_v47 = vld [vmem:[#allocation3 + $0x178] sm:$0xff]  ;;  %301 = vmatpush.msra.mxu0 %v290_v45  ;;  %324 = vmatpush.msra.mxu1 %v291_v46  ;;  %v287_v48 = vld [vmem:[#allocation3 + $0x150] sm:$0xff]  ;;  %v289_v50 = vld [vmem:[#allocation3 + $0x160] sm:$0xff]  ;;  %s3446_s25 = smov 96   ;;  %vm370_vm13 = vcmask 261120  }
  0x21   :  { %s4207_s8 = sld [smem:[#allocation16_spill]]  ;;  %v288_v49 = vld [vmem:[#allocation3 + $0x158] sm:$0xff]  ;;  %347 = vmatpush.msra.mxu2 %v292_v47  ;;  %v285_v60 = vld [vmem:[#allocation3 + $0x140] sm:$0xff]  ;;  %v286_v61 = vld [vmem:[#allocation3 + $0x148] sm:$0xff]  ;;  %s3447_s12 = smov 32   ;;  %vm406_vm14 = vcmask 130048  }
  0x22   :  { %302 = vmatpush.msra.mxu0 %v287_v48  ;;  %325 = vmatpush.msra.mxu1 %v288_v49  ;;  %v284_v59 = vld [vmem:[#allocation3 + $0x138] sm:$0xff]  ;;  %v281_v62 = vld [vmem:[#allocation3 + $0x120] sm:$0xff]  ;;  %v282_v63 = vld [vmem:[#allocation3 + $0x128] sm:$0xff]  ;;  %s4208_s30 = sld [smem:[#allocation17_spill]]  ;;  %s3448_s22 = smov 64   ;;  %vm566_vm15 = vcmask 523520  }
  0x23   :  { %348 = vmatpush.msra.mxu2 %v289_v50  ;;  %v279_v2 = vld [vmem:[#allocation3 + $0x110] sm:$0xff]  ;;  %s4209_s1 = sld [smem:[#allocation18_spill]] }
  0x24   :  { %303 = vmatpush.msra.mxu0 %v284_v59  ;;  %326 = vmatpush.msra.mxu1 %v285_v60  ;;  %s4210_s14 = sld [smem:[#allocation14_spill]] }
  0x25   :  { %v134_v0 = vld [vmem:[%s4205_s26] sm:$0xff]  ;;  %v135_v1 = vld [vmem:[%s4205_s26 + $0x8] sm:$0xff]  ;;  %349 = vmatpush.msra.mxu2 %v286_v61 }
  0x26   :  { %140 = vadd.xlane.f32.xlu0 %v134_v0  ;;  %v3172_v3 = vpop.eup %3171  ;;  %v3148_v31 = vld [vmem:[%s4206_s24] ss:$0 sm:$0xff]  ;;  %304 = vmatpush.msra.mxu0 %v281_v62 }
  0x27   :  { %v145_v4 = vmul.f32 128.0, %v3172_v3  ;;  %vm149_vm0 = vweird.f32 %v3172_v3  ;;  %v3149_v35 = vld [vmem:[%s4207_s8] ss:$0 sm:$0xff]  ;;  %327 = vmatpush.msra.mxu1 %v282_v63  ;;  %s4211_s8 = sld [smem:[#allocation20_spill]] }
  0x29   :  { %v146_v5 = vsub.f32 1.0, %v145_v4  ;;  %328 = vmatpush.msra.mxu1 %v279_v2  ;;  %v275_v4 = vld [vmem:[#allocation3 + $0xf0] sm:$0xff] }
  0x2a   :  { %v3151_v60 = vld [vmem:[%s4209_s1] ss:$0 sm:$0xff] }
  0x2b   :  { %v147_v6 = vmul.f32 %v3172_v3, %v146_v5  ;;  %v276_v5 = vld [vmem:[#allocation3 + $0xf8] sm:$0xff] }
  0x2c   :  { %329 = vmatpush.msra.mxu1 %v276_v5  ;;  %v293_v5 = vld [vmem:[%s4174_s7] ss:$4 sm:$0x7] }
  0x2d   :  { %v148_v7 = vadd.f32 %v3172_v3, %v147_v6  ;;  %v277_v6 = vld [vmem:[#allocation3 + $0x100] sm:$0xff] }
  0x2e   :  { %142 = vadd.xlane.f32.xlu0 %v135_v1 }
  0x2f   :  { %v3582_v8 = vsel %vm149_vm0, %v3172_v3, %v148_v7  ;;  %v280_v3 = vld [vmem:[#allocation3 + $0x118] sm:$0xff]  ;;  %vm673_vm0 = vcmask 785920  }
  0x30   :  { %v272_v7 = vld [vmem:[#allocation3 + $0xd8] sm:$0xff] }
  0x99   :  { %v141_v9 = vpop.xlane.xlu0 %140 }
  0x9a   :  { %v151_v10 = vmul.f32 %v3582_v8, %v141_v9  ;;  %v273_v9 = vld [vmem:[#allocation3 + $0xe0] sm:$0xff] }
  0x9b   :  { %330 = vmatpush.msra.mxu1 %v273_v9 }
  0x9c   :  { %v153_v11 = vsub.f32 %v134_v0, %v151_v10  ;;  %v283_v0 = vld [vmem:[#allocation3 + $0x130] sm:$0xff]  ;;  %v274_v10 = vld [vmem:[#allocation3 + $0xe8] sm:$0xff] }
  0x9d   :  { %350 = vmatpush.msra.mxu2 %v283_v0 }
  0x9e   :  { %v155_v12 = vmul.f32 %v153_v11, %v153_v11 }
  0x9f   :  { %351 = vmatpush.msra.mxu2 %v280_v3 }
  0xa0   :  { %157 = vadd.xlane.f32.xlu1 %v155_v12  ;;  %v270_v12 = vld [vmem:[#allocation3 + $0xc8] sm:$0xff] }
  0xa1   :  { %v143_v13 = vpop.xlane.xlu0 %142  ;;  %352 = vmatpush.msra.mxu2 %v277_v6  ;;  %331 = vmatpush.msra.mxu1 %v270_v12  ;;  %v296_v6 = vperm.slane %v293_v5, 1 }
  0xa2   :  { %v152_v14 = vmul.f32 %v3582_v8, %v143_v13  ;;  %v271_v13 = vld [vmem:[#allocation3 + $0xd0] sm:$0xff] }
  0xa3   :  { %353 = vmatpush.msra.mxu2 %v274_v10 }
  0xa4   :  { %v154_v15 = vsub.f32 %v135_v1, %v152_v14  ;;  %v278_v1 = vld [vmem:[#allocation3 + $0x108] sm:$0xff] }
  0xa5   :  { %305 = vmatpush.msra.mxu0 %v278_v1  ;;  %354 = vmatpush.msra.mxu2 %v271_v13  ;;  %v266_v14 = vld [vmem:[#allocation3 + $0xa8] sm:$0xff]  ;;  %v297_v13 = vperm.slane %v293_v5, 2 }
  0xa6   :  { %v156_v16 = vmul.f32 %v154_v15, %v154_v15 }
  0xa7   :  { %306 = vmatpush.msra.mxu0 %v275_v4 }
  0xa8   :  { %159 = vadd.xlane.f32.xlu1 %v156_v16  ;;  %v268_v16 = vld [vmem:[#allocation3 + $0xb8] sm:$0xff] }
  0xa9   :  { %307 = vmatpush.msra.mxu0 %v272_v7  ;;  %355 = vmatpush.msra.mxu2 %v268_v16 }
 0x113   :  { %v158_v17 = vpop.xlane.xlu1 %157 }
 0x114   :  { %v161_v18 = vmul.f32 %v158_v17, %v3582_v8  ;;  %v263_v17 = vld [vmem:[#allocation3 + $0x90] sm:$0xff] }
 0x116   :  { %v163_v19 = vadd.f32 1e-05, %v161_v18  ;;  %v264_v18 = vld [vmem:[#allocation3 + $0x98] sm:$0xff] }
 0x118   :  { %3173 = vrsqrt.f32 %v163_v19  ;;  %vm171_vm2 = vweird.f32 %v163_v19 }
 0x11b   :  { %v160_v20 = vpop.xlane.xlu1 %159 }
 0x11c   :  { %v162_v21 = vmul.f32 %v160_v20, %v3582_v8  ;;  %v260_v20 = vld [vmem:[#allocation3 + $0x78] sm:$0xff] }
 0x11e   :  { %v3174_v22 = vpop.eup %3173  ;;  %v164_v23 = vadd.f32 1e-05, %v162_v21  ;;  %v261_v21 = vld [vmem:[#allocation3 + $0x80] sm:$0xff] }
 0x11f   :  { %v166_v24 = vmul.f32 %v3174_v22, %v163_v19  ;;  %vm172_vm1 = vweird.f32 %v3174_v22  ;;  %v265_v19 = vld [vmem:[#allocation3 + $0xa0] sm:$0xff] }
 0x120   :  { %3175 = vrsqrt.f32 %v164_v23  ;;  %vm173_vm3 = vmor %vm171_vm2, %vm172_vm1  ;;  %vm181_vm5 = vweird.f32 %v164_v23  ;;  %356 = vmatpush.msra.mxu2 %v265_v19  ;;  %vm780_vm1 = vcmask 1048320  }
 0x121   :  { %v167_v25 = vmul.f32 %v3174_v22, %v166_v24  ;;  %v258_v24 = vld [vmem:[#allocation3 + $0x68] sm:$0xff] }
 0x123   :  { %v168_v26 = vmul.f32 0.5, %v167_v25  ;;  %v259_v25 = vld [vmem:[#allocation3 + $0x70] sm:$0xff] }
 0x125   :  { %v169_v27 = vsub.f32 1.5, %v168_v26  ;;  %v254_v26 = vld [vmem:[#allocation3 + $0x48] sm:$0xff] }
 0x126   :  { %v3176_v28 = vpop.eup %3175 }
 0x127   :  { %v170_v29 = vmul.f32 %v3174_v22, %v169_v27  ;;  %v176_v30 = vmul.f32 %v3176_v28, %v164_v23  ;;  %vm182_vm4 = vweird.f32 %v3176_v28  ;;  %v257_v23 = vld [vmem:[#allocation3 + $0x60] sm:$0xff]  ;;  %v255_v27 = vld [vmem:[#allocation3 + $0x50] sm:$0xff] }
 0x128   :  { %vm183_vm6 = vmor %vm181_vm5, %vm182_vm4 }
 0x129   :  { %v174_v32 = vsel %vm173_vm3, %v3174_v22, %v170_v29  ;;  %v177_v33 = vmul.f32 %v3176_v28, %v176_v30  ;;  %v262_v22 = vld [vmem:[#allocation3 + $0x88] sm:$0xff]  ;;  %v251_v29 = vld [vmem:[#allocation3 + $0x30] sm:$0xff]  ;;  %v252_v30 = vld [vmem:[#allocation3 + $0x38] sm:$0xff] }
 0x12a   :  { %v185_v34 = vmul.f32 %v174_v32, %v153_v11  ;;  %v269_v11 = vld [vmem:[#allocation3 + $0xc0] sm:$0xff]  ;;  %357 = vmatpush.msra.mxu2 %v262_v22  ;;  %v248_v32 = vld [vmem:[#allocation3 + $0x18] sm:$0xff]  ;;  %v3636_v22 = vld [vmem:[%s4210_s14] sm:$0xff] }
 0x12b   :  { %v178_v36 = vmul.f32 0.5, %v177_v33  ;;  %308 = vmatpush.msra.mxu0 %v269_v11  ;;  %v249_v33 = vld [vmem:[#allocation3 + $0x20] sm:$0xff] }
 0x12c   :  { %v190_v37 = vmul.f32 %v3148_v31, %v185_v34  ;;  %358 = vmatpush.msra.mxu2 %v259_v25  ;;  %v250_v34 = vld [vmem:[#allocation3 + $0x28] sm:$0xff] }
 0x12d   :  { %v179_v38 = vsub.f32 1.5, %v178_v36  ;;  %309 = vmatpush.msra.mxu0 %v266_v14  ;;  %v246_v36 = vld [vmem:[#allocation3 + $0x8] sm:$0xff]  ;;  %v295_v14 = vperm.slane %v293_v5, 0 }
 0x12e   :  { %v3594_v39 = vadd.f32 %v3149_v35, %v190_v37  ;;  %v247_v37 = vld [vmem:[#allocation3 + $0x10] sm:$0xff] }
 0x12f   :  { %v180_v40 = vmul.f32 %v3176_v28, %v179_v38  ;;  %310 = vmatpush.msra.mxu0 %v263_v17 }
 0x130   :  { %199 = vadd.xlane.f32.xlu2 %v3594_v39 }
 0x131   :  { %v184_v41 = vsel %vm183_vm6, %v3176_v28, %v180_v40  ;;  %311 = vmatpush.msra.mxu0 %v260_v20  ;;  %v256_v28 = vld [vmem:[#allocation3 + $0x58] sm:$0xff] }
 0x132   :  { %v186_v42 = vmul.f32 %v184_v41, %v154_v15  ;;  %v267_v15 = vld [vmem:[#allocation3 + $0xb0] sm:$0xff]  ;;  %359 = vmatpush.msra.mxu2 %v256_v28 }
 0x133   :  { %332 = vmatpush.msra.mxu1 %v267_v15  ;;  %312 = vmatpush.msra.mxu0 %v257_v23 }
 0x134   :  { %v191_v43 = vmul.f32 %v3148_v31, %v186_v42  ;;  %v253_v31 = vld [vmem:[#allocation3 + $0x40] sm:$0xff] }
 0x135   :  { %333 = vmatpush.msra.mxu1 %v264_v18  ;;  %313 = vmatpush.msra.mxu0 %v254_v26  ;;  %v3643_v26 = vld [vmem:[%s4210_s14 + $0x8] sm:$0xff] }
 0x136   :  { %v3597_v44 = vadd.f32 %v3149_v35, %v191_v43  ;;  %360 = vmatpush.msra.mxu2 %v253_v31  ;;  %v245_v35 = vld [vmem:[#allocation3] sm:$0xff] }
 0x137   :  { %334 = vmatpush.msra.mxu1 %v261_v21  ;;  %314 = vmatpush.msra.mxu0 %v251_v29 }
 0x138   :  { %201 = vadd.xlane.f32.xlu2 %v3597_v44  ;;  %361 = vmatpush.msra.mxu2 %v250_v34 }
 0x139   :  { %335 = vmatpush.msra.mxu1 %v258_v24  ;;  %315 = vmatpush.msra.mxu0 %v248_v32 }
 0x13a   :  { %362 = vmatpush.msra.mxu2 %v247_v37 }
 0x13b   :  { %336 = vmatpush.msra.mxu1 %v255_v27  ;;  %316 = vmatpush.msra.mxu0 %v245_v35 }
 0x13d   :  { %337 = vmatpush.msra.mxu1 %v252_v30 }
 0x13f   :  { %338 = vmatpush.msra.mxu1 %v249_v33 }
 0x141   :  { %339 = vmatpush.msra.mxu1 %v246_v36 }
 0x1a3   :  { %v200_v51 = vpop.xlane.xlu2 %199 }
 0x1a4   :  { %v203_v52 = vmul.f32 %v200_v51, %v3582_v8 }
 0x1a6   :  { %v3602_v53 = vsub.f32 %v3594_v39, %v203_v52 }
 0x1a8   :  { %v207_v54 = vmul.f32 %v3602_v53, %v3602_v53 }
 0x1aa   :  { %209 = vadd.xlane.f32.xlu0 %v207_v54 }
 0x1ab   :  { %v202_v55 = vpop.xlane.xlu2 %201 }
 0x1ac   :  { %v204_v56 = vmul.f32 %v202_v55, %v3582_v8  ;;  %v3150_v55 = vld [vmem:[%s4208_s30] ss:$0 sm:$0xff] }
 0x1ae   :  { %v3608_v57 = vsub.f32 %v3597_v44, %v204_v56 }
 0x1b0   :  { %v208_v58 = vmul.f32 %v3608_v57, %v3608_v57 }
 0x1b2   :  { %211 = vadd.xlane.f32.xlu1 %v208_v58 }
 0x21d   :  { %v210_v38 = vpop.xlane.xlu0 %209 }
 0x21e   :  { %v213_v40 = vmul.f32 %v210_v38, %v3582_v8 }
 0x220   :  { %v215_v41 = vadd.f32 1e-05, %v213_v40 }
 0x222   :  { %3177 = vrsqrt.f32 %v215_v41  ;;  %vm223_vm8 = vweird.f32 %v215_v41 }
 0x225   :  { %v212_v42 = vpop.xlane.xlu1 %211 }
 0x226   :  { %v214_v43 = vmul.f32 %v212_v42, %v3582_v8 }
 0x228   :  { %v3178_v45 = vpop.eup %3177  ;;  %v216_v46 = vadd.f32 1e-05, %v214_v43 }
 0x229   :  { %v218_v47 = vmul.f32 %v3178_v45, %v215_v41  ;;  %vm224_vm7 = vweird.f32 %v3178_v45 }
 0x22a   :  { %3179 = vrsqrt.f32 %v216_v46  ;;  %vm225_vm9 = vmor %vm223_vm8, %vm224_vm7  ;;  %vm233_vm11 = vweird.f32 %v216_v46 }
 0x22b   :  { %v219_v48 = vmul.f32 %v3178_v45, %v218_v47 }
 0x22d   :  { %v220_v49 = vmul.f32 0.5, %v219_v48 }
 0x22f   :  { %v221_v50 = vsub.f32 1.5, %v220_v49 }
 0x230   :  { %v3180_v51 = vpop.eup %3179 }
 0x231   :  { %v222_v52 = vmul.f32 %v3178_v45, %v221_v50  ;;  %v228_v54 = vmul.f32 %v3180_v51, %v216_v46  ;;  %vm234_vm10 = vweird.f32 %v3180_v51 }
 0x232   :  { %vm235_vm12 = vmor %vm233_vm11, %vm234_vm10 }
 0x233   :  { %v226_v56 = vsel %vm225_vm9, %v3178_v45, %v222_v52  ;;  %v229_v58 = vmul.f32 %v3180_v51, %v228_v54 }
 0x234   :  { %v237_v59 = vmul.f32 %v226_v56, %v3602_v53 }
 0x235   :  { %v230_v61 = vmul.f32 0.5, %v229_v58 }
 0x236   :  { %v240_v62 = vmul.f32 %v3150_v55, %v237_v59 }
 0x237   :  { %v231_v63 = vsub.f32 1.5, %v230_v61 }
 0x238   :  { %v243_v0 = vadd.f32 %v3151_v60, %v240_v62 }
 0x239   :  { %v232_v1 = vmul.f32 %v3180_v51, %v231_v63 }
 0x23a   :  { %317 = vmatmul.f32.vlgmr.msra.gmra.mxu0 %v243_v0  ;;  %340 = vmatmul.f32.vlgmr.msra.gmra.mxu1 %v243_v0 }
 0x23b   :  { %v236_v2 = vsel %vm235_vm12, %v3180_v51, %v232_v1  ;;  %363 = vmatmul.f32.vlgmr.msra.gmra.mxu2 %v243_v0 }
 0x23c   :  { %v238_v3 = vmul.f32 %v236_v2, %v3608_v57 }
 0x23e   :  { %v241_v4 = vmul.f32 %v3150_v55, %v238_v3 }
 0x240   :  { %v244_v53 = vadd.f32 %v3151_v60, %v241_v4 }
 0x242   :  { %320 = vmatmul.f32.gmra.mxu0 %v244_v53  ;;  %343 = vmatmul.f32.gmra.mxu1 %v244_v53 }
 0x243   :  { %366 = vmatmul.f32.gmra.mxu2 %v244_v53 }
 0x2b7   :  { %v341_v7 = vpop.f32.mrf.mxu1  ;;  %v318_v57 = vpop.f32.mrf.mxu0 }
 0x2b8   :  { %v342_v9 = vadd.f32 %v341_v7, %v296_v6  ;;  %v319_v18 = vadd.f32 %v318_v57, %v295_v14 }
 0x2ba   :  { %464 = vrot.lane.b32.xlu1 %v342_v9, %s3446_s25 }
 0x2be   :  { %v364_v10 = vpop.f32.mrf.mxu2 }
 0x2bf   :  { %v344_v11 = vpop.f32.mrf.mxu1  ;;  %v365_v16 = vadd.f32 %v364_v10, %v297_v13  ;;  %v321_v20 = vpop.f32.mrf.mxu0 }
 0x2c0   :  { %v345_v12 = vadd.f32 %v344_v11, %v296_v6  ;;  %v322_v21 = vadd.f32 %v321_v20, %v295_v14 }
 0x2c2   :  { %3009 = vmatpush.xpose.msk.msra.mxu3 %vm370_vm13, %v345_v12  ;;  %682 = vrot.lane.b32.xlu1 %v345_v12, %s3447_s12 }
 0x2c6   :  { %v367_v15 = vpop.f32.mrf.mxu2  ;;  %3010 = vmatpush.xpose.msk.msra.mxu3 %vm370_vm13, %v342_v9 }
 0x2c7   :  { %v368_v17 = vadd.f32 %v367_v15, %v297_v13 }
 0x2c9   :  { %v3629_v19 = vpack.i.bf16 %v365_v16, %v368_v17  ;;  %3011 = vmatmul.msk.f32.vlgmr.msra.gmra.mxu3 %vm370_vm13, %v319_v18 }
 0x2ca   :  { %449 = vmatpush.msrb.mxu3 %v368_v17 }
 0x2cc   :  { %450 = vmatpush.msrb.mxu3 %v365_v16 }
 0x2d1   :  { %3012 = vmatmul.msk.f32.gmra.mxu3 %vm370_vm13, %v322_v21 }
 0x32c   :  { %v465_v45 = vpop.permute.xlu1 %464 }
 0x334   :  { %v683_v48 = vpop.permute.xlu1 %682 }
 0x34c   :  { %v400_v23 = vpop.f32.mrf.mxu3 }
 0x34d   :  { %v401_v24 = vadd.f32 %v400_v23, %v3636_v22 }
 0x34f   :  { %v407_v25 = vsel %vm406_vm14, %v401_v24, -inf }
 0x350   :  { %408 = vmax.xlane.f32.xlu2 %v407_v25 }
 0x354   :  { %v403_v27 = vpop.f32.mrf.mxu3 }
 0x355   :  { %v404_v28 = vadd.f32 %v403_v27, %v3643_v26 }
 0x357   :  { %v410_v29 = vsel %vm406_vm14, %v404_v28, -inf }
 0x358   :  { %411 = vmax.xlane.f32.xlu0 %v410_v29 }
 0x368   :  { %460 = vrot.lane.b32.xlu2 %v319_v18, %s3446_s25 }
 0x36c   :  { %466 = vrot.lane.b32.xlu0 %v345_v12, %s3446_s25 }
 0x370   :  { %575 = vrot.lane.b32.xlu2 %v345_v12, %s3448_s22 }
 0x374   :  { %462 = vrot.lane.b32.xlu0 %v322_v21, %s3446_s25 }
 0x378   :  { %680 = vrot.lane.b32.xlu2 %v342_v9, %s3447_s12 }
 0x37c   :  { %573 = vrot.lane.b32.xlu0 %v342_v9, %s3448_s22 }
 0x384   :  { %676 = vrot.lane.b32.xlu0 %v319_v18, %s3447_s12 }
 0x3c3   :  { %v409_v30 = vpop.xlane.xlu2 %408 }
 0x3c4   :  { %v413_v31 = vsub.f32 %v401_v24, %v409_v30 }
 0x3c6   :  { %v415_v32 = vmul.f32 1.442695, %v413_v31 }
 0x3c8   :  { %3181 = vpow2.f32 %v415_v32 }
 0x3cb   :  { %v412_v33 = vpop.xlane.xlu0 %411  ;;  %v461_v34 = vpop.permute.xlu2 %460 }
 0x3cc   :  { %v414_v35 = vsub.f32 %v404_v28, %v412_v33 }
 0x3ce   :  { %v3182_v36 = vpop.eup %3181  ;;  %v417_v37 = vmul.f32 1.442695, %v414_v35 }
 0x3cf   :  { %v419_v38 = vsel %vm406_vm14, %v3182_v36, 0.0 }
 0x3d0   :  { %3183 = vpow2.f32 %v417_v37  ;;  %420 = vadd.xlane.f32.xlu1 %v419_v38 }
 0x3d3   :  { %v576_v40 = vpop.permute.xlu2 %575 }
 0x3d4   :  { %3021 = vmatpush.xpose.msk.msrb.mxu1 %vm370_vm13, %v576_v40 }
 0x3d6   :  { %v3184_v41 = vpop.eup %3183 }
 0x3d7   :  { %v422_v42 = vsel %vm406_vm14, %v3184_v41, 0.0 }
 0x3d8   :  { %423 = vadd.xlane.f32.xlu2 %v422_v42 }
 0x3db   :  { %v681_v49 = vpop.permute.xlu2 %680 }
 0x3de   :  { %v467_v43 = vpop.permute.xlu0 %466 }
 0x3df   :  { %3015 = vmatpush.xpose.msk.msra.mxu3 %vm370_vm13, %v467_v43 }
 0x3e3   :  { %3016 = vmatpush.xpose.msk.msra.mxu3 %vm370_vm13, %v465_v45 }
 0x3e6   :  { %v463_v46 = vpop.permute.xlu0 %462 }
 0x3e9   :  { %569 = vrot.lane.b32.xlu1 %v319_v18, %s3448_s22 }
 0x3ee   :  { %v574_v47 = vpop.permute.xlu0 %573 }
 0x3ef   :  { %3022 = vmatpush.xpose.msk.msrb.mxu1 %vm370_vm13, %v574_v47 }
 0x3f0   :  { %571 = vrot.lane.b32.xlu2 %v322_v21, %s3448_s22 }
 0x3f1   :  { %678 = vrot.lane.b32.xlu1 %v322_v21, %s3447_s12 }
 0x3f6   :  { %v677_v60 = vpop.permute.xlu0 %676 }
 0x443   :  { %v421_v50 = vpop.xlane.xlu1 %420 }
 0x444   :  { %3185 = vrcp.f32 %v421_v50 }
 0x44a   :  { %v3186_v51 = vpop.eup %3185 }
 0x44b   :  { %v424_v52 = vpop.xlane.xlu2 %423  ;;  %v427_v54 = vmul.f32 %v3186_v51, %v3182_v36 }
 0x44c   :  { %3187 = vrcp.f32 %v424_v52 }
 0x44d   :  { %3013 = vmatmul.msk.f32.vlgmr.msrb.gmra.mxu3 %vm406_vm14, %v427_v54 }
 0x44e   :  { %3027 = vmatpush.xpose.msk.msrb.mxu3 %vm370_vm13, %v683_v48 }
 0x452   :  { %v3188_v55 = vpop.eup %3187  ;;  %3028 = vmatpush.xpose.msk.msrb.mxu3 %vm370_vm13, %v681_v49 }
 0x453   :  { %v428_v56 = vmul.f32 %v3188_v55, %v3184_v41  ;;  %v572_v59 = vpop.permute.xlu2 %571 }
 0x455   :  { %3014 = vmatmul.msk.f32.gmra.mxu3 %vm406_vm14, %v428_v56 }
 0x45b   :  { %v570_v58 = vpop.permute.xlu1 %569 }
 0x45c   :  { %3023 = vmatmul.msk.f32.vlgmr.msrb.gmra.mxu1 %vm370_vm13, %v570_v58 }
 0x45d   :  { %3017 = vmatmul.msk.f32.vlgmr.msra.gmra.mxu3 %vm370_vm13, %v461_v34 }
 0x463   :  { %v679_v61 = vpop.permute.xlu1 %678 }
 0x464   :  { %3024 = vmatmul.msk.f32.gmra.mxu1 %vm370_vm13, %v572_v59 }
 0x465   :  { %3018 = vmatmul.msk.f32.gmra.mxu3 %vm370_vm13, %v463_v46 }
 0x46d   :  { %3029 = vmatmul.msk.f32.vlgmr.msrb.gmra.mxu3 %vm370_vm13, %v677_v60 }
 0x475   :  { %3030 = vmatmul.msk.f32.gmra.mxu3 %vm370_vm13, %v679_v61 }
 0x4d0   :  { %v452_v62 = vpop.f32.mrf.mxu3 }
 0x4d1   :  { %458 = vst.msk [vmem:[#allocation2] sm:$0xff] %vm370_vm13, %v452_v62 }
 0x4d8   :  { %v455_v63 = vpop.f32.mrf.mxu3 }
 0x4d9   :  { %459 = vst.msk [vmem:[#allocation2 + $0x8] sm:$0xff] %vm370_vm13, %v455_v63  ;;  %v602_v0 = vpop.f32.mrf.mxu1 }
 0x4da   :  { %v603_v1 = vadd.f32 %v602_v0, %v3636_v22 }
 0x4dc   :  { %v608_v2 = vsel %vm406_vm14, %v603_v1, -inf }
 0x4dd   :  { %609 = vmax.xlane.f32.xlu1 %v608_v2 }
 0x4e0   :  { %v493_v3 = vpop.f32.mrf.mxu3 }
 0x4e1   :  { %v494_v4 = vadd.f32 %v493_v3, %v3636_v22  ;;  %v605_v9 = vpop.f32.mrf.mxu1 }
 0x4e2   :  { %v606_v10 = vadd.f32 %v605_v9, %v3643_v26 }
 0x4e3   :  { %v499_v53 = vsel %vm406_vm14, %v494_v4, -inf }
 0x4e4   :  { %500 = vmax.xlane.f32.xlu0 %v499_v53  ;;  %v611_v13 = vsel %vm406_vm14, %v606_v10, -inf }
 0x4e8   :  { %v496_v5 = vpop.f32.mrf.mxu3 }
 0x4e9   :  { %v497_v6 = vadd.f32 %v496_v5, %v3643_v26 }
 0x4eb   :  { %v502_v7 = vsel %vm406_vm14, %v497_v6, -inf }
 0x4ec   :  { %503 = vmax.xlane.f32.xlu2 %v502_v7 }
 0x4f0   :  { %v709_v11 = vpop.f32.mrf.mxu3 }
 0x4f1   :  { %v710_v12 = vadd.f32 %v709_v11, %v3636_v22 }
 0x4f3   :  { %v715_v57 = vsel %vm406_vm14, %v710_v12, -inf }
 0x4f4   :  { %716 = vmax.xlane.f32.xlu0 %v715_v57  ;;  %612 = vmax.xlane.f32.xlu2 %v611_v13 }
 0x4f8   :  { %v712_v14 = vpop.f32.mrf.mxu3 }
 0x4f9   :  { %v713_v15 = vadd.f32 %v712_v14, %v3643_v26 }
 0x4fb   :  { %v718_v16 = vsel %vm406_vm14, %v713_v15, -inf }
 0x4fc   :  { %719 = vmax.xlane.f32.xlu1 %v718_v16 }
 0x50c   :  { %3104 = vrot.lane.b32.xlu2 %v3629_v19, %s3446_s25 }
 0x514   :  { %3114 = vrot.lane.b32.xlu2 %v3629_v19, %s3447_s12 }
 0x550   :  { %v610_v17 = vpop.xlane.xlu1 %609 }
 0x551   :  { %v614_v18 = vsub.f32 %v603_v1, %v610_v17 }
 0x553   :  { %v616_v20 = vmul.f32 1.442695, %v614_v18 }
 0x555   :  { %3189 = vpow2.f32 %v616_v20 }
 0x557   :  { %v501_v21 = vpop.xlane.xlu0 %500 }
 0x558   :  { %v505_v22 = vsub.f32 %v494_v4, %v501_v21  ;;  %v800_v21 = vld [vmem:[#allocation5 + $0x78] sm:$0xff] }
 0x559   :  { %803 = vmatpush.msra.mxu1 %v800_v21  ;;  %v883_v21 = vld [vmem:[#allocation7 + $0x38] sm:$0xff] }
 0x55a   :  { %v507_v23 = vmul.f32 1.442695, %v505_v22  ;;  %v799_v22 = vld [vmem:[#allocation5 + $0x70] sm:$0xff] }
 0x55b   :  { %v3691_v24 = vpop.eup %3189  ;;  %804 = vmatpush.msra.mxu1 %v799_v22  ;;  %v880_v22 = vld [vmem:[#allocation7 + $0x20] sm:$0xff] }
 0x55c   :  { %3191 = vpow2.f32 %v507_v23  ;;  %v620_v25 = vsel %vm406_vm14, %v3691_v24, 0.0  ;;  %v798_v23 = vld [vmem:[#allocation5 + $0x68] sm:$0xff] }
 0x55d   :  { %621 = vadd.xlane.f32.xlu0 %v620_v25  ;;  %805 = vmatpush.msra.mxu1 %v798_v23  ;;  %v796_v25 = vld [vmem:[#allocation5 + $0x58] sm:$0xff]  ;;  %v881_v23 = vld [vmem:[#allocation7 + $0x28] sm:$0xff] }
 0x55f   :  { %v504_v26 = vpop.xlane.xlu2 %503 }
 0x560   :  { %v506_v27 = vsub.f32 %v497_v6, %v504_v26 }
 0x562   :  { %v3192_v28 = vpop.eup %3191  ;;  %v509_v29 = vmul.f32 1.442695, %v506_v27  ;;  %v795_v27 = vld [vmem:[#allocation5 + $0x50] sm:$0xff] }
 0x563   :  { %v511_v30 = vsel %vm406_vm14, %v3192_v28, 0.0 }
 0x564   :  { %3193 = vpow2.f32 %v509_v29  ;;  %v793_v29 = vld [vmem:[#allocation5 + $0x40] sm:$0xff] }
 0x565   :  { %512 = vadd.xlane.f32.xlu0 %v511_v30  ;;  %v792_v30 = vld [vmem:[#allocation5 + $0x38] sm:$0xff] }
 0x567   :  { %v613_v31 = vpop.xlane.xlu2 %612  ;;  %v717_v32 = vpop.xlane.xlu0 %716 }
 0x568   :  { %v615_v33 = vsub.f32 %v606_v10, %v613_v31  ;;  %v721_v36 = vsub.f32 %v710_v12, %v717_v32  ;;  %v791_v31 = vld [vmem:[#allocation5 + $0x30] sm:$0xff]  ;;  %v790_v32 = vld [vmem:[#allocation5 + $0x28] sm:$0xff] }
 0x56a   :  { %v3194_v34 = vpop.eup %3193  ;;  %v618_v35 = vmul.f32 1.442695, %v615_v33  ;;  %v723_v38 = vmul.f32 1.442695, %v721_v36  ;;  %v789_v33 = vld [vmem:[#allocation5 + $0x20] sm:$0xff]  ;;  %v786_v36 = vld [vmem:[#allocation5 + $0x8] sm:$0xff] }
 0x56b   :  { %v514_v37 = vsel %vm406_vm14, %v3194_v34, 0.0 }
 0x56c   :  { %515 = vadd.xlane.f32.xlu1 %v514_v37  ;;  %3195 = vpow2.f32 %v618_v35  ;;  %v787_v35 = vld [vmem:[#allocation5 + $0x10] sm:$0xff]  ;;  %v785_v37 = vld [vmem:[#allocation5] sm:$0xff] }
 0x56d   :  { %3197 = vpow2.f32 %v723_v38 }
 0x56f   :  { %v3105_v40 = vpop.permute.xlu2 %3104  ;;  %v720_v41 = vpop.xlane.xlu1 %719 }
 0x570   :  { %v3106_v42 = vunpack.i.l.bf16 %v3105_v40  ;;  %v3107_v43 = vunpack.i.h.bf16 %v3105_v40  ;;  %v722_v46 = vsub.f32 %v713_v15, %v720_v41 }
 0x572   :  { %549 = vmatpush.msrb.mxu0 %v3106_v42  ;;  %v3196_v45 = vpop.eup %3195  ;;  %v725_v48 = vmul.f32 1.442695, %v722_v46  ;;  %v3152_v46 = vld [vmem:[%s4176_s9] ss:$0 sm:$0xff] }
 0x573   :  { %v623_v47 = vsel %vm406_vm14, %v3196_v45, 0.0  ;;  %v3198_v51 = vpop.eup %3197 }
 0x574   :  { %550 = vmatpush.msrb.mxu0 %v3107_v43  ;;  %624 = vadd.xlane.f32.xlu0 %v623_v47  ;;  %3199 = vpow2.f32 %v725_v48  ;;  %v727_v54 = vsel %vm406_vm14, %v3198_v51, 0.0 }
 0x577   :  { %v3115_v49 = vpop.permute.xlu2 %3114 }
 0x578   :  { %v3116_v50 = vunpack.i.l.bf16 %v3115_v49  ;;  %v3117_v52 = vunpack.i.h.bf16 %v3115_v49 }
 0x57a   :  { %763 = vmatpush.msra.mxu0 %v3116_v50  ;;  %v3200_v55 = vpop.eup %3199 }
 0x57b   :  { %v730_v56 = vsel %vm406_vm14, %v3200_v55, 0.0 }
 0x57c   :  { %764 = vmatpush.msra.mxu0 %v3117_v52  ;;  %728 = vadd.xlane.f32.xlu0 %v727_v54  ;;  %v906_v54 = vld [vmem:[#allocation7 + $0xf0] sm:$0xff] }
 0x584   :  { %731 = vadd.xlane.f32.xlu0 %v730_v56  ;;  %v904_v56 = vld [vmem:[#allocation7 + $0xe0] sm:$0xff] }
 0x585   :  { %3109 = vrot.lane.b32.xlu1 %v3629_v19, %s3448_s22 }
 0x5d0   :  { %v622_v58 = vpop.xlane.xlu0 %621 }
 0x5d8   :  { %v513_v59 = vpop.xlane.xlu0 %512 }
 0x5d9   :  { %3201 = vrcp.f32 %v513_v59 }
 0x5df   :  { %v3202_v60 = vpop.eup %3201  ;;  %v516_v61 = vpop.xlane.xlu1 %515 }
 0x5e0   :  { %3203 = vrcp.f32 %v516_v61  ;;  %v519_v62 = vmul.f32 %v3202_v60, %v3192_v28  ;;  %v794_v28 = vld [vmem:[#allocation5 + $0x48] sm:$0xff] }
 0x5e2   :  { %3019 = vmatmul.msk.f32.vlgmr.msrb.gmra.mxu0 %vm406_vm14, %v519_v62 }
 0x5e6   :  { %v3204_v63 = vpop.eup %3203 }
 0x5e7   :  { %v520_v0 = vmul.f32 %v3204_v63, %v3194_v34  ;;  %v625_v1 = vpop.xlane.xlu0 %624  ;;  %v788_v34 = vld [vmem:[#allocation5 + $0x18] sm:$0xff] }
 0x5ea   :  { %3020 = vmatmul.msk.f32.gmra.mxu0 %vm406_vm14, %v520_v0 }
 0x5ef   :  { %v729_v2 = vpop.xlane.xlu0 %728 }
 0x5f0   :  { %3205 = vrcp.f32 %v729_v2  ;;  %v903_v2 = vld [vmem:[#allocation7 + $0xd8] sm:$0xff] }
 0x5f1   :  { %3207 = vrcp.f32 %v622_v58  ;;  %v905_v58 = vld [vmem:[#allocation7 + $0xe8] sm:$0xff] }
 0x5f6   :  { %v3206_v3 = vpop.eup %3205 }
 0x5f7   :  { %v3110_v4 = vpop.permute.xlu1 %3109  ;;  %v3208_v19 = vpop.eup %3207  ;;  %v735_v53 = vmul.f32 %v3206_v3, %v3198_v51  ;;  %v900_v3 = vld [vmem:[#allocation7 + $0xc0] sm:$0xff] }
 0x5f8   :  { %v732_v5 = vpop.xlane.xlu0 %731  ;;  %v3111_v6 = vunpack.i.l.bf16 %v3110_v4  ;;  %v3112_v7 = vunpack.i.h.bf16 %v3110_v4  ;;  %v628_v9 = vmul.f32 %v3208_v19, %v3691_v24  ;;  %v797_v24 = vld [vmem:[#allocation5 + $0x60] sm:$0xff]  ;;  %v901_v4 = vld [vmem:[#allocation7 + $0xc8] sm:$0xff]  ;;  %v898_v19 = vld [vmem:[#allocation7 + $0xb0] sm:$0xff] }
 0x5f9   :  { %3209 = vrcp.f32 %v732_v5  ;;  %3031 = vmatmul.msk.f32.vlgmr.msra.gmra.mxu0 %vm406_vm14, %v735_v53  ;;  %806 = vmatpush.msra.mxu1 %v797_v24  ;;  %v899_v53 = vld [vmem:[#allocation7 + $0xb8] sm:$0xff]  ;;  %v896_v5 = vld [vmem:[#allocation7 + $0xa0] sm:$0xff]  ;;  %v878_v24 = vld [vmem:[#allocation7 + $0x10] sm:$0xff] }
 0x5fa   :  { %3211 = vrcp.f32 %v625_v1  ;;  %656 = vmatpush.msrb.mxu2 %v3111_v6  ;;  %v902_v1 = vld [vmem:[#allocation7 + $0xd0] sm:$0xff]  ;;  %v897_v6 = vld [vmem:[#allocation7 + $0xa8] sm:$0xff] }
 0x5fb   :  { %807 = vmatpush.msra.mxu1 %v796_v25  ;;  %v879_v25 = vld [vmem:[#allocation7 + $0x18] sm:$0xff] }
 0x5fc   :  { %657 = vmatpush.msrb.mxu2 %v3112_v7  ;;  %v894_v7 = vld [vmem:[#allocation7 + $0x90] sm:$0xff] }
 0x5fd   :  { %3025 = vmatmul.msk.f32.vlgmr.msrb.gmra.mxu2 %vm406_vm14, %v628_v9  ;;  %808 = vmatpush.msra.mxu1 %v795_v27  ;;  %v895_v9 = vld [vmem:[#allocation7 + $0x98] sm:$0xff]  ;;  %v877_v27 = vld [vmem:[#allocation7 + $0x8] sm:$0xff] }
 0x5fe   :  { %914 = vmatpush.msra.mxu2 %v906_v54 }
 0x5ff   :  { %v3210_v10 = vpop.eup %3209  ;;  %809 = vmatpush.msra.mxu1 %v794_v28 }
 0x600   :  { %v3212_v11 = vpop.eup %3211  ;;  %v736_v12 = vmul.f32 %v3210_v10, %v3200_v55  ;;  %v907_v55 = vld [vmem:[#allocation7 + $0xf8] sm:$0xff]  ;;  %915 = vmatpush.msra.mxu2 %v904_v56  ;;  %v892_v10 = vld [vmem:[#allocation7 + $0x80] sm:$0xff] }
 0x601   :  { %v629_v57 = vmul.f32 %v3212_v11, %v3196_v45  ;;  %810 = vmatpush.msra.mxu1 %v793_v29  ;;  %937 = vmatpush.msra.mxu3 %v907_v55  ;;  %v893_v11 = vld [vmem:[#allocation7 + $0x88] sm:$0xff] }
 0x602   :  { %3032 = vmatmul.msk.f32.gmra.mxu0 %vm406_vm14, %v736_v12  ;;  %916 = vmatpush.msra.mxu2 %v902_v1  ;;  %v890_v12 = vld [vmem:[#allocation7 + $0x70] sm:$0xff] }
 0x603   :  { %811 = vmatpush.msra.mxu1 %v792_v30  ;;  %938 = vmatpush.msra.mxu3 %v905_v58  ;;  %v3154_v58 = vld [vmem:[%s4178_s11] ss:$0 sm:$0xff] }
 0x604   :  { %917 = vmatpush.msra.mxu2 %v900_v3 }
 0x605   :  { %3026 = vmatmul.msk.f32.gmra.mxu2 %vm406_vm14, %v629_v57  ;;  %812 = vmatpush.msra.mxu1 %v791_v31  ;;  %v891_v57 = vld [vmem:[#allocation7 + $0x78] sm:$0xff] }
 0x606   :  { %939 = vmatpush.msra.mxu3 %v903_v2  ;;  %918 = vmatpush.msra.mxu2 %v898_v19  ;;  %v1011_v31 = vld [vmem:[#allocation8 + $0x78] sm:$0xff] }
 0x607   :  { %813 = vmatpush.msra.mxu1 %v790_v32  ;;  %v1027_v32 = vld [vmem:[#allocation8 + $0xf8] sm:$0xff]  ;;  %1030 = vmatpush.msrb.mxu0 %v1011_v31 }
 0x608   :  { %940 = vmatpush.msra.mxu3 %v901_v4  ;;  %919 = vmatpush.msra.mxu2 %v896_v5  ;;  %v1024_v4 = vld [vmem:[#allocation8 + $0xe0] sm:$0xff]  ;;  %v1007_v19 = vld [vmem:[#allocation8 + $0x58] sm:$0xff]  ;;  %v1006_v5 = vld [vmem:[#allocation8 + $0x50] sm:$0xff] }
 0x609   :  { %814 = vmatpush.msra.mxu1 %v789_v33  ;;  %v1010_v33 = vld [vmem:[#allocation8 + $0x70] sm:$0xff] }
 0x60a   :  { %941 = vmatpush.msra.mxu3 %v899_v53  ;;  %920 = vmatpush.msra.mxu2 %v894_v7  ;;  %v1023_v53 = vld [vmem:[#allocation8 + $0xd8] sm:$0xff]  ;;  %v1005_v7 = vld [vmem:[#allocation8 + $0x48] sm:$0xff] }
 0x60b   :  { %815 = vmatpush.msra.mxu1 %v788_v34  ;;  %v1026_v34 = vld [vmem:[#allocation8 + $0xf0] sm:$0xff]  ;;  %1031 = vmatpush.msrb.mxu0 %v1010_v33 }
 0x60c   :  { %942 = vmatpush.msra.mxu3 %v897_v6  ;;  %921 = vmatpush.msra.mxu2 %v892_v10  ;;  %v1022_v6 = vld [vmem:[#allocation8 + $0xd0] sm:$0xff]  ;;  %v1020_v10 = vld [vmem:[#allocation8 + $0xc0] sm:$0xff] }
 0x60d   :  { %816 = vmatpush.msra.mxu1 %v787_v35  ;;  %v1009_v35 = vld [vmem:[#allocation8 + $0x68] sm:$0xff] }
 0x60e   :  { %943 = vmatpush.msra.mxu3 %v895_v9  ;;  %922 = vmatpush.msra.mxu2 %v890_v12  ;;  %v1021_v9 = vld [vmem:[#allocation8 + $0xc8] sm:$0xff]  ;;  %v1019_v12 = vld [vmem:[#allocation8 + $0xb8] sm:$0xff] }
 0x60f   :  { %817 = vmatpush.msra.mxu1 %v786_v36  ;;  %v1025_v36 = vld [vmem:[#allocation8 + $0xe8] sm:$0xff]  ;;  %1032 = vmatpush.msrb.mxu0 %v1009_v35 }
 0x610   :  { %944 = vmatpush.msra.mxu3 %v893_v11  ;;  %v1003_v11 = vld [vmem:[#allocation8 + $0x38] sm:$0xff] }
 0x611   :  { %818 = vmatpush.msra.mxu1 %v785_v37 }
 0x612   :  { %945 = vmatpush.msra.mxu3 %v891_v57  ;;  %v1002_v57 = vld [vmem:[#allocation8 + $0x30] sm:$0xff] }
 0x613   :  { %1053 = vmatpush.msrb.mxu1 %v1027_v32 }
 0x615   :  { %1054 = vmatpush.msrb.mxu1 %v1026_v34 }
 0x617   :  { %1055 = vmatpush.msrb.mxu1 %v1025_v36 }
 0x619   :  { %1056 = vmatpush.msrb.mxu1 %v1024_v4 }
 0x61b   :  { %1057 = vmatpush.msrb.mxu1 %v1023_v53 }
 0x61d   :  { %1058 = vmatpush.msrb.mxu1 %v1022_v6 }
 0x61f   :  { %1059 = vmatpush.msrb.mxu1 %v1021_v9 }
 0x621   :  { %1060 = vmatpush.msrb.mxu1 %v1020_v10 }
 0x623   :  { %1061 = vmatpush.msrb.mxu1 %v1019_v12 }
 0x65f   :  { %v552_v13 = vpop.f32.mrf.mxu0 }
 0x660   :  { %560 = vrot.lane.b32.xlu2 %v552_v13, %s3447_s12  ;;  %v888_v13 = vld [vmem:[#allocation7 + $0x60] sm:$0xff] }
 0x661   :  { %923 = vmatpush.msra.mxu2 %v888_v13  ;;  %v1018_v13 = vld [vmem:[#allocation8 + $0xb0] sm:$0xff] }
 0x662   :  { %1062 = vmatpush.msrb.mxu1 %v1018_v13 }
 0x667   :  { %v555_v14 = vpop.f32.mrf.mxu0 }
 0x668   :  { %562 = vrot.lane.b32.xlu2 %v555_v14, %s3447_s12  ;;  %v889_v14 = vld [vmem:[#allocation7 + $0x68] sm:$0xff] }
 0x669   :  { %946 = vmatpush.msra.mxu3 %v889_v14  ;;  %v1001_v14 = vld [vmem:[#allocation8 + $0x28] sm:$0xff] }
 0x676   :  { %v766_v15 = vpop.f32.mrf.mxu0 }
 0x677   :  { %774 = vrot.lane.b32.xlu0 %v766_v15, %s3446_s25  ;;  %v886_v15 = vld [vmem:[#allocation7 + $0x50] sm:$0xff] }
 0x678   :  { %924 = vmatpush.msra.mxu2 %v886_v15  ;;  %v1017_v15 = vld [vmem:[#allocation8 + $0xa8] sm:$0xff] }
 0x679   :  { %1063 = vmatpush.msrb.mxu1 %v1017_v15 }
 0x67f   :  { %v769_v16 = vpop.f32.mrf.mxu0 }
 0x680   :  { %776 = vrot.lane.b32.xlu2 %v769_v16, %s3446_s25  ;;  %v659_v17 = vpop.f32.mrf.mxu2  ;;  %v887_v16 = vld [vmem:[#allocation7 + $0x58] sm:$0xff] }
 0x681   :  { %667 = vrot.lane.b32.xlu1 %v659_v17, %s3448_s22  ;;  %947 = vmatpush.msra.mxu3 %v887_v16  ;;  %v884_v17 = vld [vmem:[#allocation7 + $0x40] sm:$0xff] }
 0x682   :  { %925 = vmatpush.msra.mxu2 %v884_v17  ;;  %v1000_v16 = vld [vmem:[#allocation8 + $0x20] sm:$0xff] }
 0x683   :  { %v1016_v17 = vld [vmem:[#allocation8 + $0xa0] sm:$0xff] }
 0x684   :  { %1064 = vmatpush.msrb.mxu1 %v1016_v17 }
 0x688   :  { %v662_v18 = vpop.f32.mrf.mxu2 }
 0x689   :  { %669 = vrot.lane.b32.xlu1 %v662_v18, %s3448_s22  ;;  %v885_v18 = vld [vmem:[#allocation7 + $0x48] sm:$0xff] }
 0x68a   :  { %948 = vmatpush.msra.mxu3 %v885_v18  ;;  %v999_v18 = vld [vmem:[#allocation8 + $0x18] sm:$0xff] }
 0x68c   :  { %949 = vmatpush.msra.mxu3 %v883_v21  ;;  %v998_v21 = vld [vmem:[#allocation8 + $0x10] sm:$0xff] }
 0x68e   :  { %950 = vmatpush.msra.mxu3 %v881_v23  ;;  %v997_v23 = vld [vmem:[#allocation8 + $0x8] sm:$0xff] }
 0x690   :  { %951 = vmatpush.msra.mxu3 %v879_v25  ;;  %v996_v25 = vld [vmem:[#allocation8] sm:$0xff] }
 0x692   :  { %952 = vmatpush.msra.mxu3 %v877_v27  ;;  %v908_v27 = vld [vmem:[%s4180_s13] ss:$4 sm:$0x3] }
 0x6ba   :  { %v561_v20 = vpop.permute.xlu2 %560 }
 0x6bb   :  { %567 = vst.msk [vmem:[#allocation2] sm:$0xff] %vm566_vm15, %v561_v20  ;;  %v882_v20 = vld [vmem:[#allocation7 + $0x30] sm:$0xff] }
 0x6bc   :  { %926 = vmatpush.msra.mxu2 %v882_v20  ;;  %v1015_v20 = vld [vmem:[#allocation8 + $0x98] sm:$0xff] }
 0x6bd   :  { %1065 = vmatpush.msrb.mxu1 %v1015_v20 }
 0x6be   :  { %927 = vmatpush.msra.mxu2 %v880_v22  ;;  %v1014_v22 = vld [vmem:[#allocation8 + $0x90] sm:$0xff] }
 0x6bf   :  { %1066 = vmatpush.msrb.mxu1 %v1014_v22 }
 0x6c0   :  { %928 = vmatpush.msra.mxu2 %v878_v24  ;;  %v1013_v24 = vld [vmem:[#allocation8 + $0x88] sm:$0xff] }
 0x6c1   :  { %1067 = vmatpush.msrb.mxu1 %v1013_v24  ;;  %v1172_v24 = vld [vmem:[#allocation3 + $0x2e8] sm:$0xff] }
 0x6c2   :  { %v563_v26 = vpop.permute.xlu2 %562 }
 0x6c3   :  { %568 = vst.msk [vmem:[#allocation2 + $0x8] sm:$0xff] %vm566_vm15, %v563_v26  ;;  %v876_v26 = vld [vmem:[#allocation7] sm:$0xff] }
 0x6c4   :  { %929 = vmatpush.msra.mxu2 %v876_v26  ;;  %v1012_v26 = vld [vmem:[#allocation8 + $0x80] sm:$0xff] }
 0x6c5   :  { %1068 = vmatpush.msrb.mxu1 %v1012_v26  ;;  %v1174_v26 = vld [vmem:[#allocation3 + $0x2f8] sm:$0xff] }
 0x6c6   :  { %1184 = vmatpush.msrb.mxu2 %v1172_v24 }
 0x6da   :  { %v777_v42 = vpop.permute.xlu2 %776 }
 0x6e9   :  { %v775_v40 = vpop.permute.xlu0 %774 }
 0x6f3   :  { %v668_v38 = vpop.permute.xlu1 %667 }
 0x6f4   :  { %674 = vst.msk [vmem:[#allocation2] sm:$0xff] %vm673_vm0, %v668_v38 }
 0x6f5   :  { %781 = vst.msk [vmem:[#allocation2] sm:$0xff] %vm780_vm1, %v775_v40 }
 0x6fb   :  { %v670_v41 = vpop.permute.xlu1 %669 }
 0x6fc   :  { %675 = vst.msk [vmem:[#allocation2 + $0x8] sm:$0xff] %vm673_vm0, %v670_v41  ;;  %v783_v43 = vld [vmem:[#allocation2] sm:$0xff] }
 0x6fd   :  { %782 = vst.msk [vmem:[#allocation2 + $0x8] sm:$0xff] %vm780_vm1, %v777_v42  ;;  %819 = vmatmul.f32.vlgmr.msra.gmra.mxu1 %v783_v43 }
 0x704   :  { %v784_v45 = vld [vmem:[#allocation2 + $0x8] sm:$0xff] }
 0x705   :  { %822 = vmatmul.f32.gmra.mxu1 %v784_v45 }
 0x77a   :  { %v820_v47 = vpop.f32.mrf.mxu1 }
 0x77b   :  { %v821_v48 = vadd.f32 %v3152_v46, %v820_v47 }
 0x77d   :  { %v3725_v49 = vadd.f32 %v821_v48, %v3594_v39 }
 0x77f   :  { %830 = vadd.xlane.f32.xlu1 %v3725_v49 }
 0x782   :  { %v823_v50 = vpop.f32.mrf.mxu1 }
 0x783   :  { %v824_v51 = vadd.f32 %v3152_v46, %v823_v50 }
 0x785   :  { %v3729_v52 = vadd.f32 %v824_v51, %v3597_v44  ;;  %v3153_v51 = vld [vmem:[%s4177_s10] ss:$0 sm:$0xff] }
 0x787   :  { %832 = vadd.xlane.f32.xlu2 %v3729_v52 }
 0x7f2   :  { %v831_v59 = vpop.xlane.xlu1 %830 }
 0x7f3   :  { %v834_v39 = vmul.f32 %v831_v59, %v3582_v8 }
 0x7f5   :  { %v3734_v60 = vsub.f32 %v3725_v49, %v834_v39 }
 0x7f7   :  { %v838_v44 = vmul.f32 %v3734_v60, %v3734_v60 }
 0x7f9   :  { %840 = vadd.xlane.f32.xlu0 %v838_v44 }
 0x7fa   :  { %v833_v61 = vpop.xlane.xlu2 %832 }
 0x7fb   :  { %v835_v62 = vmul.f32 %v833_v61, %v3582_v8 }
 0x7fd   :  { %v3740_v63 = vsub.f32 %v3729_v52, %v835_v62 }
 0x7ff   :  { %v839_v0 = vmul.f32 %v3740_v63, %v3740_v63 }
 0x801   :  { %842 = vadd.xlane.f32.xlu1 %v839_v0 }
 0x86c   :  { %v841_v28 = vpop.xlane.xlu0 %840 }
 0x86d   :  { %v844_v29 = vmul.f32 %v841_v28, %v3582_v8  ;;  %v910_v28 = vperm.slane %v908_v27, 0 }
 0x86f   :  { %v846_v30 = vadd.f32 1e-05, %v844_v29  ;;  %v911_v29 = vperm.slane %v908_v27, 1  ;;  %v1169_v27 = vld [vmem:[#allocation3 + $0x2d0] sm:$0xff] }
 0x870   :  { %1185 = vmatpush.msrb.mxu2 %v1169_v27 }
 0x871   :  { %3213 = vrsqrt.f32 %v846_v30  ;;  %vm854_vm3 = vweird.f32 %v846_v30 }
 0x874   :  { %v843_v37 = vpop.xlane.xlu1 %842 }
 0x875   :  { %v845_v38 = vmul.f32 %v843_v37, %v3582_v8 }
 0x877   :  { %v3214_v40 = vpop.eup %3213  ;;  %v847_v41 = vadd.f32 1e-05, %v845_v38 }
 0x878   :  { %v849_v42 = vmul.f32 %v3214_v40, %v846_v30  ;;  %vm855_vm2 = vweird.f32 %v3214_v40 }
 0x879   :  { %3215 = vrsqrt.f32 %v847_v41  ;;  %vm856_vm4 = vmor %vm854_vm3, %vm855_vm2  ;;  %vm864_vm6 = vweird.f32 %v847_v41 }
 0x87a   :  { %v850_v43 = vmul.f32 %v3214_v40, %v849_v42 }
 0x87c   :  { %v851_v45 = vmul.f32 0.5, %v850_v43 }
 0x87e   :  { %v852_v46 = vsub.f32 1.5, %v851_v45 }
 0x87f   :  { %v3216_v47 = vpop.eup %3215 }
 0x880   :  { %v853_v48 = vmul.f32 %v3214_v40, %v852_v46  ;;  %v859_v50 = vmul.f32 %v3216_v47, %v847_v41  ;;  %vm865_vm5 = vweird.f32 %v3216_v47 }
 0x881   :  { %vm866_vm7 = vmor %vm864_vm6, %vm865_vm5 }
 0x882   :  { %v857_v54 = vsel %vm856_vm4, %v3214_v40, %v853_v48  ;;  %v860_v55 = vmul.f32 %v3216_v47, %v859_v50 }
 0x883   :  { %v868_v56 = vmul.f32 %v857_v54, %v3734_v60  ;;  %v1008_v60 = vld [vmem:[#allocation8 + $0x60] sm:$0xff] }
 0x884   :  { %v861_v59 = vmul.f32 0.5, %v860_v55  ;;  %1033 = vmatpush.msrb.mxu0 %v1008_v60 }
 0x885   :  { %v871_v39 = vmul.f32 %v3153_v51, %v868_v56 }
 0x886   :  { %v862_v44 = vsub.f32 1.5, %v861_v59  ;;  %1034 = vmatpush.msrb.mxu0 %v1007_v19 }
 0x887   :  { %v874_v61 = vadd.f32 %v3154_v58, %v871_v39 }
 0x888   :  { %v863_v62 = vmul.f32 %v3216_v47, %v862_v44  ;;  %1035 = vmatpush.msrb.mxu0 %v1006_v5 }
 0x889   :  { %930 = vmatmul.f32.vlgmr.msra.gmra.mxu2 %v874_v61  ;;  %953 = vmatmul.f32.vlgmr.msra.gmra.mxu3 %v874_v61 }
 0x88a   :  { %v867_v0 = vsel %vm866_vm7, %v3216_v47, %v863_v62  ;;  %1036 = vmatpush.msrb.mxu0 %v1005_v7 }
 0x88b   :  { %v869_v1 = vmul.f32 %v867_v0, %v3740_v63  ;;  %v1004_v63 = vld [vmem:[#allocation8 + $0x40] sm:$0xff] }
 0x88c   :  { %1037 = vmatpush.msrb.mxu0 %v1004_v63 }
 0x88d   :  { %v872_v2 = vmul.f32 %v3153_v51, %v869_v1 }
 0x88e   :  { %1038 = vmatpush.msrb.mxu0 %v1003_v11 }
 0x88f   :  { %v875_v3 = vadd.f32 %v3154_v58, %v872_v2 }
 0x890   :  { %1039 = vmatpush.msrb.mxu0 %v1002_v57  ;;  %v3155_v57 = vld [vmem:[%s4182_s15] ss:$0 sm:$0xff] }
 0x891   :  { %933 = vmatmul.f32.gmra.mxu2 %v875_v3  ;;  %956 = vmatmul.f32.gmra.mxu3 %v875_v3 }
 0x892   :  { %1040 = vmatpush.msrb.mxu0 %v1001_v14 }
 0x894   :  { %1041 = vmatpush.msrb.mxu0 %v1000_v16 }
 0x896   :  { %1042 = vmatpush.msrb.mxu0 %v999_v18 }
 0x898   :  { %1043 = vmatpush.msrb.mxu0 %v998_v21 }
 0x89a   :  { %1044 = vmatpush.msrb.mxu0 %v997_v23 }
 0x89c   :  { %1045 = vmatpush.msrb.mxu0 %v996_v25  ;;  %v1173_v25 = vld [vmem:[#allocation3 + $0x2f0] sm:$0xff] }
 0x89d   :  { %1207 = vmatpush.msrb.mxu3 %v1173_v25 }
 0x89e   :  { %1230 = vmatpush.msra.mxu0 %v1174_v26 }
 0x90c   :  { %v931_v30 = vpop.f32.mrf.mxu2  ;;  %v954_v31 = vpop.f32.mrf.mxu3 }
 0x90d   :  { %v932_v32 = vadd.f32 %v931_v30, %v910_v28  ;;  %v955_v33 = vadd.f32 %v954_v31, %v911_v29 }
 0x90f   :  { %v960_v34 = vmul.f32 %v932_v32, %v932_v32  ;;  %v961_v35 = vmul.f32 %v955_v33, %v955_v33 }
 0x911   :  { %v964_v36 = vmul.f32 %v960_v34, %v932_v32  ;;  %v965_v37 = vmul.f32 %v961_v35, %v955_v33 }
 0x913   :  { %v968_v38 = vmul.f32 0.044715, %v964_v36  ;;  %v969_v40 = vmul.f32 0.044715, %v965_v37  ;;  %v1166_v36 = vld [vmem:[#allocation3 + $0x2b8] sm:$0xff]  ;;  %v1167_v37 = vld [vmem:[#allocation3 + $0x2c0] sm:$0xff] }
 0x914   :  { %v934_v41 = vpop.f32.mrf.mxu2  ;;  %v957_v42 = vpop.f32.mrf.mxu3  ;;  %1186 = vmatpush.msrb.mxu2 %v1166_v36 }
 0x915   :  { %v972_v43 = vadd.f32 %v968_v38, %v932_v32  ;;  %v973_v45 = vadd.f32 %v969_v40, %v955_v33  ;;  %v935_v46 = vadd.f32 %v934_v41, %v910_v28  ;;  %v958_v47 = vadd.f32 %v957_v42, %v911_v29  ;;  %v1170_v28 = vld [vmem:[#allocation3 + $0x2d8] sm:$0xff]  ;;  %v1168_v38 = vld [vmem:[#allocation3 + $0x2c8] sm:$0xff]  ;;  %v1163_v40 = vld [vmem:[#allocation3 + $0x2a0] sm:$0xff] }
 0x916   :  { %1208 = vmatpush.msrb.mxu3 %v1170_v28  ;;  %v1164_v41 = vld [vmem:[#allocation3 + $0x2a8] sm:$0xff]  ;;  %v1165_v42 = vld [vmem:[#allocation3 + $0x2b0] sm:$0xff]  ;;  %1187 = vmatpush.msrb.mxu2 %v1163_v40 }
 0x917   :  { %v976_v48 = vmul.f32 0.7978846, %v972_v43  ;;  %v977_v50 = vmul.f32 0.7978846, %v973_v45  ;;  %v962_v51 = vmul.f32 %v935_v46, %v935_v46  ;;  %v963_v54 = vmul.f32 %v958_v47, %v958_v47  ;;  %v1160_v43 = vld [vmem:[#allocation3 + $0x288] sm:$0xff]  ;;  %v1161_v45 = vld [vmem:[#allocation3 + $0x290] sm:$0xff] }
 0x918   :  { %1209 = vmatpush.msrb.mxu3 %v1167_v37  ;;  %1188 = vmatpush.msrb.mxu2 %v1160_v43  ;;  %v3157_v37 = vld [vmem:[%s4209_s1 + $0x1] ss:$0 sm:$0xff] }
 0x919   :  { %3217 = vtanh.f32 %v976_v48  ;;  %v966_v55 = vmul.f32 %v962_v51, %v935_v46  ;;  %v967_v56 = vmul.f32 %v963_v54, %v958_v47  ;;  %v1158_v48 = vld [vmem:[#allocation3 + $0x278] sm:$0xff]  ;;  %v1155_v54 = vld [vmem:[#allocation3 + $0x260] sm:$0xff] }
 0x91a   :  { %3219 = vtanh.f32 %v977_v50  ;;  %1210 = vmatpush.msrb.mxu3 %v1164_v41  ;;  %v1159_v50 = vld [vmem:[#allocation3 + $0x280] sm:$0xff]  ;;  %v1154_v51 = vld [vmem:[#allocation3 + $0x258] sm:$0xff] }
 0x91b   :  { %v970_v58 = vmul.f32 0.044715, %v966_v55  ;;  %v971_v59 = vmul.f32 0.044715, %v967_v56  ;;  %v1156_v55 = vld [vmem:[#allocation3 + $0x268] sm:$0xff]  ;;  %v1151_v56 = vld [vmem:[#allocation3 + $0x240] sm:$0xff] }
 0x91c   :  { %1211 = vmatpush.msrb.mxu3 %v1161_v45 }
 0x91d   :  { %v974_v39 = vadd.f32 %v970_v58, %v935_v46  ;;  %v975_v44 = vadd.f32 %v971_v59, %v958_v47  ;;  %v1152_v58 = vld [vmem:[#allocation3 + $0x248] sm:$0xff]  ;;  %v1153_v59 = vld [vmem:[#allocation3 + $0x250] sm:$0xff] }
 0x91e   :  { %1212 = vmatpush.msrb.mxu3 %v1158_v48 }
 0x91f   :  { %v3218_v61 = vpop.eup %3217  ;;  %v978_v62 = vmul.f32 0.7978846, %v974_v39  ;;  %v979_v0 = vmul.f32 0.7978846, %v975_v44  ;;  %v1148_v39 = vld [vmem:[#allocation3 + $0x228] sm:$0xff]  ;;  %v1149_v44 = vld [vmem:[#allocation3 + $0x230] sm:$0xff] }
 0x920   :  { %v3220_v1 = vpop.eup %3219  ;;  %v984_v2 = vadd.f32 1.0, %v3218_v61  ;;  %1213 = vmatpush.msrb.mxu3 %v1155_v54  ;;  %v1150_v61 = vld [vmem:[#allocation3 + $0x238] sm:$0xff] }
 0x921   :  { %v985_v3 = vadd.f32 1.0, %v3220_v1  ;;  %3221 = vtanh.f32 %v978_v62  ;;  %v1145_v62 = vld [vmem:[#allocation3 + $0x210] sm:$0xff]  ;;  %v1147_v1 = vld [vmem:[#allocation3 + $0x220] sm:$0xff] }
 0x922   :  { %v988_v60 = vmul.f32 0.5, %v984_v2  ;;  %3223 = vtanh.f32 %v979_v0  ;;  %1214 = vmatpush.msrb.mxu3 %v1152_v58  ;;  %v1146_v0 = vld [vmem:[#allocation3 + $0x218] sm:$0xff] }
 0x923   :  { %v989_v4 = vmul.f32 0.5, %v985_v3  ;;  %v1142_v2 = vld [vmem:[#allocation3 + $0x1f8] sm:$0xff]  ;;  %v1143_v3 = vld [vmem:[#allocation3 + $0x200] sm:$0xff] }
 0x924   :  { %v992_v19 = vmul.f32 %v988_v60, %v932_v32  ;;  %1215 = vmatpush.msrb.mxu3 %v1149_v44  ;;  %v1144_v60 = vld [vmem:[#allocation3 + $0x208] sm:$0xff] }
 0x925   :  { %v993_v53 = vmul.f32 %v989_v4, %v955_v33  ;;  %v1139_v4 = vld [vmem:[#allocation3 + $0x1e0] sm:$0xff] }
 0x926   :  { %1046 = vmatmul.f32.vlgmr.msrb.gmra.mxu0 %v992_v19  ;;  %1216 = vmatpush.msrb.mxu3 %v1146_v0  ;;  %v1140_v19 = vld [vmem:[#allocation3 + $0x1e8] sm:$0xff] }
 0x927   :  { %v3222_v5 = vpop.eup %3221  ;;  %1069 = vmatmul.f32.vlgmr.msrb.gmra.mxu1 %v993_v53  ;;  %v1141_v53 = vld [vmem:[#allocation3 + $0x1f0] sm:$0xff] }
 0x928   :  { %v3224_v6 = vpop.eup %3223  ;;  %v986_v7 = vadd.f32 1.0, %v3222_v5  ;;  %1217 = vmatpush.msrb.mxu3 %v1143_v3  ;;  %v1136_v5 = vld [vmem:[#allocation3 + $0x1c8] sm:$0xff] }
 0x929   :  { %v987_v9 = vadd.f32 1.0, %v3224_v6  ;;  %v1137_v6 = vld [vmem:[#allocation3 + $0x1d0] sm:$0xff] }
 0x92a   :  { %v990_v63 = vmul.f32 0.5, %v986_v7  ;;  %1218 = vmatpush.msrb.mxu3 %v1140_v19  ;;  %v1138_v7 = vld [vmem:[#allocation3 + $0x1d8] sm:$0xff] }
 0x92b   :  { %v991_v10 = vmul.f32 0.5, %v987_v9  ;;  %v1133_v9 = vld [vmem:[#allocation3 + $0x1b0] sm:$0xff] }
 0x92c   :  { %v994_v11 = vmul.f32 %v990_v63, %v935_v46  ;;  %v1162_v46 = vld [vmem:[#allocation3 + $0x298] sm:$0xff]  ;;  %1219 = vmatpush.msrb.mxu3 %v1137_v6 }
 0x92d   :  { %v995_v12 = vmul.f32 %v991_v10, %v958_v47  ;;  %v1157_v47 = vld [vmem:[#allocation3 + $0x270] sm:$0xff]  ;;  %v1134_v63 = vld [vmem:[#allocation3 + $0x1b8] sm:$0xff]  ;;  %v1135_v10 = vld [vmem:[#allocation3 + $0x1c0] sm:$0xff] }
 0x92e   :  { %1049 = vmatmul.f32.gmra.mxu0 %v994_v11  ;;  %1189 = vmatpush.msrb.mxu2 %v1157_v47  ;;  %v1130_v11 = vld [vmem:[#allocation3 + $0x198] sm:$0xff] }
 0x92f   :  { %1072 = vmatmul.f32.gmra.mxu1 %v995_v12  ;;  %1220 = vmatpush.msrb.mxu3 %v1134_v63  ;;  %v1131_v12 = vld [vmem:[#allocation3 + $0x1a0] sm:$0xff]  ;;  %v3329_v63 = vld [vmem:[%s4210_s14] sm:$0xff] }
 0x930   :  { %1190 = vmatpush.msrb.mxu2 %v1154_v51 }
 0x931   :  { %1221 = vmatpush.msrb.mxu3 %v1131_v12 }
 0x932   :  { %1191 = vmatpush.msrb.mxu2 %v1151_v56 }
 0x934   :  { %1192 = vmatpush.msrb.mxu2 %v1148_v39 }
 0x936   :  { %1193 = vmatpush.msrb.mxu2 %v1145_v62 }
 0x938   :  { %1194 = vmatpush.msrb.mxu2 %v1142_v2 }
 0x93a   :  { %1195 = vmatpush.msrb.mxu2 %v1139_v4 }
 0x93c   :  { %1196 = vmatpush.msrb.mxu2 %v1136_v5 }
 0x93e   :  { %1197 = vmatpush.msrb.mxu2 %v1133_v9 }
 0x940   :  { %1198 = vmatpush.msrb.mxu2 %v1130_v11 }
 0x9a3   :  { %v1047_v13 = vpop.f32.mrf.mxu0 }
 0x9a4   :  { %v1048_v14 = vadd.f32 %v3155_v57, %v1047_v13  ;;  %v1070_v15 = vpop.f32.mrf.mxu1  ;;  %v1127_v13 = vld [vmem:[#allocation3 + $0x180] sm:$0xff] }
 0x9a5   :  { %1199 = vmatpush.msrb.mxu2 %v1127_v13 }
 0x9a6   :  { %v1071_v16 = vadd.f32 %v1070_v15, %v1048_v14  ;;  %v1128_v14 = vld [vmem:[#allocation3 + $0x188] sm:$0xff]  ;;  %v1129_v15 = vld [vmem:[#allocation3 + $0x190] sm:$0xff] }
 0x9a7   :  { %1222 = vmatpush.msrb.mxu3 %v1128_v14 }
 0x9a8   :  { %v3761_v17 = vadd.f32 %v1071_v16, %v3725_v49  ;;  %v1171_v49 = vld [vmem:[#allocation3 + $0x2e0] sm:$0xff] }
 0x9a9   :  { %1231 = vmatpush.msra.mxu0 %v1171_v49 }
 0x9aa   :  { %1080 = vadd.xlane.f32.xlu2 %v3761_v17 }
 0x9ab   :  { %v1050_v18 = vpop.f32.mrf.mxu0  ;;  %1232 = vmatpush.msra.mxu0 %v1168_v38 }
 0x9ac   :  { %v1051_v20 = vadd.f32 %v3155_v57, %v1050_v18  ;;  %v1073_v21 = vpop.f32.mrf.mxu1  ;;  %v1132_v57 = vld [vmem:[#allocation3 + $0x1a8] sm:$0xff] }
 0x9ad   :  { %1233 = vmatpush.msra.mxu0 %v1165_v42 }
 0x9ae   :  { %v1074_v22 = vadd.f32 %v1073_v21, %v1051_v20 }
 0x9af   :  { %1234 = vmatpush.msra.mxu0 %v1162_v46 }
 0x9b0   :  { %v3765_v23 = vadd.f32 %v1074_v22, %v3729_v52 }
 0x9b1   :  { %1235 = vmatpush.msra.mxu0 %v1159_v50  ;;  %v3033_v50 = vld [vmem:[%s4174_s7 + $0x1] ss:$4 sm:$0x7] }
 0x9b2   :  { %1082 = vadd.xlane.f32.xlu0 %v3765_v23  ;;  %v1178_v51 = vperm.slane %v3033_v50, 0  ;;  %v1179_v54 = vperm.slane %v3033_v50, 1 }
 0x9b3   :  { %1236 = vmatpush.msra.mxu0 %v1156_v55  ;;  %v1180_v55 = vperm.slane %v3033_v50, 2 }
 0x9b5   :  { %1237 = vmatpush.msra.mxu0 %v1153_v59 }
 0x9b7   :  { %1238 = vmatpush.msra.mxu0 %v1150_v61 }
 0x9b9   :  { %1239 = vmatpush.msra.mxu0 %v1147_v1 }
 0x9bb   :  { %1240 = vmatpush.msra.mxu0 %v1144_v60 }
 0x9bd   :  { %1241 = vmatpush.msra.mxu0 %v1141_v53 }
 0x9bf   :  { %1242 = vmatpush.msra.mxu0 %v1138_v7 }
 0x9c1   :  { %1243 = vmatpush.msra.mxu0 %v1135_v10 }
 0x9c3   :  { %1244 = vmatpush.msra.mxu0 %v1132_v57 }
 0x9c5   :  { %1245 = vmatpush.msra.mxu0 %v1129_v15  ;;  %v3330_v15 = vld [vmem:[%s4210_s14 + $0x8] sm:$0xff] }
 0xa1d   :  { %v1081_v29 = vpop.xlane.xlu2 %1080 }
 0xa1e   :  { %v1084_v30 = vmul.f32 %v1081_v29, %v3582_v8 }
 0xa20   :  { %v3770_v52 = vsub.f32 %v3761_v17, %v1084_v30 }
 0xa22   :  { %v1088_v31 = vmul.f32 %v3770_v52, %v3770_v52 }
 0xa24   :  { %1090 = vadd.xlane.f32.xlu1 %v1088_v31 }
 0xa25   :  { %v1083_v32 = vpop.xlane.xlu0 %1082 }
 0xa26   :  { %v1085_v33 = vmul.f32 %v1083_v32, %v3582_v8  ;;  %v3156_v32 = vld [vmem:[%s4208_s30 + $0x1] ss:$0 sm:$0xff] }
 0xa28   :  { %v3776_v34 = vsub.f32 %v3765_v23, %v1085_v33 }
 0xa2a   :  { %v1089_v35 = vmul.f32 %v3776_v34, %v3776_v34 }
 0xa2c   :  { %1092 = vadd.xlane.f32.xlu2 %v1089_v35 }
 0xa97   :  { %v1091_v16 = vpop.xlane.xlu1 %1090 }
 0xa98   :  { %v1094_v18 = vmul.f32 %v1091_v16, %v3582_v8 }
 0xa9a   :  { %v1096_v20 = vadd.f32 1e-05, %v1094_v18 }
 0xa9c   :  { %3225 = vrsqrt.f32 %v1096_v20  ;;  %vm1104_vm9 = vweird.f32 %v1096_v20 }
 0xa9f   :  { %v1093_v21 = vpop.xlane.xlu2 %1092 }
 0xaa0   :  { %v1095_v22 = vmul.f32 %v1093_v21, %v3582_v8 }
 0xaa2   :  { %v3226_v24 = vpop.eup %3225  ;;  %v1097_v25 = vadd.f32 1e-05, %v1095_v22 }
 0xaa3   :  { %v1099_v26 = vmul.f32 %v3226_v24, %v1096_v20  ;;  %vm1105_vm8 = vweird.f32 %v3226_v24 }
 0xaa4   :  { %3227 = vrsqrt.f32 %v1097_v25  ;;  %vm1106_vm10 = vmor %vm1104_vm9, %vm1105_vm8  ;;  %vm1114_vm12 = vweird.f32 %v1097_v25 }
 0xaa5   :  { %v1100_v27 = vmul.f32 %v3226_v24, %v1099_v26 }
 0xaa7   :  { %v1101_v28 = vmul.f32 0.5, %v1100_v27 }
 0xaa9   :  { %v1102_v49 = vsub.f32 1.5, %v1101_v28 }
 0xaaa   :  { %v3228_v29 = vpop.eup %3227 }
 0xaab   :  { %v1103_v30 = vmul.f32 %v3226_v24, %v1102_v49  ;;  %v1109_v31 = vmul.f32 %v3228_v29, %v1097_v25  ;;  %vm1115_vm11 = vweird.f32 %v3228_v29 }
 0xaac   :  { %vm1116_vm2 = vmor %vm1114_vm12, %vm1115_vm11 }
 0xaad   :  { %v1107_v33 = vsel %vm1106_vm10, %v3226_v24, %v1103_v30  ;;  %v1110_v35 = vmul.f32 %v3228_v29, %v1109_v31 }
 0xaae   :  { %v1118_v36 = vmul.f32 %v1107_v33, %v3770_v52 }
 0xaaf   :  { %v1111_v38 = vmul.f32 0.5, %v1110_v35 }
 0xab0   :  { %v1121_v40 = vmul.f32 %v3156_v32, %v1118_v36 }
 0xab1   :  { %v1112_v41 = vsub.f32 1.5, %v1111_v38 }
 0xab2   :  { %v1124_v42 = vadd.f32 %v3157_v37, %v1121_v40 }
 0xab3   :  { %v1113_v43 = vmul.f32 %v3228_v29, %v1112_v41 }
 0xab4   :  { %1200 = vmatmul.f32.vlgmr.msrb.gmra.mxu2 %v1124_v42  ;;  %1223 = vmatmul.f32.vlgmr.msrb.gmra.mxu3 %v1124_v42 }
 0xab5   :  { %v1117_v45 = vsel %vm1116_vm2, %v3228_v29, %v1113_v43  ;;  %1246 = vmatmul.f32.vlgmr.msra.gmra.mxu0 %v1124_v42 }
 0xab6   :  { %v1119_v46 = vmul.f32 %v1117_v45, %v3776_v34 }
 0xab8   :  { %v1122_v47 = vmul.f32 %v3156_v32, %v1119_v46 }
 0xaba   :  { %v1125_v52 = vadd.f32 %v3157_v37, %v1122_v47 }
 0xabc   :  { %1203 = vmatmul.f32.gmra.mxu2 %v1125_v52  ;;  %1226 = vmatmul.f32.gmra.mxu3 %v1125_v52 }
 0xabd   :  { %1249 = vmatmul.f32.gmra.mxu0 %v1125_v52 }
 0xb32   :  { %v1247_v48 = vpop.f32.mrf.mxu0 }
 0xb33   :  { %v1248_v34 = vadd.f32 %v1247_v48, %v1180_v55 }
 0xb37   :  { %v1201_v56 = vpop.f32.mrf.mxu2  ;;  %v1224_v58 = vpop.f32.mrf.mxu3 }
 0xb38   :  { %v1202_v59 = vadd.f32 %v1201_v56, %v1178_v51  ;;  %v1225_v39 = vadd.f32 %v1224_v58, %v1179_v54 }
 0xb3a   :  { %v1250_v44 = vpop.f32.mrf.mxu0  ;;  %1345 = vrot.lane.b32.xlu1 %v1225_v39, %s3446_s25  ;;  %1341 = vrot.lane.b32.xlu2 %v1202_v59, %s3446_s25 }
 0xb3b   :  { %v1251_v61 = vadd.f32 %v1250_v44, %v1180_v55 }
 0xb3d   :  { %1330 = vmatpush.msra.mxu2 %v1251_v61  ;;  %v3795_v62 = vpack.i.bf16 %v1248_v34, %v1251_v61 }
 0xb3f   :  { %1331 = vmatpush.msra.mxu2 %v1248_v34  ;;  %v1227_v0 = vpop.f32.mrf.mxu3  ;;  %v1204_v2 = vpop.f32.mrf.mxu2 }
 0xb40   :  { %v1228_v1 = vadd.f32 %v1227_v0, %v1179_v54  ;;  %v1205_v3 = vadd.f32 %v1204_v2, %v1178_v51 }
 0xb42   :  { %1453 = vrot.lane.b32.xlu2 %v1225_v39, %s3448_s22  ;;  %1455 = vrot.lane.b32.xlu1 %v1228_v1, %s3448_s22 }
 0xb43   :  { %1347 = vrot.lane.b32.xlu0 %v1228_v1, %s3446_s25  ;;  %3034 = vmatpush.xpose.msk.msra.mxu1 %vm370_vm13, %v1228_v1 }
 0xb47   :  { %3035 = vmatpush.xpose.msk.msra.mxu1 %vm370_vm13, %v1225_v39 }
 0xb4a   :  { %3036 = vmatmul.msk.f32.vlgmr.msra.gmra.mxu1 %vm370_vm13, %v1202_v59  ;;  %1555 = vrot.lane.b32.xlu2 %v1202_v59, %s3447_s12 }
 0xb4b   :  { %1559 = vrot.lane.b32.xlu1 %v1225_v39, %s3447_s12  ;;  %1343 = vrot.lane.b32.xlu0 %v1205_v3, %s3446_s25 }
 0xb52   :  { %3037 = vmatmul.msk.f32.gmra.mxu1 %vm370_vm13, %v1205_v3 }
 0xb53   :  { %1451 = vrot.lane.b32.xlu1 %v1205_v3, %s3448_s22  ;;  %1561 = vrot.lane.b32.xlu0 %v1228_v1, %s3447_s12 }
 0xb5b   :  { %1449 = vrot.lane.b32.xlu0 %v1202_v59, %s3448_s22 }
 0xb63   :  { %1557 = vrot.lane.b32.xlu0 %v1205_v3, %s3447_s12 }
 0xb94   :  { %v1342_v4 = vpop.permute.xlu2 %1341 }
 0xb9c   :  { %v1454_v5 = vpop.permute.xlu2 %1453 }
 0xba4   :  { %v1556_v57 = vpop.permute.xlu2 %1555 }
 0xbac   :  { %v1346_v60 = vpop.permute.xlu1 %1345 }
 0xbb4   :  { %v1456_v19 = vpop.permute.xlu1 %1455 }
 0xbb5   :  { %v1348_v53 = vpop.permute.xlu0 %1347  ;;  %3046 = vmatpush.xpose.msk.msrb.mxu1 %vm370_vm13, %v1456_v19 }
 0xbb6   :  { %3040 = vmatpush.xpose.msk.msra.mxu3 %vm370_vm13, %v1348_v53 }
 0xbb9   :  { %3047 = vmatpush.xpose.msk.msrb.mxu1 %vm370_vm13, %v1454_v5 }
 0xbba   :  { %3041 = vmatpush.xpose.msk.msra.mxu3 %vm370_vm13, %v1346_v60 }
 0xbbd   :  { %v1344_v6 = vpop.permute.xlu0 %1343  ;;  %3042 = vmatmul.msk.f32.vlgmr.msra.gmra.mxu3 %vm370_vm13, %v1342_v4  ;;  %v1560_v11 = vpop.permute.xlu1 %1559 }
 0xbc5   :  { %v1562_v7 = vpop.permute.xlu0 %1561  ;;  %3043 = vmatmul.msk.f32.gmra.mxu3 %vm370_vm13, %v1344_v6  ;;  %v1452_v20 = vpop.permute.xlu1 %1451 }
 0xbc6   :  { %3052 = vmatpush.xpose.msk.msrb.mxu3 %vm370_vm13, %v1562_v7 }
 0xbc7   :  { %v1282_v9 = vpop.f32.mrf.mxu1 }
 0xbc8   :  { %v1283_v10 = vadd.f32 %v3329_v63, %v1282_v9 }
 0xbca   :  { %3053 = vmatpush.xpose.msk.msrb.mxu3 %vm370_vm13, %v1560_v11  ;;  %v1288_v12 = vsel %vm406_vm14, %v1283_v10, -inf }
 0xbcb   :  { %1289 = vmax.xlane.f32.xlu2 %v1288_v12 }
 0xbcd   :  { %v1450_v13 = vpop.permute.xlu0 %1449  ;;  %3054 = vmatmul.msk.f32.vlgmr.msrb.gmra.mxu3 %vm370_vm13, %v1556_v57 }
 0xbce   :  { %3048 = vmatmul.msk.f32.vlgmr.msrb.gmra.mxu1 %vm370_vm13, %v1450_v13 }
 0xbcf   :  { %v1285_v14 = vpop.f32.mrf.mxu1 }
 0xbd0   :  { %v1286_v16 = vadd.f32 %v3330_v15, %v1285_v14 }
 0xbd2   :  { %v1291_v18 = vsel %vm406_vm14, %v1286_v16, -inf }
 0xbd3   :  { %1292 = vmax.xlane.f32.xlu0 %v1291_v18 }
 0xbd5   :  { %v1558_v21 = vpop.permute.xlu0 %1557 }
 0xbd6   :  { %3049 = vmatmul.msk.f32.gmra.mxu1 %vm370_vm13, %v1452_v20  ;;  %3055 = vmatmul.msk.f32.gmra.mxu3 %vm370_vm13, %v1558_v21 }
 0xc3e   :  { %v1290_v22 = vpop.xlane.xlu2 %1289 }
 0xc3f   :  { %v1294_v24 = vsub.f32 %v1283_v10, %v1290_v22 }
 0xc40   :  { %v1374_v25 = vpop.f32.mrf.mxu3 }
 0xc41   :  { %v1296_v26 = vmul.f32 1.442695, %v1294_v24  ;;  %v1375_v27 = vadd.f32 %v3329_v63, %v1374_v25 }
 0xc43   :  { %3229 = vpow2.f32 %v1296_v26  ;;  %v1380_v28 = vsel %vm406_vm14, %v1375_v27, -inf }
 0xc44   :  { %1381 = vmax.xlane.f32.xlu1 %v1380_v28 }
 0xc46   :  { %v1293_v49 = vpop.xlane.xlu0 %1292 }
 0xc47   :  { %v1295_v29 = vsub.f32 %v1286_v16, %v1293_v49 }
 0xc48   :  { %v1377_v30 = vpop.f32.mrf.mxu3 }
 0xc49   :  { %v3230_v31 = vpop.eup %3229  ;;  %v1298_v32 = vmul.f32 1.442695, %v1295_v29  ;;  %v1378_v48 = vadd.f32 %v3330_v15, %v1377_v30 }
 0xc4a   :  { %v1300_v33 = vsel %vm406_vm14, %v3230_v31, 0.0 }
 0xc4b   :  { %v1482_v35 = vpop.f32.mrf.mxu1  ;;  %1301 = vadd.xlane.f32.xlu0 %v1300_v33  ;;  %3231 = vpow2.f32 %v1298_v32  ;;  %v1383_v51 = vsel %vm406_vm14, %v1378_v48, -inf }
 0xc4c   :  { %v1483_v36 = vadd.f32 %v3329_v63, %v1482_v35 }
 0xc4e   :  { %v1488_v37 = vsel %vm406_vm14, %v1483_v36, -inf }
 0xc4f   :  { %1489 = vmax.xlane.f32.xlu1 %v1488_v37 }
 0xc50   :  { %v1588_v38 = vpop.f32.mrf.mxu3 }
 0xc51   :  { %v1589_v40 = vadd.f32 %v3329_v63, %v1588_v38  ;;  %v3232_v41 = vpop.eup %3231 }
 0xc52   :  { %v1303_v47 = vsel %vm406_vm14, %v3232_v41, 0.0 }
 0xc53   :  { %v1485_v42 = vpop.f32.mrf.mxu1  ;;  %v1594_v43 = vsel %vm406_vm14, %v1589_v40, -inf }
 0xc54   :  { %v1486_v45 = vadd.f32 %v3330_v15, %v1485_v42  ;;  %1595 = vmax.xlane.f32.xlu0 %v1594_v43 }
 0xc56   :  { %v1491_v46 = vsel %vm406_vm14, %v1486_v45, -inf }
 0xc57   :  { %1492 = vmax.xlane.f32.xlu2 %v1491_v46  ;;  %1304 = vadd.xlane.f32.xlu1 %v1303_v47 }
 0xc59   :  { %v1591_v52 = vpop.f32.mrf.mxu3 }
 0xc5a   :  { %v1592_v50 = vadd.f32 %v3330_v15, %v1591_v52 }
 0xc5c   :  { %v1597_v54 = vsel %vm406_vm14, %v1592_v50, -inf }
 0xc5f   :  { %1384 = vmax.xlane.f32.xlu2 %v1383_v51  ;;  %1598 = vmax.xlane.f32.xlu1 %v1597_v54 }
 0xc68   :  { %3119 = vrot.lane.b32.xlu0 %v3795_v62, %s3446_s25 }
 0xcb7   :  { %v1382_v55 = vpop.xlane.xlu1 %1381 }
 0xcb8   :  { %v1386_v56 = vsub.f32 %v1375_v27, %v1382_v55 }
 0xcba   :  { %v1388_v58 = vmul.f32 1.442695, %v1386_v56 }
 0xcbc   :  { %3233 = vpow2.f32 %v1388_v58 }
 0xcbe   :  { %v1302_v59 = vpop.xlane.xlu0 %1301 }
 0xcbf   :  { %3235 = vrcp.f32 %v1302_v59 }
 0xcc2   :  { %v3234_v39 = vpop.eup %3233  ;;  %v1490_v44 = vpop.xlane.xlu1 %1489 }
 0xcc3   :  { %v1494_v34 = vsub.f32 %v1483_v36, %v1490_v44  ;;  %v1392_v61 = vsel %vm406_vm14, %v3234_v39, 0.0 }
 0xcc4   :  { %1393 = vadd.xlane.f32.xlu2 %v1392_v61 }
 0xcc5   :  { %v3236_v0 = vpop.eup %3235  ;;  %v1496_v1 = vmul.f32 1.442695, %v1494_v34 }
 0xcc6   :  { %v1308_v2 = vmul.f32 %v3236_v0, %v3230_v31 }
 0xcc7   :  { %3237 = vpow2.f32 %v1496_v1  ;;  %v1596_v3 = vpop.xlane.xlu0 %1595  ;;  %v1679_v1 = vld [vmem:[#allocation5 + $0xf8] sm:$0xff] }
 0xcc8   :  { %v1600_v60 = vsub.f32 %v1589_v40, %v1596_v3  ;;  %3038 = vmatmul.msk.f32.vlgmr.msra.gmra.mxu2 %vm406_vm14, %v1308_v2  ;;  %v1678_v2 = vld [vmem:[#allocation5 + $0xf0] sm:$0xff]  ;;  %1682 = vmatpush.msra.mxu1 %v1679_v1  ;;  %v1677_v3 = vld [vmem:[#allocation5 + $0xe8] sm:$0xff] }
 0xcc9   :  { %v1765_v1 = vld [vmem:[#allocation7 + $0x148] sm:$0xff] }
 0xcca   :  { %v1602_v4 = vmul.f32 1.442695, %v1600_v60  ;;  %v1305_v19 = vpop.xlane.xlu1 %1304  ;;  %v1493_v53 = vpop.xlane.xlu2 %1492  ;;  %1683 = vmatpush.msra.mxu1 %v1678_v2  ;;  %v1676_v60 = vld [vmem:[#allocation5 + $0xe0] sm:$0xff]  ;;  %v1762_v2 = vld [vmem:[#allocation7 + $0x130] sm:$0xff] }
 0xccb   :  { %3239 = vrcp.f32 %v1305_v19  ;;  %v1495_v5 = vsub.f32 %v1486_v45, %v1493_v53  ;;  %v1674_v19 = vld [vmem:[#allocation5 + $0xd0] sm:$0xff] }
 0xccc   :  { %3241 = vpow2.f32 %v1602_v4  ;;  %1684 = vmatpush.msra.mxu1 %v1677_v3  ;;  %v1675_v4 = vld [vmem:[#allocation5 + $0xd8] sm:$0xff] }
 0xccd   :  { %v3238_v6 = vpop.eup %3237  ;;  %v1498_v7 = vmul.f32 1.442695, %v1495_v5  ;;  %v1673_v5 = vld [vmem:[#allocation5 + $0xc8] sm:$0xff]  ;;  %v1763_v3 = vld [vmem:[#allocation7 + $0x138] sm:$0xff] }
 0xcce   :  { %v1500_v9 = vsel %vm406_vm14, %v3238_v6, 0.0  ;;  %1685 = vmatpush.msra.mxu1 %v1676_v60  ;;  %v1760_v60 = vld [vmem:[#allocation7 + $0x120] sm:$0xff] }
 0xccf   :  { %3243 = vpow2.f32 %v1498_v7  ;;  %1501 = vadd.xlane.f32.xlu1 %v1500_v9  ;;  %v1671_v7 = vld [vmem:[#allocation5 + $0xb8] sm:$0xff]  ;;  %v1670_v9 = vld [vmem:[#allocation5 + $0xb0] sm:$0xff] }
 0xcd0   :  { %1686 = vmatpush.msra.mxu1 %v1675_v4  ;;  %v1761_v4 = vld [vmem:[#allocation7 + $0x128] sm:$0xff] }
 0xcd1   :  { %v3240_v63 = vpop.eup %3239 }
 0xcd2   :  { %v1385_v10 = vpop.xlane.xlu2 %1384  ;;  %v1309_v11 = vmul.f32 %v3240_v63, %v3232_v41  ;;  %v3242_v12 = vpop.eup %3241  ;;  %1687 = vmatpush.msra.mxu1 %v1674_v19  ;;  %v1669_v63 = vld [vmem:[#allocation5 + $0xa8] sm:$0xff]  ;;  %v1758_v19 = vld [vmem:[#allocation7 + $0x110] sm:$0xff] }
 0xcd3   :  { %v1387_v57 = vsub.f32 %v1378_v48, %v1385_v10  ;;  %v1606_v15 = vsel %vm406_vm14, %v3242_v12, 0.0  ;;  %v1599_v25 = vpop.xlane.xlu1 %1598 }
 0xcd4   :  { %3039 = vmatmul.msk.f32.gmra.mxu2 %vm406_vm14, %v1309_v11  ;;  %v1601_v26 = vsub.f32 %v1592_v50, %v1599_v25  ;;  %1688 = vmatpush.msra.mxu1 %v1673_v5  ;;  %v1668_v11 = vld [vmem:[#allocation5 + $0xa0] sm:$0xff]  ;;  %v3158_v25 = vld [vmem:[%s4176_s9 + $0x1] ss:$0 sm:$0xff] }
 0xcd5   :  { %v3244_v13 = vpop.eup %3243  ;;  %v1390_v14 = vmul.f32 1.442695, %v1387_v57  ;;  %v1666_v57 = vld [vmem:[#allocation5 + $0x90] sm:$0xff]  ;;  %v1756_v5 = vld [vmem:[#allocation7 + $0x100] sm:$0xff] }
 0xcd6   :  { %v1503_v16 = vsel %vm406_vm14, %v3244_v13, 0.0  ;;  %v1604_v27 = vmul.f32 1.442695, %v1601_v26 }
 0xcd7   :  { %1607 = vadd.xlane.f32.xlu1 %v1606_v15  ;;  %1504 = vadd.xlane.f32.xlu0 %v1503_v16  ;;  %3245 = vpow2.f32 %v1390_v14  ;;  %v1664_v14 = vld [vmem:[#allocation5 + $0x80] sm:$0xff] }
 0xcd8   :  { %3247 = vpow2.f32 %v1604_v27 }
 0xcda   :  { %v3120_v18 = vpop.permute.xlu0 %3119 }
 0xcdb   :  { %v3121_v20 = vunpack.i.l.bf16 %v3120_v18  ;;  %v3122_v21 = vunpack.i.h.bf16 %v3120_v18 }
 0xcdd   :  { %1430 = vmatpush.msrb.mxu0 %v3121_v20  ;;  %v3246_v22 = vpop.eup %3245 }
 0xcde   :  { %v1395_v24 = vsel %vm406_vm14, %v3246_v22, 0.0  ;;  %v3248_v28 = vpop.eup %3247 }
 0xcdf   :  { %1431 = vmatpush.msrb.mxu0 %v3122_v21  ;;  %1396 = vadd.xlane.f32.xlu2 %v1395_v24  ;;  %v1609_v49 = vsel %vm406_vm14, %v3248_v28, 0.0 }
 0xcf0   :  { %3129 = vrot.lane.b32.xlu1 %v3795_v62, %s3447_s12 }
 0xcf7   :  { %3124 = vrot.lane.b32.xlu2 %v3795_v62, %s3448_s22 }
 0xd20   :  { %1610 = vadd.xlane.f32.xlu2 %v1609_v49 }
 0xd37   :  { %v1394_v29 = vpop.xlane.xlu2 %1393 }
 0xd38   :  { %3249 = vrcp.f32 %v1394_v29 }
 0xd3e   :  { %v3250_v30 = vpop.eup %3249 }
 0xd3f   :  { %v1400_v31 = vmul.f32 %v3250_v30, %v3234_v39 }
 0xd41   :  { %3044 = vmatmul.msk.f32.vlgmr.msrb.gmra.mxu0 %vm406_vm14, %v1400_v31 }
 0xd42   :  { %v1502_v33 = vpop.xlane.xlu1 %1501 }
 0xd4a   :  { %v1608_v37 = vpop.xlane.xlu1 %1607  ;;  %v1505_v38 = vpop.xlane.xlu0 %1504 }
 0xd4b   :  { %v1333_v32 = vpop.f32.mrf.mxu2 }
 0xd4c   :  { %1339 = vst.msk [vmem:[#allocation2] sm:$0xff] %vm370_vm13, %v1333_v32 }
 0xd52   :  { %v1397_v35 = vpop.xlane.xlu2 %1396 }
 0xd53   :  { %3251 = vrcp.f32 %v1397_v35 }
 0xd54   :  { %3253 = vrcp.f32 %v1502_v33 }
 0xd55   :  { %3255 = vrcp.f32 %v1608_v37  ;;  %v1785_v37 = vld [vmem:[#allocation7 + $0x1e8] sm:$0xff] }
 0xd56   :  { %3257 = vrcp.f32 %v1505_v38 }
 0xd57   :  { %v1336_v62 = vpop.f32.mrf.mxu2 }
 0xd58   :  { %1340 = vst.msk [vmem:[#allocation2 + $0x8] sm:$0xff] %vm370_vm13, %v1336_v62  ;;  %v1787_v62 = vld [vmem:[#allocation7 + $0x1f8] sm:$0xff] }
 0xd59   :  { %v3252_v36 = vpop.eup %3251  ;;  %1818 = vmatpush.msra.mxu3 %v1787_v62 }
 0xd5a   :  { %v3125_v40 = vpop.permute.xlu2 %3124  ;;  %v1401_v41 = vmul.f32 %v3252_v36, %v3246_v22  ;;  %v3254_v42 = vpop.eup %3253  ;;  %v1784_v36 = vld [vmem:[#allocation7 + $0x1e0] sm:$0xff] }
 0xd5b   :  { %v3126_v43 = vunpack.i.l.bf16 %v3125_v40  ;;  %v3127_v45 = vunpack.i.h.bf16 %v3125_v40  ;;  %v1508_v46 = vmul.f32 %v3254_v42, %v3238_v6  ;;  %v3256_v52 = vpop.eup %3255  ;;  %v1672_v6 = vld [vmem:[#allocation5 + $0xc0] sm:$0xff]  ;;  %1819 = vmatpush.msra.mxu3 %v1785_v37  ;;  %v1782_v42 = vld [vmem:[#allocation7 + $0x1d0] sm:$0xff] }
 0xd5c   :  { %3045 = vmatmul.msk.f32.gmra.mxu0 %vm406_vm14, %v1401_v41  ;;  %v3258_v50 = vpop.eup %3257  ;;  %v1614_v54 = vmul.f32 %v3256_v52, %v3242_v12  ;;  %1689 = vmatpush.msra.mxu1 %v1672_v6  ;;  %v1667_v12 = vld [vmem:[#allocation5 + $0x98] sm:$0xff]  ;;  %v1757_v6 = vld [vmem:[#allocation7 + $0x108] sm:$0xff] }
 0xd5d   :  { %1536 = vmatpush.msrb.mxu2 %v3126_v43  ;;  %v1509_v55 = vmul.f32 %v3258_v50, %v3244_v13  ;;  %v1665_v13 = vld [vmem:[#allocation5 + $0x88] sm:$0xff]  ;;  %v1783_v43 = vld [vmem:[#allocation7 + $0x1d8] sm:$0xff] }
 0xd5e   :  { %1690 = vmatpush.msra.mxu1 %v1671_v7  ;;  %1820 = vmatpush.msra.mxu3 %v1783_v43  ;;  %v1779_v52 = vld [vmem:[#allocation7 + $0x1b8] sm:$0xff]  ;;  %v1777_v50 = vld [vmem:[#allocation7 + $0x1a8] sm:$0xff] }
 0xd5f   :  { %1537 = vmatpush.msrb.mxu2 %v3127_v45  ;;  %v1780_v45 = vld [vmem:[#allocation7 + $0x1c0] sm:$0xff] }
 0xd60   :  { %3050 = vmatmul.msk.f32.vlgmr.msrb.gmra.mxu2 %vm406_vm14, %v1508_v46  ;;  %1691 = vmatpush.msra.mxu1 %v1670_v9  ;;  %v1781_v46 = vld [vmem:[#allocation7 + $0x1c8] sm:$0xff] }
 0xd61   :  { %1821 = vmatpush.msra.mxu3 %v1781_v46  ;;  %v1906_v46 = vld [vmem:[#allocation8 + $0x1e0] sm:$0xff] }
 0xd62   :  { %v3130_v47 = vpop.permute.xlu1 %3129  ;;  %1692 = vmatpush.msra.mxu1 %v1669_v63 }
 0xd63   :  { %v3131_v48 = vunpack.i.l.bf16 %v3130_v47  ;;  %v3132_v51 = vunpack.i.h.bf16 %v3130_v47  ;;  %v1778_v47 = vld [vmem:[#allocation7 + $0x1b0] sm:$0xff]  ;;  %1822 = vmatpush.msra.mxu3 %v1779_v52  ;;  %v1905_v52 = vld [vmem:[#allocation8 + $0x1d8] sm:$0xff] }
 0xd64   :  { %1693 = vmatpush.msra.mxu1 %v1668_v11 }
 0xd65   :  { %1642 = vmatpush.msra.mxu0 %v3131_v48  ;;  %v1776_v48 = vld [vmem:[#allocation7 + $0x1a0] sm:$0xff]  ;;  %1823 = vmatpush.msra.mxu3 %v1777_v50  ;;  %v1904_v50 = vld [vmem:[#allocation8 + $0x1d0] sm:$0xff] }
 0xd66   :  { %1694 = vmatpush.msra.mxu1 %v1667_v12 }
 0xd67   :  { %1643 = vmatpush.msra.mxu0 %v3132_v51  ;;  %v1774_v51 = vld [vmem:[#allocation7 + $0x190] sm:$0xff] }
 0xd68   :  { %3056 = vmatmul.msk.f32.vlgmr.msra.gmra.mxu0 %vm406_vm14, %v1614_v54  ;;  %3051 = vmatmul.msk.f32.gmra.mxu2 %vm406_vm14, %v1509_v55  ;;  %v1775_v54 = vld [vmem:[#allocation7 + $0x198] sm:$0xff]  ;;  %v1772_v55 = vld [vmem:[#allocation7 + $0x180] sm:$0xff] }
 0xd69   :  { %1695 = vmatpush.msra.mxu1 %v1666_v57  ;;  %1824 = vmatpush.msra.mxu3 %v1775_v54  ;;  %v1903_v54 = vld [vmem:[#allocation8 + $0x1c8] sm:$0xff] }
 0xd6b   :  { %1696 = vmatpush.msra.mxu1 %v1665_v13 }
 0xd6d   :  { %1697 = vmatpush.msra.mxu1 %v1664_v14 }
 0xd93   :  { %v1611_v56 = vpop.xlane.xlu2 %1610 }
 0xd94   :  { %3259 = vrcp.f32 %v1611_v56  ;;  %v1773_v56 = vld [vmem:[#allocation7 + $0x188] sm:$0xff] }
 0xd95   :  { %1825 = vmatpush.msra.mxu3 %v1773_v56  ;;  %v1885_v56 = vld [vmem:[#allocation8 + $0x138] sm:$0xff] }
 0xd9a   :  { %v3260_v58 = vpop.eup %3259 }
 0xd9b   :  { %v1615_v59 = vmul.f32 %v3260_v58, %v3248_v28  ;;  %v1770_v58 = vld [vmem:[#allocation7 + $0x170] sm:$0xff] }
 0xd9d   :  { %3057 = vmatmul.msk.f32.gmra.mxu0 %vm406_vm14, %v1615_v59  ;;  %v1771_v59 = vld [vmem:[#allocation7 + $0x178] sm:$0xff] }
 0xd9e   :  { %1826 = vmatpush.msra.mxu3 %v1771_v59  ;;  %v1884_v59 = vld [vmem:[#allocation8 + $0x130] sm:$0xff] }
 0xdbe   :  { %v1433_v39 = vpop.f32.mrf.mxu0 }
 0xdbf   :  { %1441 = vrot.lane.b32.xlu1 %v1433_v39, %s3447_s12  ;;  %v1768_v39 = vld [vmem:[#allocation7 + $0x160] sm:$0xff] }
 0xdd9   :  { %v1436_v44 = vpop.f32.mrf.mxu0 }
 0xde3   :  { %v1539_v34 = vpop.f32.mrf.mxu2 }
 0xde4   :  { %1547 = vrot.lane.b32.xlu1 %v1539_v34, %s3448_s22  ;;  %v1766_v34 = vld [vmem:[#allocation7 + $0x150] sm:$0xff] }
 0xde5   :  { %v1645_v61 = vpop.f32.mrf.mxu0 }
 0xde6   :  { %1653 = vrot.lane.b32.xlu0 %v1645_v61, %s3446_s25  ;;  %v1767_v61 = vld [vmem:[#allocation7 + $0x158] sm:$0xff] }
 0xdeb   :  { %v1542_v0 = vpop.f32.mrf.mxu2 }
 0xdec   :  { %1443 = vrot.lane.b32.xlu1 %v1436_v44, %s3447_s12  ;;  %v1769_v44 = vld [vmem:[#allocation7 + $0x168] sm:$0xff] }
 0xded   :  { %1827 = vmatpush.msra.mxu3 %v1769_v44  ;;  %v1883_v44 = vld [vmem:[#allocation8 + $0x128] sm:$0xff] }
 0xdef   :  { %1828 = vmatpush.msra.mxu3 %v1767_v61  ;;  %v1882_v61 = vld [vmem:[#allocation8 + $0x120] sm:$0xff] }
 0xdf1   :  { %1829 = vmatpush.msra.mxu3 %v1765_v1  ;;  %v1881_v1 = vld [vmem:[#allocation8 + $0x118] sm:$0xff] }
 0xdf3   :  { %1830 = vmatpush.msra.mxu3 %v1763_v3  ;;  %v1880_v3 = vld [vmem:[#allocation8 + $0x110] sm:$0xff] }
 0xdf4   :  { %1549 = vrot.lane.b32.xlu1 %v1542_v0, %s3448_s22  ;;  %v1764_v0 = vld [vmem:[#allocation7 + $0x140] sm:$0xff] }
 0xdf5   :  { %1831 = vmatpush.msra.mxu3 %v1761_v4  ;;  %v1879_v4 = vld [vmem:[#allocation8 + $0x108] sm:$0xff] }
 0xe1a   :  { %v1648_v53 = vpop.f32.mrf.mxu0 }
 0xe1b   :  { %1655 = vrot.lane.b32.xlu2 %v1648_v53, %s3446_s25  ;;  %v1759_v53 = vld [vmem:[#allocation7 + $0x118] sm:$0xff] }
 0xe1c   :  { %1832 = vmatpush.msra.mxu3 %v1759_v53  ;;  %v1878_v53 = vld [vmem:[#allocation8 + $0x100] sm:$0xff] }
 0xe1e   :  { %1833 = vmatpush.msra.mxu3 %v1757_v6  ;;  %v3058_v6 = vld [vmem:[%s4180_s13 + $0x1] ss:$4 sm:$0x3] }
 0xe31   :  { %v1442_v10 = vpop.permute.xlu1 %1441 }
 0xe32   :  { %1447 = vst.msk [vmem:[#allocation2] sm:$0xff] %vm566_vm15, %v1442_v10 }
 0xe56   :  { %v1548_v15 = vpop.permute.xlu1 %1547 }
 0xe57   :  { %1553 = vst.msk [vmem:[#allocation2] sm:$0xff] %vm673_vm0, %v1548_v15  ;;  %v3159_v15 = vld [vmem:[%s4177_s10 + $0x1] ss:$0 sm:$0xff] }
 0xe58   :  { %v1654_v16 = vpop.permute.xlu0 %1653 }
 0xe59   :  { %1659 = vst.msk [vmem:[#allocation2] sm:$0xff] %vm780_vm1, %v1654_v16 }
 0xe5e   :  { %v1444_v18 = vpop.permute.xlu1 %1443 }
 0xe5f   :  { %1448 = vst.msk [vmem:[#allocation2 + $0x8] sm:$0xff] %vm566_vm15, %v1444_v18 }
 0xe60   :  { %v1661_v20 = vld [vmem:[#allocation2] sm:$0xff] }
 0xe61   :  { %1698 = vmatmul.f32.vlgmr.msra.gmra.mxu1 %v1661_v20  ;;  %v3160_v20 = vld [vmem:[%s4178_s11 + $0x1] ss:$0 sm:$0xff] }
 0xe66   :  { %v1550_v21 = vpop.permute.xlu1 %1549 }
 0xe67   :  { %1554 = vst.msk [vmem:[#allocation2 + $0x8] sm:$0xff] %vm673_vm0, %v1550_v21 }
 0xe75   :  { %v1656_v22 = vpop.permute.xlu2 %1655 }
 0xe76   :  { %1660 = vst.msk [vmem:[#allocation2 + $0x8] sm:$0xff] %vm780_vm1, %v1656_v22 }
 0xe7d   :  { %v1662_v24 = vld [vmem:[#allocation2 + $0x8] sm:$0xff] }
 0xe7e   :  { %1701 = vmatmul.f32.gmra.mxu1 %v1662_v24  ;;  %v1893_v24 = vld [vmem:[#allocation8 + $0x178] sm:$0xff] }
 0xe7f   :  { %1912 = vmatpush.msrb.mxu0 %v1893_v24 }
 0xede   :  { %v1699_v26 = vpop.f32.mrf.mxu1 }
 0xedf   :  { %v1700_v27 = vadd.f32 %v3158_v25, %v1699_v26  ;;  %v1892_v26 = vld [vmem:[#allocation8 + $0x170] sm:$0xff] }
 0xee0   :  { %1913 = vmatpush.msrb.mxu0 %v1892_v26 }
 0xee1   :  { %v3877_v28 = vadd.f32 %v1700_v27, %v3761_v17  ;;  %v1786_v17 = vld [vmem:[#allocation7 + $0x1f0] sm:$0xff] }
 0xee2   :  { %1795 = vmatpush.msra.mxu2 %v1786_v17  ;;  %v1908_v27 = vld [vmem:[#allocation8 + $0x1f0] sm:$0xff] }
 0xee3   :  { %1709 = vadd.xlane.f32.xlu1 %v3877_v28 }
 0xee4   :  { %1796 = vmatpush.msra.mxu2 %v1784_v36 }
 0xee6   :  { %1797 = vmatpush.msra.mxu2 %v1782_v42 }
 0xee8   :  { %1798 = vmatpush.msra.mxu2 %v1780_v45  ;;  %v1890_v45 = vld [vmem:[#allocation8 + $0x160] sm:$0xff] }
 0xeea   :  { %1799 = vmatpush.msra.mxu2 %v1778_v47  ;;  %v1889_v47 = vld [vmem:[#allocation8 + $0x158] sm:$0xff] }
 0xeec   :  { %1800 = vmatpush.msra.mxu2 %v1776_v48  ;;  %v1888_v48 = vld [vmem:[#allocation8 + $0x150] sm:$0xff] }
 0xeee   :  { %1801 = vmatpush.msra.mxu2 %v1774_v51  ;;  %v1887_v51 = vld [vmem:[#allocation8 + $0x148] sm:$0xff] }
 0xef0   :  { %1802 = vmatpush.msra.mxu2 %v1772_v55  ;;  %v1902_v55 = vld [vmem:[#allocation8 + $0x1c0] sm:$0xff] }
 0xef2   :  { %1803 = vmatpush.msra.mxu2 %v1770_v58  ;;  %v1901_v58 = vld [vmem:[#allocation8 + $0x1b8] sm:$0xff] }
 0xef4   :  { %1804 = vmatpush.msra.mxu2 %v1768_v39  ;;  %v1900_v39 = vld [vmem:[#allocation8 + $0x1b0] sm:$0xff] }
 0xef6   :  { %1805 = vmatpush.msra.mxu2 %v1766_v34  ;;  %v1899_v34 = vld [vmem:[#allocation8 + $0x1a8] sm:$0xff] }
 0xef8   :  { %1806 = vmatpush.msra.mxu2 %v1764_v0  ;;  %v1898_v0 = vld [vmem:[#allocation8 + $0x1a0] sm:$0xff] }
 0xefa   :  { %1807 = vmatpush.msra.mxu2 %v1762_v2  ;;  %v1897_v2 = vld [vmem:[#allocation8 + $0x198] sm:$0xff] }
 0xefb   :  { %v1702_v49 = vpop.f32.mrf.mxu1 }
 0xefc   :  { %v1703_v29 = vadd.f32 %v3158_v25, %v1702_v49  ;;  %1808 = vmatpush.msra.mxu2 %v1760_v60  ;;  %v1909_v25 = vld [vmem:[#allocation8 + $0x1f8] sm:$0xff]  ;;  %v1891_v49 = vld [vmem:[#allocation8 + $0x168] sm:$0xff]  ;;  %v1896_v60 = vld [vmem:[#allocation8 + $0x190] sm:$0xff] }
 0xefd   :  { %1935 = vmatpush.msrb.mxu1 %v1909_v25  ;;  %1914 = vmatpush.msrb.mxu0 %v1891_v49 }
 0xefe   :  { %v3881_v30 = vadd.f32 %v1703_v29, %v3765_v23  ;;  %1809 = vmatpush.msra.mxu2 %v1758_v19  ;;  %v1907_v29 = vld [vmem:[#allocation8 + $0x1e8] sm:$0xff] }
 0xeff   :  { %1936 = vmatpush.msrb.mxu1 %v1908_v27  ;;  %1915 = vmatpush.msrb.mxu0 %v1890_v45  ;;  %v1895_v19 = vld [vmem:[#allocation8 + $0x188] sm:$0xff] }
 0xf00   :  { %1711 = vadd.xlane.f32.xlu0 %v3881_v30  ;;  %1810 = vmatpush.msra.mxu2 %v1756_v5  ;;  %v1894_v5 = vld [vmem:[#allocation8 + $0x180] sm:$0xff] }
 0xf01   :  { %1937 = vmatpush.msrb.mxu1 %v1907_v29  ;;  %1916 = vmatpush.msrb.mxu0 %v1889_v47 }
 0xf03   :  { %1938 = vmatpush.msrb.mxu1 %v1906_v46  ;;  %1917 = vmatpush.msrb.mxu0 %v1888_v48 }
 0xf05   :  { %1939 = vmatpush.msrb.mxu1 %v1905_v52  ;;  %1918 = vmatpush.msrb.mxu0 %v1887_v51 }
 0xf07   :  { %1940 = vmatpush.msrb.mxu1 %v1904_v50 }
 0xf09   :  { %1941 = vmatpush.msrb.mxu1 %v1903_v54 }
 0xf0b   :  { %1942 = vmatpush.msrb.mxu1 %v1902_v55 }
 0xf0d   :  { %1943 = vmatpush.msrb.mxu1 %v1901_v58 }
 0xf0f   :  { %1944 = vmatpush.msrb.mxu1 %v1900_v39 }
 0xf11   :  { %1945 = vmatpush.msrb.mxu1 %v1899_v34 }
 0xf13   :  { %1946 = vmatpush.msrb.mxu1 %v1898_v0 }
 0xf15   :  { %1947 = vmatpush.msrb.mxu1 %v1897_v2 }
 0xf17   :  { %1948 = vmatpush.msrb.mxu1 %v1896_v60 }
 0xf19   :  { %1949 = vmatpush.msrb.mxu1 %v1895_v19 }
 0xf1b   :  { %1950 = vmatpush.msrb.mxu1 %v1894_v5 }
 0xf56   :  { %v1710_v31 = vpop.xlane.xlu1 %1709 }
 0xf57   :  { %v1713_v32 = vmul.f32 %v1710_v31, %v3582_v8 }
 0xf59   :  { %v3886_v33 = vsub.f32 %v3877_v28, %v1713_v32 }
 0xf5b   :  { %v1717_v35 = vmul.f32 %v3886_v33, %v3886_v33 }
 0xf5d   :  { %1719 = vadd.xlane.f32.xlu2 %v1717_v35 }
 0xf73   :  { %v1712_v23 = vpop.xlane.xlu0 %1711 }
 0xf74   :  { %v1714_v38 = vmul.f32 %v1712_v23, %v3582_v8 }
 0xf76   :  { %v3892_v40 = vsub.f32 %v3881_v30, %v1714_v38 }
 0xf78   :  { %v1718_v41 = vmul.f32 %v3892_v40, %v3892_v40 }
 0xf7a   :  { %1721 = vadd.xlane.f32.xlu1 %v1718_v41 }
 0xfd0   :  { %v1720_v7 = vpop.xlane.xlu2 %1719 }
 0xfd1   :  { %v1723_v9 = vmul.f32 %v1720_v7, %v3582_v8  ;;  %v1791_v7 = vperm.slane %v3058_v6, 0 }
 0xfd3   :  { %v1725_v63 = vadd.f32 1e-05, %v1723_v9  ;;  %v1792_v9 = vperm.slane %v3058_v6, 1  ;;  %v2054_v6 = vld [vmem:[#allocation3 + $0x468] sm:$0xff] }
 0xfd4   :  { %2066 = vmatpush.msrb.mxu2 %v2054_v6 }
 0xfd5   :  { %3261 = vrsqrt.f32 %v1725_v63  ;;  %vm1733_vm4 = vweird.f32 %v1725_v63 }
 0xfdb   :  { %v3262_v10 = vpop.eup %3261 }
 0xfdc   :  { %v1728_v11 = vmul.f32 %v3262_v10, %v1725_v63  ;;  %vm1734_vm3 = vweird.f32 %v3262_v10 }
 0xfdd   :  { %vm1735_vm5 = vmor %vm1733_vm4, %vm1734_vm3 }
 0xfde   :  { %v1729_v12 = vmul.f32 %v3262_v10, %v1728_v11 }
 0xfe0   :  { %v1730_v57 = vmul.f32 0.5, %v1729_v12 }
 0xfe2   :  { %v1731_v13 = vsub.f32 1.5, %v1730_v57 }
 0xfe4   :  { %v1732_v14 = vmul.f32 %v3262_v10, %v1731_v13 }
 0xfe6   :  { %v1736_v16 = vsel %vm1735_vm5, %v3262_v10, %v1732_v14 }
 0xfe7   :  { %v1747_v18 = vmul.f32 %v1736_v16, %v3886_v33 }
 0xfe9   :  { %v1750_v21 = vmul.f32 %v3159_v15, %v1747_v18 }
 0xfeb   :  { %v1753_v22 = vadd.f32 %v3160_v20, %v1750_v21 }
 0xfed   :  { %1811 = vmatmul.f32.vlgmr.msra.gmra.mxu2 %v1753_v22  ;;  %1834 = vmatmul.f32.vlgmr.msra.gmra.mxu3 %v1753_v22  ;;  %v1722_v31 = vpop.xlane.xlu1 %1721 }
 0xfee   :  { %v1724_v32 = vmul.f32 %v1722_v31, %v3582_v8 }
 0xff0   :  { %v1726_v33 = vadd.f32 1e-05, %v1724_v32 }
 0xff2   :  { %3263 = vrsqrt.f32 %v1726_v33  ;;  %vm1743_vm7 = vweird.f32 %v1726_v33 }
 0xff8   :  { %v3264_v35 = vpop.eup %3263 }
 0xff9   :  { %v1738_v17 = vmul.f32 %v3264_v35, %v1726_v33  ;;  %vm1744_vm6 = vweird.f32 %v3264_v35 }
 0xffa   :  { %vm1745_vm8 = vmor %vm1743_vm7, %vm1744_vm6  ;;  %vm2915_vm6 = vcmask 523264  }
 0xffb   :  { %v1739_v62 = vmul.f32 %v3264_v35, %v1738_v17 }
 0xffd   :  { %v1740_v36 = vmul.f32 0.5, %v1739_v62 }
 0xfff   :  { %v1741_v37 = vsub.f32 1.5, %v1740_v36 }
0x1001   :  { %v1742_v23 = vmul.f32 %v3264_v35, %v1741_v37 }
0x1003   :  { %v1746_v38 = vsel %vm1745_vm8, %v3264_v35, %v1742_v23 }
0x1004   :  { %v1748_v41 = vmul.f32 %v1746_v38, %v3892_v40  ;;  %v1886_v40 = vld [vmem:[#allocation8 + $0x140] sm:$0xff] }
0x1005   :  { %1919 = vmatpush.msrb.mxu0 %v1886_v40 }
0x1006   :  { %v1751_v42 = vmul.f32 %v3159_v15, %v1748_v41 }
0x1007   :  { %1920 = vmatpush.msrb.mxu0 %v1885_v56 }
0x1008   :  { %v1754_v43 = vadd.f32 %v3160_v20, %v1751_v42 }
0x1009   :  { %1921 = vmatpush.msrb.mxu0 %v1884_v59  ;;  %v3161_v59 = vld [vmem:[%s4182_s15 + $0x1] ss:$0 sm:$0xff] }
0x100a   :  { %1814 = vmatmul.f32.gmra.mxu2 %v1754_v43  ;;  %1837 = vmatmul.f32.gmra.mxu3 %v1754_v43 }
0x100b   :  { %1922 = vmatpush.msrb.mxu0 %v1883_v44 }
0x100d   :  { %1923 = vmatpush.msrb.mxu0 %v1882_v61 }
0x100f   :  { %1924 = vmatpush.msrb.mxu0 %v1881_v1 }
0x1011   :  { %1925 = vmatpush.msrb.mxu0 %v1880_v3 }
0x1013   :  { %1926 = vmatpush.msrb.mxu0 %v1879_v4 }
0x1015   :  { %1927 = vmatpush.msrb.mxu0 %v1878_v53 }
0x1070   :  { %v1812_v63 = vpop.f32.mrf.mxu2  ;;  %v1835_v10 = vpop.f32.mrf.mxu3 }
0x1071   :  { %v1813_v11 = vadd.f32 %v1812_v63, %v1791_v7  ;;  %v1836_v12 = vadd.f32 %v1835_v10, %v1792_v9  ;;  %v2051_v63 = vld [vmem:[#allocation3 + $0x450] sm:$0xff]  ;;  %v2052_v10 = vld [vmem:[#allocation3 + $0x458] sm:$0xff] }
0x1072   :  { %2067 = vmatpush.msrb.mxu2 %v2051_v63 }
0x1073   :  { %v1841_v57 = vmul.f32 %v1813_v11, %v1813_v11  ;;  %v1842_v13 = vmul.f32 %v1836_v12, %v1836_v12 }
0x1075   :  { %v1845_v14 = vmul.f32 %v1841_v57, %v1813_v11  ;;  %v1846_v15 = vmul.f32 %v1842_v13, %v1836_v12 }
0x1077   :  { %v1849_v16 = vmul.f32 0.044715, %v1845_v14  ;;  %v1850_v18 = vmul.f32 0.044715, %v1846_v15  ;;  %v2048_v14 = vld [vmem:[#allocation3 + $0x438] sm:$0xff]  ;;  %v2049_v15 = vld [vmem:[#allocation3 + $0x440] sm:$0xff] }
0x1078   :  { %2068 = vmatpush.msrb.mxu2 %v2048_v14 }
0x1079   :  { %v1853_v20 = vadd.f32 %v1849_v16, %v1813_v11  ;;  %v1854_v21 = vadd.f32 %v1850_v18, %v1836_v12  ;;  %v2050_v16 = vld [vmem:[#allocation3 + $0x448] sm:$0xff]  ;;  %v2045_v18 = vld [vmem:[#allocation3 + $0x420] sm:$0xff] }
0x107a   :  { %2069 = vmatpush.msrb.mxu2 %v2045_v18 }
0x107b   :  { %v1857_v22 = vmul.f32 0.7978846, %v1853_v20  ;;  %v1858_v24 = vmul.f32 0.7978846, %v1854_v21  ;;  %v2046_v20 = vld [vmem:[#allocation3 + $0x428] sm:$0xff]  ;;  %v2047_v21 = vld [vmem:[#allocation3 + $0x430] sm:$0xff] }
0x107d   :  { %3265 = vtanh.f32 %v1857_v22  ;;  %v2042_v22 = vld [vmem:[#allocation3 + $0x408] sm:$0xff] }
0x107e   :  { %3267 = vtanh.f32 %v1858_v24  ;;  %v2043_v24 = vld [vmem:[#allocation3 + $0x410] sm:$0xff]  ;;  %2070 = vmatpush.msrb.mxu2 %v2042_v22 }
0x1083   :  { %v3266_v25 = vpop.eup %3265 }
0x1084   :  { %v3268_v26 = vpop.eup %3267  ;;  %v1865_v27 = vadd.f32 1.0, %v3266_v25  ;;  %v2044_v25 = vld [vmem:[#allocation3 + $0x418] sm:$0xff] }
0x1085   :  { %v1866_v49 = vadd.f32 1.0, %v3268_v26  ;;  %v2039_v26 = vld [vmem:[#allocation3 + $0x3f0] sm:$0xff] }
0x1086   :  { %v1869_v29 = vmul.f32 0.5, %v1865_v27  ;;  %v2040_v27 = vld [vmem:[#allocation3 + $0x3f8] sm:$0xff]  ;;  %2071 = vmatpush.msrb.mxu2 %v2039_v26 }
0x1087   :  { %v1870_v31 = vmul.f32 0.5, %v1866_v49  ;;  %v2041_v49 = vld [vmem:[#allocation3 + $0x400] sm:$0xff] }
0x1088   :  { %v1873_v32 = vmul.f32 %v1869_v29, %v1813_v11  ;;  %v2036_v29 = vld [vmem:[#allocation3 + $0x3d8] sm:$0xff] }
0x1089   :  { %v1874_v33 = vmul.f32 %v1870_v31, %v1836_v12  ;;  %v2037_v31 = vld [vmem:[#allocation3 + $0x3e0] sm:$0xff]  ;;  %2072 = vmatpush.msrb.mxu2 %v2036_v29 }
0x108a   :  { %1928 = vmatmul.f32.vlgmr.msrb.gmra.mxu0 %v1873_v32  ;;  %v2038_v32 = vld [vmem:[#allocation3 + $0x3e8] sm:$0xff] }
0x108b   :  { %1951 = vmatmul.f32.vlgmr.msrb.gmra.mxu1 %v1874_v33  ;;  %v2033_v33 = vld [vmem:[#allocation3 + $0x3c0] sm:$0xff] }
0x108c   :  { %2073 = vmatpush.msrb.mxu2 %v2033_v33 }
0x108d   :  { %v1815_v35 = vpop.f32.mrf.mxu2  ;;  %v1838_v17 = vpop.f32.mrf.mxu3 }
0x108e   :  { %v1816_v62 = vadd.f32 %v1815_v35, %v1791_v7  ;;  %v1839_v36 = vadd.f32 %v1838_v17, %v1792_v9  ;;  %v2055_v7 = vld [vmem:[#allocation3 + $0x470] sm:$0xff]  ;;  %v2056_v9 = vld [vmem:[#allocation3 + $0x478] sm:$0xff]  ;;  %v2034_v35 = vld [vmem:[#allocation3 + $0x3c8] sm:$0xff] }
0x108f   :  { %2089 = vmatpush.msrb.mxu3 %v2055_v7  ;;  %2112 = vmatpush.msra.mxu0 %v2056_v9  ;;  %v2035_v17 = vld [vmem:[#allocation3 + $0x3d0] sm:$0xff] }
0x1090   :  { %v1843_v37 = vmul.f32 %v1816_v62, %v1816_v62  ;;  %v1844_v23 = vmul.f32 %v1839_v36, %v1839_v36  ;;  %v3162_v7 = vld [vmem:[%s4208_s30 + $0x2] ss:$0 sm:$0xff] }
0x1091   :  { %2090 = vmatpush.msrb.mxu3 %v2052_v10  ;;  %v3163_v10 = vld [vmem:[%s4209_s1 + $0x2] ss:$0 sm:$0xff] }
0x1092   :  { %v1847_v38 = vmul.f32 %v1843_v37, %v1816_v62  ;;  %v1848_v41 = vmul.f32 %v1844_v23, %v1839_v36  ;;  %v2032_v37 = vld [vmem:[#allocation3 + $0x3b8] sm:$0xff]  ;;  %v2027_v23 = vld [vmem:[#allocation3 + $0x390] sm:$0xff] }
0x1093   :  { %2091 = vmatpush.msrb.mxu3 %v2049_v15 }
0x1094   :  { %v1851_v42 = vmul.f32 0.044715, %v1847_v38  ;;  %v1852_v43 = vmul.f32 0.044715, %v1848_v41  ;;  %v2028_v38 = vld [vmem:[#allocation3 + $0x398] sm:$0xff]  ;;  %v2029_v41 = vld [vmem:[#allocation3 + $0x3a0] sm:$0xff] }
0x1095   :  { %2092 = vmatpush.msrb.mxu3 %v2046_v20 }
0x1096   :  { %v1855_v45 = vadd.f32 %v1851_v42, %v1816_v62  ;;  %v1856_v46 = vadd.f32 %v1852_v43, %v1839_v36  ;;  %v2024_v42 = vld [vmem:[#allocation3 + $0x378] sm:$0xff]  ;;  %v2025_v43 = vld [vmem:[#allocation3 + $0x380] sm:$0xff] }
0x1097   :  { %2093 = vmatpush.msrb.mxu3 %v2043_v24 }
0x1098   :  { %v1859_v47 = vmul.f32 0.7978846, %v1855_v45  ;;  %v1860_v52 = vmul.f32 0.7978846, %v1856_v46  ;;  %v2026_v45 = vld [vmem:[#allocation3 + $0x388] sm:$0xff]  ;;  %v2021_v46 = vld [vmem:[#allocation3 + $0x360] sm:$0xff] }
0x1099   :  { %2094 = vmatpush.msrb.mxu3 %v2040_v27  ;;  %v3059_v27 = vld [vmem:[%s4174_s7 + $0x2] ss:$4 sm:$0x7] }
0x109a   :  { %3269 = vtanh.f32 %v1859_v47  ;;  %v2022_v47 = vld [vmem:[#allocation3 + $0x368] sm:$0xff]  ;;  %v2061_v29 = vperm.slane %v3059_v27, 1 }
0x109b   :  { %3271 = vtanh.f32 %v1860_v52  ;;  %2095 = vmatpush.msrb.mxu3 %v2037_v31  ;;  %v2023_v52 = vld [vmem:[#allocation3 + $0x370] sm:$0xff] }
0x109d   :  { %2096 = vmatpush.msrb.mxu3 %v2034_v35 }
0x10a0   :  { %v3270_v48 = vpop.eup %3269 }
0x10a1   :  { %v3272_v50 = vpop.eup %3271  ;;  %v1867_v51 = vadd.f32 1.0, %v3270_v48  ;;  %v2018_v48 = vld [vmem:[#allocation3 + $0x348] sm:$0xff] }
0x10a2   :  { %v1868_v54 = vadd.f32 1.0, %v3272_v50  ;;  %v2019_v50 = vld [vmem:[#allocation3 + $0x350] sm:$0xff] }
0x10a3   :  { %v1871_v40 = vmul.f32 0.5, %v1867_v51  ;;  %v2020_v51 = vld [vmem:[#allocation3 + $0x358] sm:$0xff] }
0x10a4   :  { %v1872_v55 = vmul.f32 0.5, %v1868_v54  ;;  %v2015_v54 = vld [vmem:[#allocation3 + $0x330] sm:$0xff] }
0x10a5   :  { %v1875_v56 = vmul.f32 %v1871_v40, %v1816_v62  ;;  %v2030_v62 = vld [vmem:[#allocation3 + $0x3a8] sm:$0xff]  ;;  %v2016_v40 = vld [vmem:[#allocation3 + $0x338] sm:$0xff] }
0x10a6   :  { %v1876_v58 = vmul.f32 %v1872_v55, %v1839_v36  ;;  %v2031_v36 = vld [vmem:[#allocation3 + $0x3b0] sm:$0xff]  ;;  %2074 = vmatpush.msrb.mxu2 %v2030_v62  ;;  %v2017_v55 = vld [vmem:[#allocation3 + $0x340] sm:$0xff] }
0x10a7   :  { %1931 = vmatmul.f32.gmra.mxu0 %v1875_v56  ;;  %2097 = vmatpush.msrb.mxu3 %v2031_v36  ;;  %v2012_v56 = vld [vmem:[#allocation3 + $0x318] sm:$0xff] }
0x10a8   :  { %1954 = vmatmul.f32.gmra.mxu1 %v1876_v58  ;;  %2075 = vmatpush.msrb.mxu2 %v2027_v23  ;;  %v2013_v58 = vld [vmem:[#allocation3 + $0x320] sm:$0xff] }
0x10a9   :  { %2098 = vmatpush.msrb.mxu3 %v2028_v38 }
0x10aa   :  { %2076 = vmatpush.msrb.mxu2 %v2024_v42 }
0x10ab   :  { %2099 = vmatpush.msrb.mxu3 %v2025_v43 }
0x10ac   :  { %2077 = vmatpush.msrb.mxu2 %v2021_v46 }
0x10ad   :  { %2100 = vmatpush.msrb.mxu3 %v2022_v47 }
0x10ae   :  { %2078 = vmatpush.msrb.mxu2 %v2018_v48 }
0x10af   :  { %2101 = vmatpush.msrb.mxu3 %v2019_v50 }
0x10b0   :  { %2079 = vmatpush.msrb.mxu2 %v2015_v54 }
0x10b1   :  { %2102 = vmatpush.msrb.mxu3 %v2016_v40 }
0x10b2   :  { %2080 = vmatpush.msrb.mxu2 %v2012_v56 }
0x10b3   :  { %2103 = vmatpush.msrb.mxu3 %v2013_v58  ;;  %v3331_v58 = vld [vmem:[%s4210_s14] sm:$0xff] }
0x1107   :  { %v1929_v39 = vpop.f32.mrf.mxu0 }
0x1108   :  { %v1930_v44 = vadd.f32 %v3161_v59, %v1929_v39  ;;  %v1952_v34 = vpop.f32.mrf.mxu1  ;;  %v2009_v39 = vld [vmem:[#allocation3 + $0x300] sm:$0xff] }
0x1109   :  { %2081 = vmatpush.msrb.mxu2 %v2009_v39 }
0x110a   :  { %v1953_v61 = vadd.f32 %v1952_v34, %v1930_v44  ;;  %v2010_v44 = vld [vmem:[#allocation3 + $0x308] sm:$0xff]  ;;  %v2011_v34 = vld [vmem:[#allocation3 + $0x310] sm:$0xff] }
0x110b   :  { %2104 = vmatpush.msrb.mxu3 %v2010_v44 }
0x110c   :  { %v3913_v0 = vadd.f32 %v1953_v61, %v3877_v28 }
0x110e   :  { %1962 = vadd.xlane.f32.xlu0 %v3913_v0 }
0x1124   :  { %v1932_v1 = vpop.f32.mrf.mxu0 }
0x1125   :  { %v1933_v2 = vadd.f32 %v3161_v59, %v1932_v1  ;;  %v1955_v3 = vpop.f32.mrf.mxu1  ;;  %v2014_v59 = vld [vmem:[#allocation3 + $0x328] sm:$0xff] }
0x1127   :  { %v1956_v60 = vadd.f32 %v1955_v3, %v1933_v2 }
0x1129   :  { %v3917_v4 = vadd.f32 %v1956_v60, %v3881_v30  ;;  %v2053_v30 = vld [vmem:[#allocation3 + $0x460] sm:$0xff] }
0x112a   :  { %2113 = vmatpush.msra.mxu0 %v2053_v30 }
0x112b   :  { %1964 = vadd.xlane.f32.xlu1 %v3917_v4 }
0x112c   :  { %2114 = vmatpush.msra.mxu0 %v2050_v16 }
0x112e   :  { %2115 = vmatpush.msra.mxu0 %v2047_v21 }
0x1130   :  { %2116 = vmatpush.msra.mxu0 %v2044_v25 }
0x1132   :  { %2117 = vmatpush.msra.mxu0 %v2041_v49  ;;  %v2060_v49 = vperm.slane %v3059_v27, 0 }
0x1134   :  { %2118 = vmatpush.msra.mxu0 %v2038_v32 }
0x1136   :  { %2119 = vmatpush.msra.mxu0 %v2035_v17  ;;  %v2062_v17 = vperm.slane %v3059_v27, 2 }
0x1138   :  { %2120 = vmatpush.msra.mxu0 %v2032_v37 }
0x113a   :  { %2121 = vmatpush.msra.mxu0 %v2029_v41 }
0x113c   :  { %2122 = vmatpush.msra.mxu0 %v2026_v45 }
0x113e   :  { %2123 = vmatpush.msra.mxu0 %v2023_v52 }
0x1140   :  { %2124 = vmatpush.msra.mxu0 %v2020_v51 }
0x1142   :  { %2125 = vmatpush.msra.mxu0 %v2017_v55 }
0x1144   :  { %2126 = vmatpush.msra.mxu0 %v2014_v59 }
0x1146   :  { %2127 = vmatpush.msra.mxu0 %v2011_v34 }
0x1181   :  { %v1963_v19 = vpop.xlane.xlu0 %1962 }
0x1182   :  { %v1966_v53 = vmul.f32 %v1963_v19, %v3582_v8 }
0x1184   :  { %v3922_v5 = vsub.f32 %v3913_v0, %v1966_v53 }
0x1186   :  { %v1970_v28 = vmul.f32 %v3922_v5, %v3922_v5 }
0x1188   :  { %1972 = vadd.xlane.f32.xlu0 %v1970_v28 }
0x119e   :  { %v1965_v11 = vpop.xlane.xlu1 %1964 }
0x119f   :  { %v1967_v12 = vmul.f32 %v1965_v11, %v3582_v8 }
0x11a1   :  { %v3928_v57 = vsub.f32 %v3917_v4, %v1967_v12 }
0x11a3   :  { %v1971_v13 = vmul.f32 %v3928_v57, %v3928_v57 }
0x11a5   :  { %1974 = vadd.xlane.f32.xlu1 %v1971_v13 }
0x11fb   :  { %v1973_v61 = vpop.xlane.xlu0 %1972 }
0x11fc   :  { %v1976_v1 = vmul.f32 %v1973_v61, %v3582_v8 }
0x11fe   :  { %v1978_v2 = vadd.f32 1e-05, %v1976_v1  ;;  %v3332_v1 = vld [vmem:[%s4210_s14 + $0x8] sm:$0xff] }
0x1200   :  { %3273 = vrsqrt.f32 %v1978_v2  ;;  %vm1986_vm10 = vweird.f32 %v1978_v2 }
0x1206   :  { %v3274_v3 = vpop.eup %3273 }
0x1207   :  { %v1981_v60 = vmul.f32 %v3274_v3, %v1978_v2  ;;  %vm1987_vm9 = vweird.f32 %v3274_v3 }
0x1208   :  { %vm1988_vm11 = vmor %vm1986_vm10, %vm1987_vm9 }
0x1209   :  { %v1982_v19 = vmul.f32 %v3274_v3, %v1981_v60 }
0x120b   :  { %v1983_v53 = vmul.f32 0.5, %v1982_v19 }
0x120d   :  { %v1984_v28 = vsub.f32 1.5, %v1983_v53 }
0x120f   :  { %v1985_v6 = vmul.f32 %v3274_v3, %v1984_v28 }
0x1211   :  { %v1989_v9 = vsel %vm1988_vm11, %v3274_v3, %v1985_v6 }
0x1212   :  { %v2000_v63 = vmul.f32 %v1989_v9, %v3922_v5 }
0x1214   :  { %v2003_v30 = vmul.f32 %v3162_v7, %v2000_v63 }
0x1216   :  { %v2006_v11 = vadd.f32 %v3163_v10, %v2003_v30 }
0x1218   :  { %2082 = vmatmul.f32.vlgmr.msrb.gmra.mxu2 %v2006_v11  ;;  %2105 = vmatmul.f32.vlgmr.msrb.gmra.mxu3 %v2006_v11  ;;  %v1975_v12 = vpop.xlane.xlu1 %1974 }
0x1219   :  { %2128 = vmatmul.f32.vlgmr.msra.gmra.mxu0 %v2006_v11  ;;  %v1977_v13 = vmul.f32 %v1975_v12, %v3582_v8 }
0x121b   :  { %v1979_v14 = vadd.f32 1e-05, %v1977_v13 }
0x121d   :  { %3275 = vrsqrt.f32 %v1979_v14  ;;  %vm1996_vm2 = vweird.f32 %v1979_v14 }
0x1223   :  { %v3276_v15 = vpop.eup %3275 }
0x1224   :  { %v1991_v16 = vmul.f32 %v3276_v15, %v1979_v14  ;;  %vm1997_vm12 = vweird.f32 %v3276_v15 }
0x1225   :  { %vm1998_vm3 = vmor %vm1996_vm2, %vm1997_vm12 }
0x1226   :  { %v1992_v18 = vmul.f32 %v3276_v15, %v1991_v16 }
0x1228   :  { %v1993_v20 = vmul.f32 0.5, %v1992_v18 }
0x122a   :  { %v1994_v21 = vsub.f32 1.5, %v1993_v20 }
0x122c   :  { %v1995_v5 = vmul.f32 %v3276_v15, %v1994_v21 }
0x122e   :  { %v1999_v22 = vsel %vm1998_vm3, %v3276_v15, %v1995_v5 }
0x122f   :  { %v2001_v24 = vmul.f32 %v1999_v22, %v3928_v57 }
0x1231   :  { %v2004_v25 = vmul.f32 %v3162_v7, %v2001_v24 }
0x1233   :  { %v2007_v26 = vadd.f32 %v3163_v10, %v2004_v25 }
0x1235   :  { %2085 = vmatmul.f32.gmra.mxu2 %v2007_v26  ;;  %2108 = vmatmul.f32.gmra.mxu3 %v2007_v26 }
0x1236   :  { %2131 = vmatmul.f32.gmra.mxu0 %v2007_v26 }
0x1296   :  { %v2129_v57 = vpop.f32.mrf.mxu0 }
0x1297   :  { %v2130_v36 = vadd.f32 %v2129_v57, %v2062_v17 }
0x129b   :  { %v2083_v31 = vpop.f32.mrf.mxu2  ;;  %v2106_v32 = vpop.f32.mrf.mxu3 }
0x129c   :  { %v2084_v33 = vadd.f32 %v2083_v31, %v2060_v49  ;;  %v2107_v35 = vadd.f32 %v2106_v32, %v2061_v29 }
0x129e   :  { %2227 = vrot.lane.b32.xlu0 %v2107_v35, %s3446_s25  ;;  %2223 = vrot.lane.b32.xlu1 %v2084_v33, %s3446_s25 }
0x12a6   :  { %2335 = vrot.lane.b32.xlu1 %v2107_v35, %s3448_s22 }
0x12ae   :  { %2437 = vrot.lane.b32.xlu1 %v2084_v33, %s3447_s12 }
0x12b3   :  { %v2132_v62 = vpop.f32.mrf.mxu0 }
0x12b4   :  { %v2133_v37 = vadd.f32 %v2132_v62, %v2062_v17 }
0x12b6   :  { %2212 = vmatpush.msra.mxu2 %v2133_v37  ;;  %v3949_v23 = vpack.i.bf16 %v2130_v36, %v2133_v37 }
0x12b8   :  { %2213 = vmatpush.msra.mxu2 %v2130_v36  ;;  %v2086_v38 = vpop.f32.mrf.mxu2  ;;  %v2109_v41 = vpop.f32.mrf.mxu3 }
0x12b9   :  { %v2087_v42 = vadd.f32 %v2086_v38, %v2060_v49  ;;  %v2110_v43 = vadd.f32 %v2109_v41, %v2061_v29 }
0x12bb   :  { %2229 = vrot.lane.b32.xlu2 %v2110_v43, %s3446_s25  ;;  %3060 = vmatpush.xpose.msk.msra.mxu1 %vm370_vm13, %v2110_v43 }
0x12bc   :  { %2225 = vrot.lane.b32.xlu0 %v2087_v42, %s3446_s25 }
0x12bf   :  { %3061 = vmatpush.xpose.msk.msra.mxu1 %vm370_vm13, %v2107_v35 }
0x12c2   :  { %3062 = vmatmul.msk.f32.vlgmr.msra.gmra.mxu1 %vm370_vm13, %v2084_v33 }
0x12c3   :  { %2337 = vrot.lane.b32.xlu2 %v2110_v43, %s3448_s22 }
0x12c4   :  { %2443 = vrot.lane.b32.xlu0 %v2110_v43, %s3447_s12 }
0x12ca   :  { %3063 = vmatmul.msk.f32.gmra.mxu1 %vm370_vm13, %v2087_v42 }
0x12cb   :  { %2441 = vrot.lane.b32.xlu2 %v2107_v35, %s3447_s12 }
0x12cc   :  { %2331 = vrot.lane.b32.xlu0 %v2084_v33, %s3448_s22 }
0x12d3   :  { %2333 = vrot.lane.b32.xlu2 %v2087_v42, %s3448_s22 }
0x12d4   :  { %2439 = vrot.lane.b32.xlu0 %v2087_v42, %s3447_s12 }
0x1310   :  { %v2224_v46 = vpop.permute.xlu1 %2223  ;;  %v2228_v47 = vpop.permute.xlu0 %2227 }
0x1315   :  { %v2230_v45 = vpop.permute.xlu2 %2229 }
0x1316   :  { %3066 = vmatpush.xpose.msk.msra.mxu3 %vm370_vm13, %v2230_v45 }
0x1318   :  { %v2336_v48 = vpop.permute.xlu1 %2335 }
0x131a   :  { %3067 = vmatpush.xpose.msk.msra.mxu3 %vm370_vm13, %v2228_v47 }
0x131d   :  { %v2338_v52 = vpop.permute.xlu2 %2337  ;;  %3068 = vmatmul.msk.f32.vlgmr.msra.gmra.mxu3 %vm370_vm13, %v2224_v46 }
0x131e   :  { %3072 = vmatpush.xpose.msk.msrb.mxu1 %vm370_vm13, %v2338_v52 }
0x1320   :  { %v2438_v40 = vpop.permute.xlu1 %2437 }
0x1322   :  { %3073 = vmatpush.xpose.msk.msrb.mxu1 %vm370_vm13, %v2336_v48 }
0x1325   :  { %v2442_v54 = vpop.permute.xlu2 %2441 }
0x132d   :  { %v2334_v44 = vpop.permute.xlu2 %2333 }
0x132e   :  { %v2226_v50 = vpop.permute.xlu0 %2225 }
0x132f   :  { %3069 = vmatmul.msk.f32.gmra.mxu3 %vm370_vm13, %v2226_v50 }
0x1336   :  { %v2444_v51 = vpop.permute.xlu0 %2443 }
0x1337   :  { %3078 = vmatpush.xpose.msk.msrb.mxu3 %vm370_vm13, %v2444_v51 }
0x133b   :  { %3079 = vmatpush.xpose.msk.msrb.mxu3 %vm370_vm13, %v2442_v54 }
0x133e   :  { %v2332_v55 = vpop.permute.xlu0 %2331  ;;  %3080 = vmatmul.msk.f32.vlgmr.msrb.gmra.mxu3 %vm370_vm13, %v2438_v40 }
0x133f   :  { %3074 = vmatmul.msk.f32.vlgmr.msrb.gmra.mxu1 %vm370_vm13, %v2332_v55  ;;  %v2164_v56 = vpop.f32.mrf.mxu1 }
0x1340   :  { %v2165_v59 = vadd.f32 %v3331_v58, %v2164_v56 }
0x1342   :  { %v2170_v39 = vsel %vm406_vm14, %v2165_v59, -inf }
0x1343   :  { %2171 = vmax.xlane.f32.xlu1 %v2170_v39 }
0x1346   :  { %v2440_v34 = vpop.permute.xlu0 %2439 }
0x1347   :  { %3075 = vmatmul.msk.f32.gmra.mxu1 %vm370_vm13, %v2334_v44  ;;  %3081 = vmatmul.msk.f32.gmra.mxu3 %vm370_vm13, %v2440_v34  ;;  %v2167_v61 = vpop.f32.mrf.mxu1 }
0x1348   :  { %v2168_v2 = vadd.f32 %v3332_v1, %v2167_v61 }
0x134a   :  { %v2173_v3 = vsel %vm406_vm14, %v2168_v2, -inf }
0x134b   :  { %2174 = vmax.xlane.f32.xlu0 %v2173_v3 }
0x13a0   :  { %v2256_v60 = vpop.f32.mrf.mxu3 }
0x13a1   :  { %v2257_v19 = vadd.f32 %v3331_v58, %v2256_v60 }
0x13a3   :  { %v2262_v53 = vsel %vm406_vm14, %v2257_v19, -inf }
0x13a4   :  { %2263 = vmax.xlane.f32.xlu2 %v2262_v53 }
0x13b2   :  { %v2259_v28 = vpop.f32.mrf.mxu3 }
0x13b3   :  { %v2260_v6 = vadd.f32 %v3332_v1, %v2259_v28 }
0x13b5   :  { %v2265_v7 = vsel %vm406_vm14, %v2260_v6, -inf }
0x13b6   :  { %2266 = vmax.xlane.f32.xlu2 %v2265_v7  ;;  %v2172_v9 = vpop.xlane.xlu1 %2171 }
0x13b7   :  { %v2176_v63 = vsub.f32 %v2165_v59, %v2172_v9 }
0x13b9   :  { %v2178_v11 = vmul.f32 1.442695, %v2176_v63 }
0x13bb   :  { %3277 = vpow2.f32 %v2178_v11 }
0x13bc   :  { %v2364_v10 = vpop.f32.mrf.mxu1 }
0x13bd   :  { %v2365_v30 = vadd.f32 %v3331_v58, %v2364_v10 }
0x13be   :  { %v2175_v13 = vpop.xlane.xlu0 %2174 }
0x13bf   :  { %v2370_v12 = vsel %vm406_vm14, %v2365_v30, -inf  ;;  %v2177_v16 = vsub.f32 %v2168_v2, %v2175_v13 }
0x13c0   :  { %2371 = vmax.xlane.f32.xlu1 %v2370_v12 }
0x13c1   :  { %v2470_v14 = vpop.f32.mrf.mxu3  ;;  %v2180_v22 = vmul.f32 1.442695, %v2177_v16  ;;  %v3278_v24 = vpop.eup %3277 }
0x13c2   :  { %v2471_v15 = vadd.f32 %v3331_v58, %v2470_v14  ;;  %v2182_v27 = vsel %vm406_vm14, %v3278_v24, 0.0 }
0x13c3   :  { %3279 = vpow2.f32 %v2180_v22 }
0x13c4   :  { %v2367_v18 = vpop.f32.mrf.mxu1  ;;  %v2476_v20 = vsel %vm406_vm14, %v2471_v15, -inf }
0x13c5   :  { %v2368_v21 = vadd.f32 %v3332_v1, %v2367_v18  ;;  %2477 = vmax.xlane.f32.xlu0 %v2476_v20 }
0x13c7   :  { %v2373_v5 = vsel %vm406_vm14, %v2368_v21, -inf }
0x13c8   :  { %2374 = vmax.xlane.f32.xlu2 %v2373_v5 }
0x13c9   :  { %v3280_v29 = vpop.eup %3279 }
0x13ca   :  { %v2473_v25 = vpop.f32.mrf.mxu3  ;;  %v2185_v31 = vsel %vm406_vm14, %v3280_v29, 0.0 }
0x13cb   :  { %v2474_v26 = vadd.f32 %v3332_v1, %v2473_v25 }
0x13cd   :  { %2183 = vadd.xlane.f32.xlu0 %v2182_v27  ;;  %v2479_v49 = vsel %vm406_vm14, %v2474_v26, -inf }
0x13ce   :  { %2480 = vmax.xlane.f32.xlu1 %v2479_v49 }
0x13d6   :  { %2186 = vadd.xlane.f32.xlu1 %v2185_v31 }
0x13e1   :  { %3134 = vrot.lane.b32.xlu0 %v3949_v23, %s3446_s25 }
0x13e9   :  { %3144 = vrot.lane.b32.xlu0 %v3949_v23, %s3447_s12 }
0x1417   :  { %v2264_v32 = vpop.xlane.xlu2 %2263 }
0x1418   :  { %v2268_v33 = vsub.f32 %v2257_v19, %v2264_v32 }
0x141a   :  { %v2270_v35 = vmul.f32 1.442695, %v2268_v33 }
0x141c   :  { %3281 = vpow2.f32 %v2270_v35 }
0x1422   :  { %v3282_v57 = vpop.eup %3281 }
0x1423   :  { %v2274_v17 = vsel %vm406_vm14, %v3282_v57, 0.0 }
0x1424   :  { %2275 = vadd.xlane.f32.xlu2 %v2274_v17 }
0x1429   :  { %v2267_v62 = vpop.xlane.xlu2 %2266 }
0x142a   :  { %v2269_v36 = vsub.f32 %v2260_v6, %v2267_v62 }
0x142c   :  { %v2272_v37 = vmul.f32 1.442695, %v2269_v36 }
0x142e   :  { %3283 = vpow2.f32 %v2272_v37 }
0x1433   :  { %v2372_v38 = vpop.xlane.xlu1 %2371 }
0x1434   :  { %v3284_v41 = vpop.eup %3283  ;;  %v2376_v42 = vsub.f32 %v2365_v30, %v2372_v38 }
0x1435   :  { %v2277_v43 = vsel %vm406_vm14, %v3284_v41, 0.0 }
0x1436   :  { %v2378_v45 = vmul.f32 1.442695, %v2376_v42  ;;  %2278 = vadd.xlane.f32.xlu2 %v2277_v43  ;;  %v2561_v42 = vld [vmem:[#allocation5 + $0x178] sm:$0xff]  ;;  %v2560_v43 = vld [vmem:[#allocation5 + $0x170] sm:$0xff] }
0x1437   :  { %2564 = vmatpush.msra.mxu1 %v2561_v42  ;;  %v2644_v42 = vld [vmem:[#allocation7 + $0x230] sm:$0xff] }
0x1438   :  { %3285 = vpow2.f32 %v2378_v45  ;;  %v2478_v46 = vpop.xlane.xlu0 %2477  ;;  %v2559_v45 = vld [vmem:[#allocation5 + $0x168] sm:$0xff] }
0x1439   :  { %v2482_v50 = vsub.f32 %v2471_v15, %v2478_v46  ;;  %2565 = vmatpush.msra.mxu1 %v2560_v43  ;;  %v2558_v46 = vld [vmem:[#allocation5 + $0x160] sm:$0xff]  ;;  %v2645_v43 = vld [vmem:[#allocation7 + $0x238] sm:$0xff] }
0x143b   :  { %v2375_v47 = vpop.xlane.xlu2 %2374  ;;  %v2484_v56 = vmul.f32 1.442695, %v2482_v50  ;;  %2566 = vmatpush.msra.mxu1 %v2559_v45  ;;  %v2642_v45 = vld [vmem:[#allocation7 + $0x220] sm:$0xff] }
0x143c   :  { %v2377_v52 = vsub.f32 %v2368_v21, %v2375_v47  ;;  %v2557_v47 = vld [vmem:[#allocation5 + $0x158] sm:$0xff] }
0x143d   :  { %2567 = vmatpush.msra.mxu1 %v2558_v46  ;;  %v2643_v46 = vld [vmem:[#allocation7 + $0x228] sm:$0xff] }
0x143e   :  { %v3286_v48 = vpop.eup %3285  ;;  %v2380_v51 = vmul.f32 1.442695, %v2377_v52  ;;  %v2556_v52 = vld [vmem:[#allocation5 + $0x150] sm:$0xff] }
0x143f   :  { %v2382_v54 = vsel %vm406_vm14, %v3286_v48, 0.0  ;;  %2568 = vmatpush.msra.mxu1 %v2557_v47  ;;  %v2640_v47 = vld [vmem:[#allocation7 + $0x210] sm:$0xff] }
0x1440   :  { %3287 = vpow2.f32 %v2380_v51  ;;  %v2184_v40 = vpop.xlane.xlu0 %2183  ;;  %2383 = vadd.xlane.f32.xlu1 %v2382_v54  ;;  %v2554_v51 = vld [vmem:[#allocation5 + $0x140] sm:$0xff]  ;;  %v2553_v54 = vld [vmem:[#allocation5 + $0x138] sm:$0xff] }
0x1441   :  { %3289 = vrcp.f32 %v2184_v40  ;;  %v2481_v55 = vpop.xlane.xlu1 %2480  ;;  %2569 = vmatpush.msra.mxu1 %v2556_v52  ;;  %v2552_v40 = vld [vmem:[#allocation5 + $0x130] sm:$0xff]  ;;  %v2641_v52 = vld [vmem:[#allocation7 + $0x218] sm:$0xff] }
0x1442   :  { %3291 = vpow2.f32 %v2484_v56  ;;  %v2483_v59 = vsub.f32 %v2474_v26, %v2481_v55  ;;  %v2551_v55 = vld [vmem:[#allocation5 + $0x128] sm:$0xff]  ;;  %v2550_v56 = vld [vmem:[#allocation5 + $0x120] sm:$0xff] }
0x1444   :  { %v2486_v1 = vmul.f32 1.442695, %v2483_v59  ;;  %v2549_v59 = vld [vmem:[#allocation5 + $0x118] sm:$0xff] }
0x1446   :  { %v3288_v58 = vpop.eup %3287 }
0x1447   :  { %v3290_v39 = vpop.eup %3289  ;;  %v2385_v44 = vsel %vm406_vm14, %v3288_v58, 0.0 }
0x1448   :  { %v2190_v34 = vmul.f32 %v3290_v39, %v3278_v24  ;;  %2386 = vadd.xlane.f32.xlu1 %v2385_v44  ;;  %v3292_v2 = vpop.eup %3291  ;;  %v2548_v39 = vld [vmem:[#allocation5 + $0x110] sm:$0xff]  ;;  %v2547_v44 = vld [vmem:[#allocation5 + $0x108] sm:$0xff] }
0x1449   :  { %v2187_v61 = vpop.xlane.xlu1 %2186  ;;  %v2488_v3 = vsel %vm406_vm14, %v3292_v2, 0.0 }
0x144a   :  { %3293 = vrcp.f32 %v2187_v61  ;;  %3064 = vmatmul.msk.f32.vlgmr.msra.gmra.mxu2 %vm406_vm14, %v2190_v34  ;;  %v2546_v34 = vld [vmem:[#allocation5 + $0x100] sm:$0xff] }
0x144b   :  { %3295 = vpow2.f32 %v2486_v1 }
0x144e   :  { %3139 = vrot.lane.b32.xlu2 %v3949_v23, %s3448_s22 }
0x1450   :  { %v3294_v60 = vpop.eup %3293  ;;  %2489 = vadd.xlane.f32.xlu1 %v2488_v3 }
0x1451   :  { %v2191_v19 = vmul.f32 %v3294_v60, %v3280_v29  ;;  %v3296_v28 = vpop.eup %3295 }
0x1452   :  { %v2491_v9 = vsel %vm406_vm14, %v3296_v28, 0.0 }
0x1453   :  { %v3135_v53 = vpop.permute.xlu0 %3134  ;;  %3065 = vmatmul.msk.f32.gmra.mxu2 %vm406_vm14, %v2191_v19 }
0x1454   :  { %v3136_v6 = vunpack.i.l.bf16 %v3135_v53  ;;  %v3137_v7 = vunpack.i.h.bf16 %v3135_v53  ;;  %v3164_v53 = vld [vmem:[%s4176_s9 + $0x2] ss:$0 sm:$0xff] }
0x1456   :  { %2312 = vmatpush.msrb.mxu0 %v3136_v6 }
0x1458   :  { %2313 = vmatpush.msrb.mxu0 %v3137_v7  ;;  %2492 = vadd.xlane.f32.xlu1 %v2491_v9 }
0x145b   :  { %v3145_v63 = vpop.permute.xlu0 %3144 }
0x145c   :  { %v3146_v10 = vunpack.i.l.bf16 %v3145_v63  ;;  %v3147_v30 = vunpack.i.h.bf16 %v3145_v63 }
0x145e   :  { %2524 = vmatpush.msra.mxu0 %v3146_v10 }
0x1460   :  { %2525 = vmatpush.msra.mxu0 %v3147_v30  ;;  %v2668_v30 = vld [vmem:[#allocation7 + $0x2f0] sm:$0xff] }
0x1497   :  { %v2276_v23 = vpop.xlane.xlu2 %2275 }
0x1498   :  { %3297 = vrcp.f32 %v2276_v23  ;;  %v2669_v23 = vld [vmem:[#allocation7 + $0x2f8] sm:$0xff] }
0x1499   :  { %2700 = vmatpush.msra.mxu3 %v2669_v23 }
0x149e   :  { %v3298_v11 = vpop.eup %3297 }
0x149f   :  { %v2282_v12 = vmul.f32 %v3298_v11, %v3282_v57  ;;  %v2666_v11 = vld [vmem:[#allocation7 + $0x2e0] sm:$0xff] }
0x14a1   :  { %3070 = vmatmul.msk.f32.vlgmr.msrb.gmra.mxu0 %vm406_vm14, %v2282_v12  ;;  %v2667_v12 = vld [vmem:[#allocation7 + $0x2e8] sm:$0xff] }
0x14a2   :  { %2701 = vmatpush.msra.mxu3 %v2667_v12 }
0x14a9   :  { %v2279_v13 = vpop.xlane.xlu2 %2278 }
0x14aa   :  { %3299 = vrcp.f32 %v2279_v13 }
0x14b0   :  { %v3300_v14 = vpop.eup %3299 }
0x14b1   :  { %v3140_v15 = vpop.permute.xlu2 %3139  ;;  %v2283_v16 = vmul.f32 %v3300_v14, %v3284_v41 }
0x14b2   :  { %v3141_v18 = vunpack.i.l.bf16 %v3140_v15  ;;  %v3142_v21 = vunpack.i.h.bf16 %v3140_v15 }
0x14b3   :  { %3071 = vmatmul.msk.f32.gmra.mxu0 %vm406_vm14, %v2283_v16  ;;  %v2384_v20 = vpop.xlane.xlu1 %2383 }
0x14b4   :  { %3301 = vrcp.f32 %v2384_v20  ;;  %2418 = vmatpush.msrb.mxu2 %v3141_v18 }
0x14b6   :  { %2419 = vmatpush.msrb.mxu2 %v3142_v21  ;;  %v2664_v21 = vld [vmem:[#allocation7 + $0x2d0] sm:$0xff] }
0x14b8   :  { %2677 = vmatpush.msra.mxu2 %v2668_v30 }
0x14ba   :  { %v3302_v5 = vpop.eup %3301  ;;  %2678 = vmatpush.msra.mxu2 %v2666_v11  ;;  %v3166_v11 = vld [vmem:[%s4178_s11 + $0x2] ss:$0 sm:$0xff] }
0x14bb   :  { %v2390_v22 = vmul.f32 %v3302_v5, %v3286_v48  ;;  %v2387_v24 = vpop.xlane.xlu1 %2386  ;;  %v2555_v48 = vld [vmem:[#allocation5 + $0x148] sm:$0xff]  ;;  %v2665_v5 = vld [vmem:[#allocation7 + $0x2d8] sm:$0xff] }
0x14bc   :  { %3303 = vrcp.f32 %v2387_v24  ;;  %2570 = vmatpush.msra.mxu1 %v2555_v48  ;;  %2679 = vmatpush.msra.mxu2 %v2664_v21  ;;  %v2663_v24 = vld [vmem:[#allocation7 + $0x2c8] sm:$0xff]  ;;  %v2638_v48 = vld [vmem:[#allocation7 + $0x200] sm:$0xff] }
0x14bd   :  { %3076 = vmatmul.msk.f32.vlgmr.msrb.gmra.mxu2 %vm406_vm14, %v2390_v22  ;;  %2702 = vmatpush.msra.mxu3 %v2665_v5  ;;  %v2662_v22 = vld [vmem:[#allocation7 + $0x2c0] sm:$0xff] }
0x14be   :  { %2571 = vmatpush.msra.mxu1 %v2554_v51  ;;  %2680 = vmatpush.msra.mxu2 %v2662_v22  ;;  %v2788_v22 = vld [vmem:[#allocation8 + $0x2e0] sm:$0xff] }
0x14bf   :  { %2703 = vmatpush.msra.mxu3 %v2663_v24  ;;  %v2771_v24 = vld [vmem:[#allocation8 + $0x258] sm:$0xff] }
0x14c0   :  { %2572 = vmatpush.msra.mxu1 %v2553_v54 }
0x14c2   :  { %v3304_v25 = vpop.eup %3303  ;;  %2573 = vmatpush.msra.mxu1 %v2552_v40 }
0x14c3   :  { %v2490_v26 = vpop.xlane.xlu1 %2489  ;;  %v2391_v27 = vmul.f32 %v3304_v25, %v3288_v58  ;;  %v2660_v25 = vld [vmem:[#allocation7 + $0x2b0] sm:$0xff] }
0x14c4   :  { %3305 = vrcp.f32 %v2490_v26  ;;  %2574 = vmatpush.msra.mxu1 %v2551_v55  ;;  %v2661_v26 = vld [vmem:[#allocation7 + $0x2b8] sm:$0xff]  ;;  %2681 = vmatpush.msra.mxu2 %v2660_v25 }
0x14c5   :  { %3077 = vmatmul.msk.f32.gmra.mxu2 %vm406_vm14, %v2391_v27  ;;  %2704 = vmatpush.msra.mxu3 %v2661_v26  ;;  %v2658_v27 = vld [vmem:[#allocation7 + $0x2a0] sm:$0xff]  ;;  %v2775_v55 = vld [vmem:[#allocation8 + $0x278] sm:$0xff]  ;;  %v2770_v26 = vld [vmem:[#allocation8 + $0x250] sm:$0xff] }
0x14c6   :  { %2575 = vmatpush.msra.mxu1 %v2550_v56  ;;  %2682 = vmatpush.msra.mxu2 %v2658_v27  ;;  %v2791_v56 = vld [vmem:[#allocation8 + $0x2f8] sm:$0xff]  ;;  %v2786_v27 = vld [vmem:[#allocation8 + $0x2d0] sm:$0xff] }
0x14c7   :  { %2794 = vmatpush.msrb.mxu0 %v2775_v55  ;;  %v2787_v25 = vld [vmem:[#allocation8 + $0x2d8] sm:$0xff] }
0x14c8   :  { %2576 = vmatpush.msra.mxu1 %v2549_v59  ;;  %v2790_v59 = vld [vmem:[#allocation8 + $0x2f0] sm:$0xff] }
0x14ca   :  { %v3306_v49 = vpop.eup %3305  ;;  %2577 = vmatpush.msra.mxu1 %v2548_v39  ;;  %v2773_v39 = vld [vmem:[#allocation8 + $0x268] sm:$0xff] }
0x14cb   :  { %v2496_v29 = vmul.f32 %v3306_v49, %v3292_v2  ;;  %v2493_v31 = vpop.xlane.xlu1 %2492  ;;  %v2659_v49 = vld [vmem:[#allocation7 + $0x2a8] sm:$0xff] }
0x14cc   :  { %3307 = vrcp.f32 %v2493_v31  ;;  %2578 = vmatpush.msra.mxu1 %v2547_v44  ;;  %2705 = vmatpush.msra.mxu3 %v2659_v49  ;;  %v2657_v31 = vld [vmem:[#allocation7 + $0x298] sm:$0xff]  ;;  %v2789_v44 = vld [vmem:[#allocation8 + $0x2e8] sm:$0xff] }
0x14cd   :  { %v2215_v32 = vpop.f32.mrf.mxu2  ;;  %3082 = vmatmul.msk.f32.vlgmr.msra.gmra.mxu0 %vm406_vm14, %v2496_v29  ;;  %v2656_v29 = vld [vmem:[#allocation7 + $0x290] sm:$0xff]  ;;  %v2769_v49 = vld [vmem:[#allocation8 + $0x248] sm:$0xff] }
0x14ce   :  { %2221 = vst.msk [vmem:[#allocation2] sm:$0xff] %vm370_vm13, %v2215_v32  ;;  %2579 = vmatpush.msra.mxu1 %v2546_v34  ;;  %2683 = vmatpush.msra.mxu2 %v2656_v29  ;;  %v2654_v32 = vld [vmem:[#allocation7 + $0x280] sm:$0xff]  ;;  %v2785_v29 = vld [vmem:[#allocation8 + $0x2c8] sm:$0xff] }
0x14cf   :  { %2706 = vmatpush.msra.mxu3 %v2657_v31  ;;  %v2784_v31 = vld [vmem:[#allocation8 + $0x2c0] sm:$0xff] }
0x14d0   :  { %2684 = vmatpush.msra.mxu2 %v2654_v32  ;;  %2817 = vmatpush.msrb.mxu1 %v2791_v56  ;;  %v2767_v32 = vld [vmem:[#allocation8 + $0x238] sm:$0xff] }
0x14d2   :  { %v3308_v33 = vpop.eup %3307  ;;  %2818 = vmatpush.msrb.mxu1 %v2790_v59 }
0x14d3   :  { %v2497_v35 = vmul.f32 %v3308_v33, %v3296_v28  ;;  %v2655_v33 = vld [vmem:[#allocation7 + $0x288] sm:$0xff] }
0x14d4   :  { %2707 = vmatpush.msra.mxu3 %v2655_v33  ;;  %2819 = vmatpush.msrb.mxu1 %v2789_v44  ;;  %v2783_v33 = vld [vmem:[#allocation8 + $0x2b8] sm:$0xff]  ;;  %v2856_v44 = vld [vmem:[%s4183_s16 + $0x70] sm:$0xff] }
0x14d5   :  { %3083 = vmatmul.msk.f32.gmra.mxu0 %vm406_vm14, %v2497_v35  ;;  %v2652_v35 = vld [vmem:[#allocation7 + $0x270] sm:$0xff] }
0x14d6   :  { %v2218_v57 = vpop.f32.mrf.mxu2  ;;  %2685 = vmatpush.msra.mxu2 %v2652_v35  ;;  %2820 = vmatpush.msrb.mxu1 %v2788_v22  ;;  %v2766_v35 = vld [vmem:[#allocation8 + $0x230] sm:$0xff]  ;;  %v2849_v22 = vld [vmem:[%s4183_s16 + $0x38] sm:$0xff] }
0x14d7   :  { %2222 = vst.msk [vmem:[#allocation2 + $0x8] sm:$0xff] %vm370_vm13, %v2218_v57  ;;  %v2653_v57 = vld [vmem:[#allocation7 + $0x278] sm:$0xff] }
0x14d8   :  { %2708 = vmatpush.msra.mxu3 %v2653_v57  ;;  %2821 = vmatpush.msrb.mxu1 %v2787_v25  ;;  %v2782_v57 = vld [vmem:[#allocation8 + $0x2b0] sm:$0xff] }
0x14da   :  { %2822 = vmatpush.msrb.mxu1 %v2786_v27  ;;  %v2848_v27 = vld [vmem:[%s4183_s16 + $0x30] sm:$0xff] }
0x14dc   :  { %2823 = vmatpush.msrb.mxu1 %v2785_v29 }
0x14de   :  { %2824 = vmatpush.msrb.mxu1 %v2784_v31  ;;  %v2847_v31 = vld [vmem:[%s4183_s16 + $0x28] sm:$0xff] }
0x14e0   :  { %2825 = vmatpush.msrb.mxu1 %v2783_v33 }
0x14e2   :  { %2826 = vmatpush.msrb.mxu1 %v2782_v57 }
0x151e   :  { %v2315_v17 = vpop.f32.mrf.mxu0 }
0x151f   :  { %2323 = vrot.lane.b32.xlu0 %v2315_v17, %s3447_s12  ;;  %v2650_v17 = vld [vmem:[#allocation7 + $0x260] sm:$0xff] }
0x1520   :  { %2686 = vmatpush.msra.mxu2 %v2650_v17  ;;  %v2765_v17 = vld [vmem:[#allocation8 + $0x228] sm:$0xff] }
0x1530   :  { %v2318_v62 = vpop.f32.mrf.mxu0 }
0x1531   :  { %2325 = vrot.lane.b32.xlu0 %v2318_v62, %s3447_s12  ;;  %v2651_v62 = vld [vmem:[#allocation7 + $0x268] sm:$0xff] }
0x1532   :  { %2709 = vmatpush.msra.mxu3 %v2651_v62  ;;  %v2781_v62 = vld [vmem:[#allocation8 + $0x2a8] sm:$0xff] }
0x1533   :  { %2827 = vmatpush.msrb.mxu1 %v2781_v62 }
0x1540   :  { %v2421_v36 = vpop.f32.mrf.mxu2 }
0x1541   :  { %2429 = vrot.lane.b32.xlu2 %v2421_v36, %s3448_s22  ;;  %v2648_v36 = vld [vmem:[#allocation7 + $0x250] sm:$0xff] }
0x1542   :  { %2687 = vmatpush.msra.mxu2 %v2648_v36  ;;  %v2764_v36 = vld [vmem:[#allocation8 + $0x220] sm:$0xff] }
0x1548   :  { %v2424_v37 = vpop.f32.mrf.mxu2 }
0x1549   :  { %2431 = vrot.lane.b32.xlu2 %v2424_v37, %s3448_s22  ;;  %v2649_v37 = vld [vmem:[#allocation7 + $0x258] sm:$0xff] }
0x154a   :  { %v2527_v38 = vpop.f32.mrf.mxu0  ;;  %2710 = vmatpush.msra.mxu3 %v2649_v37  ;;  %v2780_v37 = vld [vmem:[#allocation8 + $0x2a0] sm:$0xff] }
0x154b   :  { %2535 = vrot.lane.b32.xlu1 %v2527_v38, %s3446_s25  ;;  %v2646_v38 = vld [vmem:[#allocation7 + $0x240] sm:$0xff]  ;;  %2828 = vmatpush.msrb.mxu1 %v2780_v37 }
0x154c   :  { %2688 = vmatpush.msra.mxu2 %v2646_v38  ;;  %v2763_v38 = vld [vmem:[#allocation8 + $0x218] sm:$0xff] }
0x154e   :  { %2689 = vmatpush.msra.mxu2 %v2644_v42  ;;  %v2762_v42 = vld [vmem:[#allocation8 + $0x210] sm:$0xff] }
0x1550   :  { %2690 = vmatpush.msra.mxu2 %v2642_v45  ;;  %v2761_v45 = vld [vmem:[#allocation8 + $0x208] sm:$0xff] }
0x1552   :  { %v2530_v41 = vpop.f32.mrf.mxu0  ;;  %2691 = vmatpush.msra.mxu2 %v2640_v47  ;;  %v2760_v47 = vld [vmem:[#allocation8 + $0x200] sm:$0xff] }
0x1553   :  { %2537 = vrot.lane.b32.xlu0 %v2530_v41, %s3446_s25  ;;  %v2647_v41 = vld [vmem:[#allocation7 + $0x248] sm:$0xff] }
0x1554   :  { %2711 = vmatpush.msra.mxu3 %v2647_v41  ;;  %2692 = vmatpush.msra.mxu2 %v2638_v48  ;;  %v2779_v41 = vld [vmem:[#allocation8 + $0x298] sm:$0xff]  ;;  %v3084_v48 = vld [vmem:[%s4180_s13 + $0x2] ss:$4 sm:$0x3] }
0x1555   :  { %2829 = vmatpush.msrb.mxu1 %v2779_v41 }
0x1556   :  { %2712 = vmatpush.msra.mxu3 %v2645_v43  ;;  %v2778_v43 = vld [vmem:[#allocation8 + $0x290] sm:$0xff] }
0x1557   :  { %2830 = vmatpush.msrb.mxu1 %v2778_v43 }
0x1558   :  { %2713 = vmatpush.msra.mxu3 %v2643_v46  ;;  %v2777_v46 = vld [vmem:[#allocation8 + $0x288] sm:$0xff] }
0x1559   :  { %2831 = vmatpush.msrb.mxu1 %v2777_v46  ;;  %v2845_v46 = vld [vmem:[%s4183_s16 + $0x18] sm:$0xff] }
0x155a   :  { %2714 = vmatpush.msra.mxu3 %v2641_v52  ;;  %v2776_v52 = vld [vmem:[#allocation8 + $0x280] sm:$0xff] }
0x155b   :  { %2832 = vmatpush.msrb.mxu1 %v2776_v52  ;;  %v2843_v52 = vld [vmem:[%s4183_s16 + $0x8] sm:$0xff] }
0x1591   :  { %v2324_v50 = vpop.permute.xlu0 %2323 }
0x1592   :  { %2329 = vst.msk [vmem:[#allocation2] sm:$0xff] %vm566_vm15, %v2324_v50  ;;  %v2639_v50 = vld [vmem:[#allocation7 + $0x208] sm:$0xff] }
0x1593   :  { %2715 = vmatpush.msra.mxu3 %v2639_v50  ;;  %v2673_v50 = vperm.slane %v3084_v48, 0 }
0x159b   :  { %v2430_v58 = vpop.permute.xlu2 %2429 }
0x159c   :  { %2435 = vst.msk [vmem:[#allocation2] sm:$0xff] %vm673_vm0, %v2430_v58  ;;  %v2774_v58 = vld [vmem:[#allocation8 + $0x270] sm:$0xff] }
0x159d   :  { %2795 = vmatpush.msrb.mxu0 %v2774_v58 }
0x159f   :  { %2796 = vmatpush.msrb.mxu0 %v2773_v39  ;;  %v2857_v39 = vld [vmem:[%s4183_s16 + $0x78] sm:$0xff] }
0x15a0   :  { %2862 = vmatpush.msrb.mxu2 %v2857_v39 }
0x15a2   :  { %2863 = vmatpush.msrb.mxu2 %v2856_v44 }
0x15a3   :  { %v2326_v61 = vpop.permute.xlu0 %2325  ;;  %v2432_v1 = vpop.permute.xlu2 %2431 }
0x15a4   :  { %2330 = vst.msk [vmem:[#allocation2 + $0x8] sm:$0xff] %vm566_vm15, %v2326_v61 }
0x15a5   :  { %2436 = vst.msk [vmem:[#allocation2 + $0x8] sm:$0xff] %vm673_vm0, %v2432_v1 }
0x15bd   :  { %v2536_v2 = vpop.permute.xlu1 %2535 }
0x15be   :  { %2541 = vst.msk [vmem:[#allocation2] sm:$0xff] %vm780_vm1, %v2536_v2 }
0x15c5   :  { %v2538_v3 = vpop.permute.xlu0 %2537  ;;  %v2543_v60 = vld [vmem:[#allocation2] sm:$0xff] }
0x15c6   :  { %2542 = vst.msk [vmem:[#allocation2 + $0x8] sm:$0xff] %vm780_vm1, %v2538_v3  ;;  %2580 = vmatmul.f32.vlgmr.msra.gmra.mxu1 %v2543_v60 }
0x15cd   :  { %v2544_v19 = vld [vmem:[#allocation2 + $0x8] sm:$0xff] }
0x15ce   :  { %2583 = vmatmul.f32.gmra.mxu1 %v2544_v19 }
0x1643   :  { %v2581_v28 = vpop.f32.mrf.mxu1 }
0x1644   :  { %v2582_v6 = vadd.f32 %v3164_v53, %v2581_v28 }
0x1646   :  { %v4029_v7 = vadd.f32 %v2582_v6, %v3913_v0 }
0x1648   :  { %2591 = vadd.xlane.f32.xlu2 %v4029_v7 }
0x164b   :  { %v2584_v9 = vpop.f32.mrf.mxu1 }
0x164c   :  { %v2585_v63 = vadd.f32 %v3164_v53, %v2584_v9 }
0x164e   :  { %v4033_v10 = vadd.f32 %v2585_v63, %v3917_v4  ;;  %v3165_v63 = vld [vmem:[%s4177_s10 + $0x2] ss:$0 sm:$0xff] }
0x1650   :  { %2593 = vadd.xlane.f32.xlu0 %v4033_v10 }
0x16bb   :  { %v2592_v13 = vpop.xlane.xlu2 %2591 }
0x16bc   :  { %v2595_v0 = vmul.f32 %v2592_v13, %v3582_v8 }
0x16be   :  { %v4038_v14 = vsub.f32 %v4029_v7, %v2595_v0 }
0x16c0   :  { %v2599_v4 = vmul.f32 %v4038_v14, %v4038_v14 }
0x16c2   :  { %2601 = vadd.xlane.f32.xlu1 %v2599_v4 }
0x16c3   :  { %v2594_v15 = vpop.xlane.xlu0 %2593 }
0x16c4   :  { %v2596_v16 = vmul.f32 %v2594_v15, %v3582_v8 }
0x16c6   :  { %v4044_v18 = vsub.f32 %v4033_v10, %v2596_v16 }
0x16c8   :  { %v2600_v20 = vmul.f32 %v4044_v18, %v4044_v18 }
0x16ca   :  { %2603 = vadd.xlane.f32.xlu2 %v2600_v20 }
0x1735   :  { %v2602_v51 = vpop.xlane.xlu1 %2601 }
0x1736   :  { %v2605_v54 = vmul.f32 %v2602_v51, %v3582_v8  ;;  %v2674_v51 = vperm.slane %v3084_v48, 1  ;;  %v2842_v48 = vld [vmem:[%s4183_s16] sm:$0xff] }
0x1738   :  { %v2607_v40 = vadd.f32 1e-05, %v2605_v54 }
0x173a   :  { %3309 = vrsqrt.f32 %v2607_v40  ;;  %vm2615_vm15 = vweird.f32 %v2607_v40 }
0x173d   :  { %v2604_v34 = vpop.xlane.xlu2 %2603 }
0x173e   :  { %v2606_v61 = vmul.f32 %v2604_v34, %v3582_v8 }
0x1740   :  { %v3310_v1 = vpop.eup %3309  ;;  %v2608_v2 = vadd.f32 1e-05, %v2606_v61 }
0x1741   :  { %v2610_v3 = vmul.f32 %v3310_v1, %v2607_v40  ;;  %vm2616_vm14 = vweird.f32 %v3310_v1 }
0x1742   :  { %3311 = vrsqrt.f32 %v2608_v2  ;;  %vm2617_vm0 = vmor %vm2615_vm15, %vm2616_vm14  ;;  %vm2625_vm4 = vweird.f32 %v2608_v2 }
0x1743   :  { %v2611_v60 = vmul.f32 %v3310_v1, %v2610_v3 }
0x1745   :  { %v2612_v19 = vmul.f32 0.5, %v2611_v60  ;;  %v2854_v60 = vld [vmem:[%s4183_s16 + $0x60] sm:$0xff] }
0x1747   :  { %v2613_v53 = vsub.f32 1.5, %v2612_v19 }
0x1748   :  { %v3312_v28 = vpop.eup %3311 }
0x1749   :  { %v2614_v6 = vmul.f32 %v3310_v1, %v2613_v53  ;;  %v2620_v9 = vmul.f32 %v3312_v28, %v2608_v2  ;;  %vm2626_vm1 = vweird.f32 %v3312_v28 }
0x174a   :  { %vm2627_vm5 = vmor %vm2625_vm4, %vm2626_vm1 }
0x174b   :  { %v2618_v8 = vsel %vm2617_vm0, %v3310_v1, %v2614_v6  ;;  %v2621_v30 = vmul.f32 %v3312_v28, %v2620_v9  ;;  %v2855_v1 = vld [vmem:[%s4183_s16 + $0x68] sm:$0xff] }
0x174c   :  { %v2629_v23 = vmul.f32 %v2618_v8, %v4038_v14  ;;  %v2772_v14 = vld [vmem:[#allocation8 + $0x260] sm:$0xff]  ;;  %2864 = vmatpush.msrb.mxu2 %v2855_v1  ;;  %v2853_v8 = vld [vmem:[%s4183_s16 + $0x58] sm:$0xff] }
0x174d   :  { %v2622_v12 = vmul.f32 0.5, %v2621_v30  ;;  %2797 = vmatpush.msrb.mxu0 %v2772_v14  ;;  %v2909_v1 = vld [vmem:[%s4185_s18 + $0x30] sm:$0xff] }
0x174e   :  { %v2632_v13 = vmul.f32 %v3165_v63, %v2629_v23  ;;  %2865 = vmatpush.msrb.mxu2 %v2854_v60  ;;  %v2904_v60 = vld [vmem:[%s4185_s18 + $0x8] sm:$0xff] }
0x174f   :  { %v2623_v0 = vsub.f32 1.5, %v2622_v12  ;;  %2798 = vmatpush.msrb.mxu0 %v2771_v24 }
0x1750   :  { %v2635_v4 = vadd.f32 %v3166_v11, %v2632_v13  ;;  %v2852_v13 = vld [vmem:[%s4183_s16 + $0x50] sm:$0xff]  ;;  %2866 = vmatpush.msrb.mxu2 %v2853_v8 }
0x1751   :  { %v2624_v15 = vmul.f32 %v3312_v28, %v2623_v0  ;;  %2799 = vmatpush.msrb.mxu0 %v2770_v26 }
0x1752   :  { %2693 = vmatmul.f32.vlgmr.msra.gmra.mxu2 %v2635_v4  ;;  %2716 = vmatmul.f32.vlgmr.msra.gmra.mxu3 %v2635_v4 }
0x1753   :  { %v2628_v16 = vsel %vm2627_vm5, %v3312_v28, %v2624_v15  ;;  %2800 = vmatpush.msrb.mxu0 %v2769_v49  ;;  %v2851_v15 = vld [vmem:[%s4183_s16 + $0x48] sm:$0xff]  ;;  %2867 = vmatpush.msrb.mxu2 %v2852_v13 }
0x1754   :  { %v2630_v20 = vmul.f32 %v2628_v16, %v4044_v18  ;;  %v2768_v18 = vld [vmem:[#allocation8 + $0x240] sm:$0xff] }
0x1755   :  { %2801 = vmatpush.msrb.mxu0 %v2768_v18  ;;  %2868 = vmatpush.msrb.mxu2 %v2851_v15 }
0x1756   :  { %v2633_v21 = vmul.f32 %v3165_v63, %v2630_v20 }
0x1757   :  { %2802 = vmatpush.msrb.mxu0 %v2767_v32 }
0x1758   :  { %v2636_v5 = vadd.f32 %v3166_v11, %v2633_v21  ;;  %v2850_v21 = vld [vmem:[%s4183_s16 + $0x40] sm:$0xff] }
0x1759   :  { %2803 = vmatpush.msrb.mxu0 %v2766_v35  ;;  %2869 = vmatpush.msrb.mxu2 %v2850_v21  ;;  %v2846_v35 = vld [vmem:[%s4183_s16 + $0x20] sm:$0xff] }
0x175a   :  { %2696 = vmatmul.f32.gmra.mxu2 %v2636_v5  ;;  %2719 = vmatmul.f32.gmra.mxu3 %v2636_v5 }
0x175b   :  { %2804 = vmatpush.msrb.mxu0 %v2765_v17  ;;  %2870 = vmatpush.msrb.mxu2 %v2849_v22 }
0x175d   :  { %2805 = vmatpush.msrb.mxu0 %v2764_v36  ;;  %2871 = vmatpush.msrb.mxu2 %v2848_v27  ;;  %v2966_v27 = vld [vmem:[%s4187_s20 + $0x18] sm:$0xff] }
0x175f   :  { %2806 = vmatpush.msrb.mxu0 %v2763_v38  ;;  %2872 = vmatpush.msrb.mxu2 %v2847_v31  ;;  %v3169_v31 = vld [vmem:[%s4186_s19] ss:$0 sm:$0xff] }
0x1761   :  { %2807 = vmatpush.msrb.mxu0 %v2762_v42  ;;  %2873 = vmatpush.msrb.mxu2 %v2846_v35 }
0x1763   :  { %2808 = vmatpush.msrb.mxu0 %v2761_v45  ;;  %2874 = vmatpush.msrb.mxu2 %v2845_v46 }
0x1765   :  { %2809 = vmatpush.msrb.mxu0 %v2760_v47  ;;  %v2844_v47 = vld [vmem:[%s4183_s16 + $0x10] sm:$0xff] }
0x1766   :  { %2875 = vmatpush.msrb.mxu2 %v2844_v47 }
0x1767   :  { %2989 = vmatpush.msra.mxu0 %v2966_v27 }
0x1768   :  { %2876 = vmatpush.msrb.mxu2 %v2843_v52 }
0x176a   :  { %2877 = vmatpush.msrb.mxu2 %v2842_v48 }
0x17d5   :  { %v2694_v54 = vpop.f32.mrf.mxu2  ;;  %v2717_v40 = vpop.f32.mrf.mxu3 }
0x17d6   :  { %v2695_v55 = vadd.f32 %v2694_v54, %v2673_v50  ;;  %v2718_v56 = vadd.f32 %v2717_v40, %v2674_v51 }
0x17d8   :  { %v2723_v58 = vmul.f32 %v2695_v55, %v2695_v55  ;;  %v2724_v59 = vmul.f32 %v2718_v56, %v2718_v56 }
0x17da   :  { %v2727_v34 = vmul.f32 %v2723_v58, %v2695_v55  ;;  %v2728_v61 = vmul.f32 %v2724_v59, %v2718_v56 }
0x17dc   :  { %v2731_v2 = vmul.f32 0.044715, %v2727_v34  ;;  %v2732_v3 = vmul.f32 0.044715, %v2728_v61  ;;  %v2910_v61 = vld [vmem:[%s4185_s18 + $0x38] sm:$0xff] }
0x17dd   :  { %v2697_v19 = vpop.f32.mrf.mxu2  ;;  %v2720_v53 = vpop.f32.mrf.mxu3  ;;  %2930 = vmatpush.msrb.mxu3 %v2910_v61 }
0x17de   :  { %v2735_v28 = vadd.f32 %v2731_v2, %v2695_v55  ;;  %v2736_v6 = vadd.f32 %v2732_v3, %v2718_v56  ;;  %v2698_v9 = vadd.f32 %v2697_v19, %v2673_v50  ;;  %v2721_v63 = vadd.f32 %v2720_v53, %v2674_v51  ;;  %v3167_v50 = vld [vmem:[%s4182_s15 + $0x2] ss:$0 sm:$0xff]  ;;  %v2906_v2 = vld [vmem:[%s4185_s18 + $0x18] sm:$0xff]  ;;  %v2905_v3 = vld [vmem:[%s4185_s18 + $0x10] sm:$0xff]  ;;  %s4212_s15 = sld [smem:[#allocation21_spill]] }
0x17df   :  { %2931 = vmatpush.msrb.mxu3 %v2909_v1  ;;  %v2903_v19 = vld [vmem:[%s4185_s18] sm:$0xff] }
0x17e0   :  { %v2739_v30 = vmul.f32 0.7978846, %v2735_v28  ;;  %v2740_v23 = vmul.f32 0.7978846, %v2736_v6  ;;  %v2725_v11 = vmul.f32 %v2698_v9, %v2698_v9  ;;  %v2726_v12 = vmul.f32 %v2721_v63, %v2721_v63  ;;  %v3168_v53 = vld [vmem:[%s4184_s17] ss:$0 sm:$0xff] }
0x17e2   :  { %3313 = vtanh.f32 %v2739_v30  ;;  %v2729_v0 = vmul.f32 %v2725_v11, %v2698_v9  ;;  %v2730_v4 = vmul.f32 %v2726_v12, %v2721_v63 }
0x17e3   :  { %3315 = vtanh.f32 %v2740_v23 }
0x17e4   :  { %v2733_v16 = vmul.f32 0.044715, %v2729_v0  ;;  %v2734_v20 = vmul.f32 0.044715, %v2730_v4 }
0x17e6   :  { %v2737_v5 = vadd.f32 %v2733_v16, %v2698_v9  ;;  %v2738_v14 = vadd.f32 %v2734_v20, %v2721_v63 }
0x17e8   :  { %v3314_v24 = vpop.eup %3313  ;;  %v2741_v25 = vmul.f32 0.7978846, %v2737_v5  ;;  %v2742_v26 = vmul.f32 0.7978846, %v2738_v14 }
0x17e9   :  { %v3316_v49 = vpop.eup %3315  ;;  %v2747_v29 = vadd.f32 1.0, %v3314_v24 }
0x17ea   :  { %v2748_v18 = vadd.f32 1.0, %v3316_v49  ;;  %3317 = vtanh.f32 %v2741_v25  ;;  %v2965_v49 = vld [vmem:[%s4187_s20 + $0x10] sm:$0xff] }
0x17eb   :  { %v2751_v32 = vmul.f32 0.5, %v2747_v29  ;;  %3319 = vtanh.f32 %v2742_v26  ;;  %2990 = vmatpush.msra.mxu0 %v2965_v49  ;;  %v2964_v29 = vld [vmem:[%s4187_s20 + $0x8] sm:$0xff] }
0x17ec   :  { %v2752_v33 = vmul.f32 0.5, %v2748_v18  ;;  %v2963_v18 = vld [vmem:[%s4187_s20] sm:$0xff] }
0x17ed   :  { %v2755_v57 = vmul.f32 %v2751_v32, %v2695_v55  ;;  %2991 = vmatpush.msra.mxu0 %v2964_v29 }
0x17ee   :  { %v2756_v17 = vmul.f32 %v2752_v33, %v2718_v56 }
0x17ef   :  { %2810 = vmatmul.f32.vlgmr.msrb.gmra.mxu0 %v2755_v57 }
0x17f0   :  { %v3318_v62 = vpop.eup %3317  ;;  %2833 = vmatmul.f32.vlgmr.msrb.gmra.mxu1 %v2756_v17  ;;  %2992 = vmatpush.msra.mxu0 %v2963_v18 }
0x17f1   :  { %v3320_v36 = vpop.eup %3319  ;;  %v2749_v37 = vadd.f32 1.0, %v3318_v62 }
0x17f2   :  { %v2750_v38 = vadd.f32 1.0, %v3320_v36 }
0x17f3   :  { %v2753_v41 = vmul.f32 0.5, %v2749_v37 }
0x17f4   :  { %v2754_v42 = vmul.f32 0.5, %v2750_v38 }
0x17f5   :  { %v2757_v43 = vmul.f32 %v2753_v41, %v2698_v9 }
0x17f6   :  { %v2758_v45 = vmul.f32 %v2754_v42, %v2721_v63 }
0x17f7   :  { %2813 = vmatmul.f32.gmra.mxu0 %v2757_v43 }
0x17f8   :  { %2836 = vmatmul.f32.gmra.mxu1 %v2758_v45 }
0x186c   :  { %v2811_v51 = vpop.f32.mrf.mxu0 }
0x186d   :  { %v2812_v54 = vadd.f32 %v3167_v50, %v2811_v51  ;;  %v2834_v40 = vpop.f32.mrf.mxu1 }
0x186f   :  { %v2835_v55 = vadd.f32 %v2834_v40, %v2812_v54 }
0x1871   :  { %v2840_v56 = vadd.f32 %v2835_v55, %v4029_v7  ;;  %v2908_v7 = vld [vmem:[%s4185_s18 + $0x28] sm:$0xff] }
0x1872   :  { %2932 = vmatpush.msrb.mxu3 %v2908_v7 }
0x1873   :  { %2878 = vmatmul.f32.vlgmr.msrb.gmra.mxu2 %v2840_v56  ;;  %v3170_v56 = vld [vmem:[%s4211_s8] ss:$0 sm:$0xff] }
0x1874   :  { %v2814_v58 = vpop.f32.mrf.mxu0 }
0x1875   :  { %v2815_v59 = vadd.f32 %v3167_v50, %v2814_v58  ;;  %v2837_v39 = vpop.f32.mrf.mxu1 }
0x1877   :  { %v2838_v44 = vadd.f32 %v2837_v39, %v2815_v59 }
0x1879   :  { %v2841_v34 = vadd.f32 %v2838_v44, %v4033_v10  ;;  %v2907_v10 = vld [vmem:[%s4185_s18 + $0x20] sm:$0xff] }
0x187a   :  { %2933 = vmatpush.msrb.mxu3 %v2907_v10 }
0x187b   :  { %2881 = vmatmul.f32.gmra.mxu2 %v2841_v34 }
0x187c   :  { %2934 = vmatpush.msrb.mxu3 %v2906_v2 }
0x187e   :  { %2935 = vmatpush.msrb.mxu3 %v2905_v3 }
0x1880   :  { %2936 = vmatpush.msrb.mxu3 %v2904_v60 }
0x1882   :  { %2937 = vmatpush.msrb.mxu3 %v2903_v19 }
0x18f6   :  { %v2879_v28 = vpop.f32.mrf.mxu2 }
0x18f7   :  { %v2880_v6 = vadd.f32 %v3168_v53, %v2879_v28 }
0x18f9   :  { %v2885_v9 = vmul.f32 %v2880_v6, %v2880_v6 }
0x18fb   :  { %v2887_v63 = vmul.f32 %v2885_v9, %v2880_v6 }
0x18fd   :  { %v2889_v8 = vmul.f32 0.044715, %v2887_v63 }
0x18fe   :  { %v2882_v30 = vpop.f32.mrf.mxu2 }
0x18ff   :  { %v2891_v23 = vadd.f32 %v2889_v8, %v2880_v6  ;;  %v2883_v11 = vadd.f32 %v3168_v53, %v2882_v30 }
0x1901   :  { %v2893_v12 = vmul.f32 0.7978846, %v2891_v23  ;;  %v2886_v13 = vmul.f32 %v2883_v11, %v2883_v11 }
0x1903   :  { %3321 = vtanh.f32 %v2893_v12  ;;  %v2888_v0 = vmul.f32 %v2886_v13, %v2883_v11 }
0x1905   :  { %v2890_v4 = vmul.f32 0.044715, %v2888_v0 }
0x1907   :  { %v2892_v15 = vadd.f32 %v2890_v4, %v2883_v11 }
0x1909   :  { %v3322_v16 = vpop.eup %3321  ;;  %v2894_v20 = vmul.f32 0.7978846, %v2892_v15 }
0x190a   :  { %v2897_v21 = vadd.f32 1.0, %v3322_v16 }
0x190b   :  { %3323 = vtanh.f32 %v2894_v20 }
0x190c   :  { %v2899_v5 = vmul.f32 0.5, %v2897_v21 }
0x190e   :  { %v2901_v14 = vmul.f32 %v2899_v5, %v2880_v6 }
0x1910   :  { %3085 = vmatmul.msk.f32.vlgmr.msrb.gmra.mxu3 %vm2915_vm6, %v2901_v14 }
0x1911   :  { %v3324_v22 = vpop.eup %3323 }
0x1912   :  { %v2898_v24 = vadd.f32 1.0, %v3324_v22 }
0x1914   :  { %v2900_v25 = vmul.f32 0.5, %v2898_v24 }
0x1916   :  { %v2902_v26 = vmul.f32 %v2900_v25, %v2883_v11 }
0x1918   :  { %3086 = vmatmul.msk.f32.gmra.mxu3 %vm2915_vm6, %v2902_v26 }
0x1993   :  { %v2939_v32 = vpop.f32.mrf.mxu3 }
0x1994   :  { %v2940_v33 = vadd.f32 %v3169_v31, %v2939_v32 }
0x1996   :  { %v2945_v35 = vmul.f32 %v2940_v33, %v2940_v33 }
0x1998   :  { %v2947_v57 = vmul.f32 %v2945_v35, %v2940_v33 }
0x199a   :  { %v2949_v17 = vmul.f32 0.044715, %v2947_v57 }
0x199b   :  { %v2942_v62 = vpop.f32.mrf.mxu3 }
0x199c   :  { %v2951_v36 = vadd.f32 %v2949_v17, %v2940_v33  ;;  %v2943_v37 = vadd.f32 %v3169_v31, %v2942_v62 }
0x199e   :  { %v2953_v38 = vmul.f32 0.7978846, %v2951_v36  ;;  %v2946_v41 = vmul.f32 %v2943_v37, %v2943_v37 }
0x19a0   :  { %3325 = vtanh.f32 %v2953_v38  ;;  %v2948_v42 = vmul.f32 %v2946_v41, %v2943_v37 }
0x19a2   :  { %v2950_v43 = vmul.f32 0.044715, %v2948_v42 }
0x19a4   :  { %v2952_v45 = vadd.f32 %v2950_v43, %v2943_v37 }
0x19a6   :  { %v3326_v46 = vpop.eup %3325  ;;  %v2954_v47 = vmul.f32 0.7978846, %v2952_v45 }
0x19a7   :  { %v2957_v52 = vadd.f32 1.0, %v3326_v46 }
0x19a8   :  { %3327 = vtanh.f32 %v2954_v47 }
0x19a9   :  { %v2959_v48 = vmul.f32 0.5, %v2957_v52 }
0x19ab   :  { %v2961_v50 = vmul.f32 %v2959_v48, %v2940_v33 }
0x19ad   :  { %3087 = vmatmul.msk.f32.vlgmr.msra.gmra.mxu0 %vm370_vm13, %v2961_v50 }
0x19ae   :  { %v3328_v51 = vpop.eup %3327 }
0x19af   :  { %v2958_v54 = vadd.f32 1.0, %v3328_v51 }
0x19b1   :  { %v2960_v40 = vmul.f32 0.5, %v2958_v54 }
0x19b3   :  { %v2962_v55 = vmul.f32 %v2960_v40, %v2943_v37 }
0x19b5   :  { %3088 = vmatmul.msk.f32.gmra.mxu0 %vm370_vm13, %v2962_v55 }
0x1a2a   :  { %v2994_v58 = vpop.f32.mrf.mxu0 }
0x1a2b   :  { %v2995_v59 = vadd.f32 %v3170_v56, %v2994_v58 }
0x1a2d   :  { %3000 = vst [vmem:[%s4212_s15] sm:$0xff] %v2995_v59 }
0x1a32   :  { %v2997_v39 = vpop.f32.mrf.mxu0 }
0x1a33   :  { %v2998_v44 = vadd.f32 %v3170_v56, %v2997_v39 }
0x1a35   :  { %3001 = vst [vmem:[%s4212_s15 + $0x8] sm:$0xff] %v2998_v44 }
0x1a36   :  { %3006 = vsyncpa [#allocation4], 1 }
0x1a37   :  { %3007 = vsyncpa [#allocation6], 1 }
0x1a38   :  { %3008 = vsyncpa [#allocation9], 1 }

</bundles_post_ra>
